<compile_context>
chip_gen: v7x
topology: tpu7x:2x2x1
jax: 0.10.0
libtpu: 0.0.40
codegen_flags: <defaults>
</compile_context>

<pallas_src>
import jax
import jax.numpy as jnp
from jax import lax
from jax.experimental import pallas as pl
from jax.experimental.pallas import tpu as pltpu


def basic_block_kernel(xpad_ref, w1_ref, w2_ref, b1_ref, b2_ref, o_ref, mid_scr):
    # xpad_ref: (H+4, W+2, Cp)   whole padded image for this batch element
    #                            (rows padded by 2, cols by 1, channels to Cp)
    # w*_ref  : (9, Cp, Cp)      BN-scale-folded weights, tap index = kh*3+kw
    # b*_ref  : (1, Cp)          folded BN biases (f32)
    # o_ref   : (T, W, Cp)       one H-strip of the output
    # mid_scr : (T+2, W+2, Cp)   conv1-output halo strip (= conv2 input)
    s = pl.program_id(1)
    n_strips = pl.num_programs(1)
    T, W, Cp = o_ref.shape
    Th = T + 2                                   # conv1 rows incl. 2-row halo
    cdt = mid_scr.dtype                          # MXU / staging dtype
    row0 = pl.multiple_of(s * T, T)              # strip top in padded coords

    # ---- conv1 (3x3, pad=1), bn1 scale folded: 9 accumulating K=Cp dots ----
    # Computed for the T+2 halo rows; no im2col concatenate is materialized.
    acc1 = jnp.zeros((Th * W, Cp), jnp.float32)
    for kh in range(3):
        for kw in range(3):
            patch = xpad_ref[pl.ds(row0 + kh, Th), pl.ds(kw, W), :]
            acc1 = acc1 + jnp.dot(patch.reshape(Th * W, Cp),
                                  w1_ref[kh * 3 + kw],
                                  preferred_element_type=jnp.float32)

    # ---- bn1 bias + relu (f32), cast to compute dtype --------------------
    out1 = jnp.maximum(acc1 + b1_ref[...], 0.0).reshape(Th, W, Cp).astype(cdt)

    # ---- stage conv2 input: single full-block (aligned) store -------------
    zcol = jnp.zeros((Th, 1, Cp), cdt)
    mid_scr[...] = jnp.concatenate([zcol, out1, zcol], axis=1)

    # conv2 halo rows that fall outside the image must be exact zeros
    # (conv2's own zero padding); only the edge strips touch them.
    @pl.when(s == 0)
    def _():
        mid_scr[0:1, :, :] = jnp.zeros((1, W + 2, Cp), cdt)

    @pl.when(s == n_strips - 1)
    def _():
        mid_scr[T + 1:T + 2, :, :] = jnp.zeros((1, W + 2, Cp), cdt)

    # ---- conv2 (3x3, pad=1), bn2 scale folded: 9 accumulating dots --------
    acc2 = jnp.zeros((T * W, Cp), jnp.float32)
    for kh in range(3):
        for kw in range(3):
            patch = mid_scr[pl.ds(kh, T), pl.ds(kw, W), :]
            acc2 = acc2 + jnp.dot(patch.reshape(T * W, Cp),
                                  w2_ref[kh * 3 + kw],
                                  preferred_element_type=jnp.float32)

    # ---- bn2 bias + residual (from resident padded block) + relu ----------
    res = xpad_ref[pl.ds(row0 + 2, T), pl.ds(1, W), :].astype(jnp.float32)
    out2 = jnp.maximum(acc2 + b2_ref[...] + res.reshape(T * W, Cp), 0.0)
    o_ref[...] = out2.reshape(T, W, Cp).astype(o_ref.dtype)


def basic_block_forward(x_nchw, params, eps=1e-5,
                        compute_dtype=jnp.bfloat16, out_dtype=None,
                        tile_h=32):
    """BasicBlock forward (stride=1, downsample=None), NCHW in / NCHW out."""
    N, Cin, H, W = x_nchw.shape
    w1 = params["conv1_w"]                           # (Cout, Cin, 3, 3) OIHW
    w2 = params["conv2_w"]                           # (Cout, Cout, 3, 3)
    Cout = w1.shape[0]
    assert Cin == Cout, "stride=1 / no-downsample BasicBlock needs Cin == Cout"
    out_dtype = compute_dtype if out_dtype is None else out_dtype

    LANE = 128
    Cp = ((Cout + LANE - 1) // LANE) * LANE          # lane-dense channel pad

    # ---- H-strip size: largest divisor of H that is <= tile_h --------------
    if H <= tile_h:
        T = H
    else:
        T = next(t for t in range(tile_h, 0, -1) if H % t == 0)
    n_strips = H // T

    # ---- fold BN (eval mode) into per-channel scale/bias --------------------
    s1 = params["bn1_gamma"] / jnp.sqrt(params["bn1_var"] + eps)
    b1 = params["bn1_beta"] - params["bn1_mean"] * s1
    s2 = params["bn2_gamma"] / jnp.sqrt(params["bn2_var"] + eps)
    b2 = params["bn2_beta"] - params["bn2_mean"] * s2

    # ---- weights: OIHW -> (kh, kw, Cin, Cout), fold BN scale into the output
    # channels, zero-pad both channel dims to Cp, flatten taps: (9, Cp, Cp)
    def prep_w(w, scale, cin):
        wk = jnp.transpose(w, (2, 3, 1, 0)) * scale[None, None, None, :]
        wk = jnp.pad(wk, ((0, 0), (0, 0), (0, Cp - cin), (0, Cp - Cout)))
        return wk.reshape(9, Cp, Cp).astype(compute_dtype)

    w1k = prep_w(w1, s1, Cin)
    w2k = prep_w(w2, s2, Cout)
    b1p = jnp.pad(b1, (0, Cp - Cout)).reshape(1, Cp).astype(jnp.float32)
    b2p = jnp.pad(b2, (0, Cp - Cout)).reshape(1, Cp).astype(jnp.float32)

    # ---- NCHW -> NHWC, pad rows by 2 / cols by 1 (so every strip computes
    # its 2-row conv1 halo unconditionally), channel-pad to Cp, cast.  The
    # residual is read back out of this same tensor inside the kernel.
    x = jnp.transpose(x_nchw, (0, 2, 3, 1))
    xpad = jnp.pad(x, ((0, 0), (2, 2), (1, 1), (0, Cp - Cin))).astype(compute_dtype)

    cbytes = jnp.dtype(compute_dtype).itemsize
    obytes = jnp.dtype(out_dtype).itemsize
    flops = 2 * 2 * 9 * N * H * W * Cp * Cp                    # two 3x3 convs
    bytes_accessed = (N * (H + 4) * (W + 2) * Cp * cbytes       # padded input
                      + 2 * 9 * Cp * Cp * cbytes                # weights
                      + 2 * Cp * 4                              # biases
                      + N * H * W * Cp * obytes)                # output

    # ---- VMEM budget derived from the actual block sizes --------------------
    in_blk = (H + 4) * (W + 2) * Cp * cbytes
    out_blk = T * W * Cp * obytes
    scr_blk = (T + 2) * (W + 2) * Cp * cbytes
    w_blk = 2 * 9 * Cp * Cp * cbytes + 2 * Cp * 4
    tmp_blk = ((T + 2) * W * Cp + T * W * Cp) * 4 * 2          # f32 accumulators
    need = 2 * in_blk + 2 * out_blk + scr_blk + 2 * w_blk + tmp_blk
    vmem_limit = int(min(max(1.25 * need + (4 << 20), 32 << 20), 100 << 20))

    out = pl.pallas_call(
        basic_block_kernel,
        out_shape=jax.ShapeDtypeStruct((N, H, W, Cp), out_dtype),
        grid_spec=pltpu.PrefetchScalarGridSpec(
            num_scalar_prefetch=0,
            grid=(N, n_strips),
            in_specs=[
                pl.BlockSpec((None, H + 4, W + 2, Cp), lambda b, s: (b, 0, 0, 0)),
                pl.BlockSpec((9, Cp, Cp), lambda b, s: (0, 0, 0)),
                pl.BlockSpec((9, Cp, Cp), lambda b, s: (0, 0, 0)),
                pl.BlockSpec((1, Cp), lambda b, s: (0, 0)),
                pl.BlockSpec((1, Cp), lambda b, s: (0, 0)),
            ],
            out_specs=pl.BlockSpec((None, T, W, Cp), lambda b, s: (b, s, 0, 0)),
            scratch_shapes=[pltpu.VMEM((T + 2, W + 2, Cp), compute_dtype)],
        ),
        compiler_params=pltpu.CompilerParams(
            dimension_semantics=("parallel", "parallel"),
            vmem_limit_bytes=vmem_limit),
        cost_estimate=pl.CostEstimate(flops=flops, transcendentals=0,
                                      bytes_accessed=bytes_accessed),
    )(xpad, w1k, w2k, b1p, b2p)

    out = out[..., :Cout]                           # drop channel padding
    return jnp.transpose(out, (0, 3, 1, 2))         # NHWC -> NCHW


def _reference_forward(x_nchw, params, eps=1e-5):
    """Plain-JAX reference mirroring PyTorch BasicBlock.forward (eval mode)."""
    def conv(x, w):
        return lax.conv_general_dilated(
            x, w, window_strides=(1, 1), padding=((1, 1), (1, 1)),
            dimension_numbers=("NCHW", "OIHW", "NCHW"))

    def bn(x, g, b, m, v):
        g = g[None, :, None, None]; b = b[None, :, None, None]
        m = m[None, :, None, None]; v = v[None, :, None, None]
        return g * (x - m) / jnp.sqrt(v + eps) + b

    out = conv(x_nchw, params["conv1_w"])
    out = bn(out, params["bn1_gamma"], params["bn1_beta"],
             params["bn1_mean"], params["bn1_var"])
    out = jnp.maximum(out, 0.0)
    out = conv(out, params["conv2_w"])
    out = bn(out, params["bn2_gamma"], params["bn2_beta"],
             params["bn2_mean"], params["bn2_var"])
    out = out + x_nchw
    return jnp.maximum(out, 0.0)


def init_params(key, inplanes, planes):
    ks = jax.random.split(key, 8)
    return {
        "conv1_w": 0.1 * jax.random.normal(ks[0], (planes, inplanes, 3, 3), jnp.float32),
        "conv2_w": 0.1 * jax.random.normal(ks[1], (planes, planes, 3, 3), jnp.float32),
        "bn1_gamma": 1.0 + 0.1 * jax.random.normal(ks[2], (planes,), jnp.float32),
        "bn1_beta": 0.1 * jax.random.normal(ks[3], (planes,), jnp.float32),
        "bn1_mean": 0.1 * jax.random.normal(ks[4], (planes,), jnp.float32),
        "bn1_var": jnp.abs(1.0 + 0.1 * jax.random.normal(ks[5], (planes,), jnp.float32)),
        "bn2_gamma": 1.0 + 0.1 * jax.random.normal(ks[6], (planes,), jnp.float32),
        "bn2_beta": 0.1 * jax.random.normal(ks[7], (planes,), jnp.float32),
        "bn2_mean": jnp.zeros((planes,), jnp.float32),
        "bn2_var": jnp.ones((planes,), jnp.float32),
    }


if __name__ == "__main__":
    key = jax.random.PRNGKey(0)
    k_x, k_p = jax.random.split(key)

    N, C, H, W = 2, 4, 16, 16          # inplanes = planes = 4, stride = 1
    x = jax.random.normal(k_x, (N, C, H, W), jnp.float32)
    params = init_params(k_p, inplanes=C, planes=C)

    ref = _reference_forward(x, params)

    # f32 MXU path, 2 H-strips: exercises the strip grid + edge halo zeroing.
    out_f32 = jax.block_until_ready(
        basic_block_forward(x, params, compute_dtype=jnp.float32,
                            out_dtype=jnp.float32, tile_h=8))
    assert out_f32.shape == ref.shape == (N, C, H, W)
    err = float(jnp.max(jnp.abs(out_f32 - ref)))
    assert jnp.allclose(out_f32, ref, atol=1e-4, rtol=1e-4), err

    # f32 MXU path, 4 H-strips: also covers interior strips that keep both
    # computed conv1 halo rows.
    out_f32b = jax.block_until_ready(
        basic_block_forward(x, params, compute_dtype=jnp.float32,
                            out_dtype=jnp.float32, tile_h=4))
    err_b = float(jnp.max(jnp.abs(out_f32b - ref)))
    assert jnp.allclose(out_f32b, ref, atol=1e-4, rtol=1e-4), err_b

    # Default path: bf16 activations/weights/output, f32 accumulation.
    # (Residual is read from the bf16-cast resident block; loose tolerance.)
    out_bf16 = jax.block_until_ready(basic_block_forward(x, params))
    out_bf16_f32 = out_bf16.astype(jnp.float32)
    err_bf = float(jnp.max(jnp.abs(out_bf16_f32 - ref)))
    assert jnp.allclose(out_bf16_f32, ref, atol=1e-1, rtol=1e-1), err_bf

    print("KERNEL_OK")
</pallas_src>

<mosaic_0001>
module attributes {stable_mosaic.version = 11 : i64} {
  func.func @basic_block_kernel(%arg0: i32, %arg1: i32, %arg2: memref<1x20x18x128xf32, #tpu.memory_space<vmem>>, %arg3: memref<9x128x128xf32, #tpu.memory_space<vmem>>, %arg4: memref<9x128x128xf32, #tpu.memory_space<vmem>>, %arg5: memref<1x128xf32, #tpu.memory_space<vmem>>, %arg6: memref<1x128xf32, #tpu.memory_space<vmem>>, %arg7: memref<1x8x16x128xf32, #tpu.memory_space<vmem>>, %arg8: memref<10x18x128xf32, #tpu.memory_space<vmem>>) attributes {dimension_semantics = [#tpu.dimension_semantics<parallel>, #tpu.dimension_semantics<parallel>], iteration_bounds = array<i64: 2, 2>, scalar_prefetch = 0 : i64, scratch_operands = 1 : i64, tpu.core_type = #tpu.core_type<tc>, window_params = [{transform_indices = @transform_0, window_bounds = array<i64: 1, 20, 18, 128>}, {pipeline_mode = #tpu.pipeline_mode<synchronous>, transform_indices = @transform_1, window_bounds = array<i64: 9, 128, 128>}, {pipeline_mode = #tpu.pipeline_mode<synchronous>, transform_indices = @transform_2, window_bounds = array<i64: 9, 128, 128>}, {pipeline_mode = #tpu.pipeline_mode<synchronous>, transform_indices = @transform_3, window_bounds = array<i64: 1, 128>}, {pipeline_mode = #tpu.pipeline_mode<synchronous>, transform_indices = @transform_4, window_bounds = array<i64: 1, 128>}, {transform_indices = @transform_5, window_bounds = array<i64: 1, 8, 16, 128>}]} {
    %c8_i32 = arith.constant 8 : i32
    %0 = arith.muli %arg1, %c8_i32 : i32
    %1 = tpu.assume_multiple %0, 8 : i32
    %cst = arith.constant 0.000000e+00 : f32
    %2 = vector.broadcast %cst : f32 to vector<160x128xf32>
    %c0_i32 = arith.constant 0 : i32
    %3 = arith.addi %1, %c0_i32 : i32
    %c0 = arith.constant 0 : index
    %4 = arith.index_cast %3 : i32 to index
    %c0_0 = arith.constant 0 : index
    %c0_1 = arith.constant 0 : index
    %5 = vector.load %arg2[%c0, %4, %c0_0, %c0_1] : memref<1x20x18x128xf32, #tpu.memory_space<vmem>>, vector<1x10x16x128xf32>
    %6 = vector.shape_cast %5 : vector<1x10x16x128xf32> to vector<10x16x128xf32>
    %7 = vector.shape_cast %6 : vector<10x16x128xf32> to vector<160x128xf32>
    %c0_2 = arith.constant 0 : index
    %c0_3 = arith.constant 0 : index
    %c0_4 = arith.constant 0 : index
    %8 = vector.load %arg3[%c0_2, %c0_3, %c0_4] : memref<9x128x128xf32, #tpu.memory_space<vmem>>, vector<1x128x128xf32>
    %9 = vector.shape_cast %8 : vector<1x128x128xf32> to vector<128x128xf32>
    %cst_5 = arith.constant dense<0.000000e+00> : vector<160x128xf32>
    %10 = tpu.matmul %7, %9, %cst_5 {dimension_numbers = #tpu.dot_dimension_numbers<[1], [0], [0], [1], [0, 0, 1, 1], [], []>} : vector<160x128xf32>, vector<128x128xf32>, vector<160x128xf32> -> vector<160x128xf32>
    %11 = arith.addf %2, %10 : vector<160x128xf32>
    %c0_i32_6 = arith.constant 0 : i32
    %12 = arith.addi %1, %c0_i32_6 : i32
    %c0_7 = arith.constant 0 : index
    %13 = arith.index_cast %12 : i32 to index
    %c1 = arith.constant 1 : index
    %c0_8 = arith.constant 0 : index
    %14 = vector.load %arg2[%c0_7, %13, %c1, %c0_8] : memref<1x20x18x128xf32, #tpu.memory_space<vmem>>, vector<1x10x16x128xf32>
    %15 = vector.shape_cast %14 : vector<1x10x16x128xf32> to vector<10x16x128xf32>
    %16 = vector.shape_cast %15 : vector<10x16x128xf32> to vector<160x128xf32>
    %c1_9 = arith.constant 1 : index
    %c0_10 = arith.constant 0 : index
    %c0_11 = arith.constant 0 : index
    %17 = vector.load %arg3[%c1_9, %c0_10, %c0_11] : memref<9x128x128xf32, #tpu.memory_space<vmem>>, vector<1x128x128xf32>
    %18 = vector.shape_cast %17 : vector<1x128x128xf32> to vector<128x128xf32>
    %cst_12 = arith.constant dense<0.000000e+00> : vector<160x128xf32>
    %19 = tpu.matmul %16, %18, %cst_12 {dimension_numbers = #tpu.dot_dimension_numbers<[1], [0], [0], [1], [0, 0, 1, 1], [], []>} : vector<160x128xf32>, vector<128x128xf32>, vector<160x128xf32> -> vector<160x128xf32>
    %20 = arith.addf %11, %19 : vector<160x128xf32>
    %c0_i32_13 = arith.constant 0 : i32
    %21 = arith.addi %1, %c0_i32_13 : i32
    %c0_14 = arith.constant 0 : index
    %22 = arith.index_cast %21 : i32 to index
    %c2 = arith.constant 2 : index
    %c0_15 = arith.constant 0 : index
    %23 = vector.load %arg2[%c0_14, %22, %c2, %c0_15] : memref<1x20x18x128xf32, #tpu.memory_space<vmem>>, vector<1x10x16x128xf32>
    %24 = vector.shape_cast %23 : vector<1x10x16x128xf32> to vector<10x16x128xf32>
    %25 = vector.shape_cast %24 : vector<10x16x128xf32> to vector<160x128xf32>
    %c2_16 = arith.constant 2 : index
    %c0_17 = arith.constant 0 : index
    %c0_18 = arith.constant 0 : index
    %26 = vector.load %arg3[%c2_16, %c0_17, %c0_18] : memref<9x128x128xf32, #tpu.memory_space<vmem>>, vector<1x128x128xf32>
    %27 = vector.shape_cast %26 : vector<1x128x128xf32> to vector<128x128xf32>
    %cst_19 = arith.constant dense<0.000000e+00> : vector<160x128xf32>
    %28 = tpu.matmul %25, %27, %cst_19 {dimension_numbers = #tpu.dot_dimension_numbers<[1], [0], [0], [1], [0, 0, 1, 1], [], []>} : vector<160x128xf32>, vector<128x128xf32>, vector<160x128xf32> -> vector<160x128xf32>
    %29 = arith.addf %20, %28 : vector<160x128xf32>
    %c1_i32 = arith.constant 1 : i32
    %30 = arith.addi %1, %c1_i32 : i32
    %c0_20 = arith.constant 0 : index
    %31 = arith.index_cast %30 : i32 to index
    %c0_21 = arith.constant 0 : index
    %c0_22 = arith.constant 0 : index
    %32 = vector.load %arg2[%c0_20, %31, %c0_21, %c0_22] : memref<1x20x18x128xf32, #tpu.memory_space<vmem>>, vector<1x10x16x128xf32>
    %33 = vector.shape_cast %32 : vector<1x10x16x128xf32> to vector<10x16x128xf32>
    %34 = vector.shape_cast %33 : vector<10x16x128xf32> to vector<160x128xf32>
    %c3 = arith.constant 3 : index
    %c0_23 = arith.constant 0 : index
    %c0_24 = arith.constant 0 : index
    %35 = vector.load %arg3[%c3, %c0_23, %c0_24] : memref<9x128x128xf32, #tpu.memory_space<vmem>>, vector<1x128x128xf32>
    %36 = vector.shape_cast %35 : vector<1x128x128xf32> to vector<128x128xf32>
    %cst_25 = arith.constant dense<0.000000e+00> : vector<160x128xf32>
    %37 = tpu.matmul %34, %36, %cst_25 {dimension_numbers = #tpu.dot_dimension_numbers<[1], [0], [0], [1], [0, 0, 1, 1], [], []>} : vector<160x128xf32>, vector<128x128xf32>, vector<160x128xf32> -> vector<160x128xf32>
    %38 = arith.addf %29, %37 : vector<160x128xf32>
    %c1_i32_26 = arith.constant 1 : i32
    %39 = arith.addi %1, %c1_i32_26 : i32
    %c0_27 = arith.constant 0 : index
    %40 = arith.index_cast %39 : i32 to index
    %c1_28 = arith.constant 1 : index
    %c0_29 = arith.constant 0 : index
    %41 = vector.load %arg2[%c0_27, %40, %c1_28, %c0_29] : memref<1x20x18x128xf32, #tpu.memory_space<vmem>>, vector<1x10x16x128xf32>
    %42 = vector.shape_cast %41 : vector<1x10x16x128xf32> to vector<10x16x128xf32>
    %43 = vector.shape_cast %42 : vector<10x16x128xf32> to vector<160x128xf32>
    %c4 = arith.constant 4 : index
    %c0_30 = arith.constant 0 : index
    %c0_31 = arith.constant 0 : index
    %44 = vector.load %arg3[%c4, %c0_30, %c0_31] : memref<9x128x128xf32, #tpu.memory_space<vmem>>, vector<1x128x128xf32>
    %45 = vector.shape_cast %44 : vector<1x128x128xf32> to vector<128x128xf32>
    %cst_32 = arith.constant dense<0.000000e+00> : vector<160x128xf32>
    %46 = tpu.matmul %43, %45, %cst_32 {dimension_numbers = #tpu.dot_dimension_numbers<[1], [0], [0], [1], [0, 0, 1, 1], [], []>} : vector<160x128xf32>, vector<128x128xf32>, vector<160x128xf32> -> vector<160x128xf32>
    %47 = arith.addf %38, %46 : vector<160x128xf32>
    %c1_i32_33 = arith.constant 1 : i32
    %48 = arith.addi %1, %c1_i32_33 : i32
    %c0_34 = arith.constant 0 : index
    %49 = arith.index_cast %48 : i32 to index
    %c2_35 = arith.constant 2 : index
    %c0_36 = arith.constant 0 : index
    %50 = vector.load %arg2[%c0_34, %49, %c2_35, %c0_36] : memref<1x20x18x128xf32, #tpu.memory_space<vmem>>, vector<1x10x16x128xf32>
    %51 = vector.shape_cast %50 : vector<1x10x16x128xf32> to vector<10x16x128xf32>
    %52 = vector.shape_cast %51 : vector<10x16x128xf32> to vector<160x128xf32>
    %c5 = arith.constant 5 : index
    %c0_37 = arith.constant 0 : index
    %c0_38 = arith.constant 0 : index
    %53 = vector.load %arg3[%c5, %c0_37, %c0_38] : memref<9x128x128xf32, #tpu.memory_space<vmem>>, vector<1x128x128xf32>
    %54 = vector.shape_cast %53 : vector<1x128x128xf32> to vector<128x128xf32>
    %cst_39 = arith.constant dense<0.000000e+00> : vector<160x128xf32>
    %55 = tpu.matmul %52, %54, %cst_39 {dimension_numbers = #tpu.dot_dimension_numbers<[1], [0], [0], [1], [0, 0, 1, 1], [], []>} : vector<160x128xf32>, vector<128x128xf32>, vector<160x128xf32> -> vector<160x128xf32>
    %56 = arith.addf %47, %55 : vector<160x128xf32>
    %c2_i32 = arith.constant 2 : i32
    %57 = arith.addi %1, %c2_i32 : i32
    %c0_40 = arith.constant 0 : index
    %58 = arith.index_cast %57 : i32 to index
    %c0_41 = arith.constant 0 : index
    %c0_42 = arith.constant 0 : index
    %59 = vector.load %arg2[%c0_40, %58, %c0_41, %c0_42] : memref<1x20x18x128xf32, #tpu.memory_space<vmem>>, vector<1x10x16x128xf32>
    %60 = vector.shape_cast %59 : vector<1x10x16x128xf32> to vector<10x16x128xf32>
    %61 = vector.shape_cast %60 : vector<10x16x128xf32> to vector<160x128xf32>
    %c6 = arith.constant 6 : index
    %c0_43 = arith.constant 0 : index
    %c0_44 = arith.constant 0 : index
    %62 = vector.load %arg3[%c6, %c0_43, %c0_44] : memref<9x128x128xf32, #tpu.memory_space<vmem>>, vector<1x128x128xf32>
    %63 = vector.shape_cast %62 : vector<1x128x128xf32> to vector<128x128xf32>
    %cst_45 = arith.constant dense<0.000000e+00> : vector<160x128xf32>
    %64 = tpu.matmul %61, %63, %cst_45 {dimension_numbers = #tpu.dot_dimension_numbers<[1], [0], [0], [1], [0, 0, 1, 1], [], []>} : vector<160x128xf32>, vector<128x128xf32>, vector<160x128xf32> -> vector<160x128xf32>
    %65 = arith.addf %56, %64 : vector<160x128xf32>
    %c2_i32_46 = arith.constant 2 : i32
    %66 = arith.addi %1, %c2_i32_46 : i32
    %c0_47 = arith.constant 0 : index
    %67 = arith.index_cast %66 : i32 to index
    %c1_48 = arith.constant 1 : index
    %c0_49 = arith.constant 0 : index
    %68 = vector.load %arg2[%c0_47, %67, %c1_48, %c0_49] : memref<1x20x18x128xf32, #tpu.memory_space<vmem>>, vector<1x10x16x128xf32>
    %69 = vector.shape_cast %68 : vector<1x10x16x128xf32> to vector<10x16x128xf32>
    %70 = vector.shape_cast %69 : vector<10x16x128xf32> to vector<160x128xf32>
    %c7 = arith.constant 7 : index
    %c0_50 = arith.constant 0 : index
    %c0_51 = arith.constant 0 : index
    %71 = vector.load %arg3[%c7, %c0_50, %c0_51] : memref<9x128x128xf32, #tpu.memory_space<vmem>>, vector<1x128x128xf32>
    %72 = vector.shape_cast %71 : vector<1x128x128xf32> to vector<128x128xf32>
    %cst_52 = arith.constant dense<0.000000e+00> : vector<160x128xf32>
    %73 = tpu.matmul %70, %72, %cst_52 {dimension_numbers = #tpu.dot_dimension_numbers<[1], [0], [0], [1], [0, 0, 1, 1], [], []>} : vector<160x128xf32>, vector<128x128xf32>, vector<160x128xf32> -> vector<160x128xf32>
    %74 = arith.addf %65, %73 : vector<160x128xf32>
    %c2_i32_53 = arith.constant 2 : i32
    %75 = arith.addi %1, %c2_i32_53 : i32
    %c0_54 = arith.constant 0 : index
    %76 = arith.index_cast %75 : i32 to index
    %c2_55 = arith.constant 2 : index
    %c0_56 = arith.constant 0 : index
    %77 = vector.load %arg2[%c0_54, %76, %c2_55, %c0_56] : memref<1x20x18x128xf32, #tpu.memory_space<vmem>>, vector<1x10x16x128xf32>
    %78 = vector.shape_cast %77 : vector<1x10x16x128xf32> to vector<10x16x128xf32>
    %79 = vector.shape_cast %78 : vector<10x16x128xf32> to vector<160x128xf32>
    %c8 = arith.constant 8 : index
    %c0_57 = arith.constant 0 : index
    %c0_58 = arith.constant 0 : index
    %80 = vector.load %arg3[%c8, %c0_57, %c0_58] : memref<9x128x128xf32, #tpu.memory_space<vmem>>, vector<1x128x128xf32>
    %81 = vector.shape_cast %80 : vector<1x128x128xf32> to vector<128x128xf32>
    %cst_59 = arith.constant dense<0.000000e+00> : vector<160x128xf32>
    %82 = tpu.matmul %79, %81, %cst_59 {dimension_numbers = #tpu.dot_dimension_numbers<[1], [0], [0], [1], [0, 0, 1, 1], [], []>} : vector<160x128xf32>, vector<128x128xf32>, vector<160x128xf32> -> vector<160x128xf32>
    %83 = arith.addf %74, %82 : vector<160x128xf32>
    %c0_60 = arith.constant 0 : index
    %c0_61 = arith.constant 0 : index
    %84 = vector.load %arg5[%c0_60, %c0_61] : memref<1x128xf32, #tpu.memory_space<vmem>>, vector<1x128xf32>
    %85 = vector.broadcast %84 : vector<1x128xf32> to vector<160x128xf32>
    %86 = arith.addf %83, %85 : vector<160x128xf32>
    %cst_62 = arith.constant 0.000000e+00 : f32
    %87 = vector.broadcast %cst_62 : f32 to vector<160x128xf32>
    %88 = arith.maximumf %86, %87 : vector<160x128xf32>
    %89 = vector.shape_cast %88 : vector<160x128xf32> to vector<10x16x128xf32>
    %cst_63 = arith.constant 0.000000e+00 : f32
    %90 = vector.broadcast %cst_63 : f32 to vector<10x1x128xf32>
    %91 = tpu.concatenate %90, %89, %90 in 1 : vector<10x1x128xf32>, vector<10x16x128xf32>, vector<10x1x128xf32> -> vector<10x18x128xf32>
    %c0_64 = arith.constant 0 : index
    %c0_65 = arith.constant 0 : index
    %c0_66 = arith.constant 0 : index
    %92 = vector.load %arg8[%c0_64, %c0_65, %c0_66] : memref<10x18x128xf32, #tpu.memory_space<vmem>>, vector<10x18x128xf32>
    tpu.vector_store %arg8[%c0_64, %c0_65, %c0_66], %91 {strides = array<i32>} : memref<10x18x128xf32, #tpu.memory_space<vmem>>, vector<10x18x128xf32>,
    %c0_i32_67 = arith.constant 0 : i32
    %93 = arith.cmpi eq, %arg1, %c0_i32_67 : i32
    %94 = arith.extui %93 : i1 to i32
    %c0_i32_68 = arith.constant 0 : i32
    %95 = arith.cmpi ne, %94, %c0_i32_68 : i32
    scf.if %95 {
      %cst_146 = arith.constant 0.000000e+00 : f32
      %169 = vector.broadcast %cst_146 : f32 to vector<1x18x128xf32>
      %c0_147 = arith.constant 0 : index
      %c0_148 = arith.constant 0 : index
      %c0_149 = arith.constant 0 : index
      %170 = vector.load %arg8[%c0_147, %c0_148, %c0_149] : memref<10x18x128xf32, #tpu.memory_space<vmem>>, vector<1x18x128xf32>
      tpu.vector_store %arg8[%c0_147, %c0_148, %c0_149], %169 {strides = array<i32>} : memref<10x18x128xf32, #tpu.memory_space<vmem>>, vector<1x18x128xf32>,
    } else {
    }
    %c1_i32_69 = arith.constant 1 : i32
    %96 = arith.cmpi eq, %arg1, %c1_i32_69 : i32
    %97 = arith.extui %96 : i1 to i32
    %c0_i32_70 = arith.constant 0 : i32
    %98 = arith.cmpi ne, %97, %c0_i32_70 : i32
    scf.if %98 {
      %cst_146 = arith.constant 0.000000e+00 : f32
      %169 = vector.broadcast %cst_146 : f32 to vector<1x18x128xf32>
      %c9 = arith.constant 9 : index
      %c0_147 = arith.constant 0 : index
      %c0_148 = arith.constant 0 : index
      %170 = vector.load %arg8[%c9, %c0_147, %c0_148] : memref<10x18x128xf32, #tpu.memory_space<vmem>>, vector<1x18x128xf32>
      tpu.vector_store %arg8[%c9, %c0_147, %c0_148], %169 {strides = array<i32>} : memref<10x18x128xf32, #tpu.memory_space<vmem>>, vector<1x18x128xf32>,
    } else {
    }
    %cst_71 = arith.constant 0.000000e+00 : f32
    %99 = vector.broadcast %cst_71 : f32 to vector<128x128xf32>
    %c0_72 = arith.constant 0 : index
    %c0_73 = arith.constant 0 : index
    %c0_74 = arith.constant 0 : index
    %100 = vector.load %arg8[%c0_72, %c0_73, %c0_74] : memref<10x18x128xf32, #tpu.memory_space<vmem>>, vector<8x16x128xf32>
    %101 = vector.shape_cast %100 : vector<8x16x128xf32> to vector<128x128xf32>
    %c0_75 = arith.constant 0 : index
    %c0_76 = arith.constant 0 : index
    %c0_77 = arith.constant 0 : index
    %102 = vector.load %arg4[%c0_75, %c0_76, %c0_77] : memref<9x128x128xf32, #tpu.memory_space<vmem>>, vector<1x128x128xf32>
    %103 = vector.shape_cast %102 : vector<1x128x128xf32> to vector<128x128xf32>
    %cst_78 = arith.constant dense<0.000000e+00> : vector<128x128xf32>
    %104 = tpu.matmul %101, %103, %cst_78 {dimension_numbers = #tpu.dot_dimension_numbers<[1], [0], [0], [1], [0, 0, 1, 1], [], []>} : vector<128x128xf32>, vector<128x128xf32>, vector<128x128xf32> -> vector<128x128xf32>
    %105 = arith.addf %99, %104 : vector<128x128xf32>
    %c0_79 = arith.constant 0 : index
    %c1_80 = arith.constant 1 : index
    %c0_81 = arith.constant 0 : index
    %106 = vector.load %arg8[%c0_79, %c1_80, %c0_81] : memref<10x18x128xf32, #tpu.memory_space<vmem>>, vector<8x16x128xf32>
    %107 = vector.shape_cast %106 : vector<8x16x128xf32> to vector<128x128xf32>
    %c1_82 = arith.constant 1 : index
    %c0_83 = arith.constant 0 : index
    %c0_84 = arith.constant 0 : index
    %108 = vector.load %arg4[%c1_82, %c0_83, %c0_84] : memref<9x128x128xf32, #tpu.memory_space<vmem>>, vector<1x128x128xf32>
    %109 = vector.shape_cast %108 : vector<1x128x128xf32> to vector<128x128xf32>
    %cst_85 = arith.constant dense<0.000000e+00> : vector<128x128xf32>
    %110 = tpu.matmul %107, %109, %cst_85 {dimension_numbers = #tpu.dot_dimension_numbers<[1], [0], [0], [1], [0, 0, 1, 1], [], []>} : vector<128x128xf32>, vector<128x128xf32>, vector<128x128xf32> -> vector<128x128xf32>
    %111 = arith.addf %105, %110 : vector<128x128xf32>
    %c0_86 = arith.constant 0 : index
    %c2_87 = arith.constant 2 : index
    %c0_88 = arith.constant 0 : index
    %112 = vector.load %arg8[%c0_86, %c2_87, %c0_88] : memref<10x18x128xf32, #tpu.memory_space<vmem>>, vector<8x16x128xf32>
    %113 = vector.shape_cast %112 : vector<8x16x128xf32> to vector<128x128xf32>
    %c2_89 = arith.constant 2 : index
    %c0_90 = arith.constant 0 : index
    %c0_91 = arith.constant 0 : index
    %114 = vector.load %arg4[%c2_89, %c0_90, %c0_91] : memref<9x128x128xf32, #tpu.memory_space<vmem>>, vector<1x128x128xf32>
    %115 = vector.shape_cast %114 : vector<1x128x128xf32> to vector<128x128xf32>
    %cst_92 = arith.constant dense<0.000000e+00> : vector<128x128xf32>
    %116 = tpu.matmul %113, %115, %cst_92 {dimension_numbers = #tpu.dot_dimension_numbers<[1], [0], [0], [1], [0, 0, 1, 1], [], []>} : vector<128x128xf32>, vector<128x128xf32>, vector<128x128xf32> -> vector<128x128xf32>
    %117 = arith.addf %111, %116 : vector<128x128xf32>
    %c1_93 = arith.constant 1 : index
    %c0_94 = arith.constant 0 : index
    %c0_95 = arith.constant 0 : index
    %118 = vector.load %arg8[%c1_93, %c0_94, %c0_95] : memref<10x18x128xf32, #tpu.memory_space<vmem>>, vector<8x16x128xf32>
    %119 = vector.shape_cast %118 : vector<8x16x128xf32> to vector<128x128xf32>
    %c3_96 = arith.constant 3 : index
    %c0_97 = arith.constant 0 : index
    %c0_98 = arith.constant 0 : index
    %120 = vector.load %arg4[%c3_96, %c0_97, %c0_98] : memref<9x128x128xf32, #tpu.memory_space<vmem>>, vector<1x128x128xf32>
    %121 = vector.shape_cast %120 : vector<1x128x128xf32> to vector<128x128xf32>
    %cst_99 = arith.constant dense<0.000000e+00> : vector<128x128xf32>
    %122 = tpu.matmul %119, %121, %cst_99 {dimension_numbers = #tpu.dot_dimension_numbers<[1], [0], [0], [1], [0, 0, 1, 1], [], []>} : vector<128x128xf32>, vector<128x128xf32>, vector<128x128xf32> -> vector<128x128xf32>
    %123 = arith.addf %117, %122 : vector<128x128xf32>
    %c1_100 = arith.constant 1 : index
    %c1_101 = arith.constant 1 : index
    %c0_102 = arith.constant 0 : index
    %124 = vector.load %arg8[%c1_100, %c1_101, %c0_102] : memref<10x18x128xf32, #tpu.memory_space<vmem>>, vector<8x16x128xf32>
    %125 = vector.shape_cast %124 : vector<8x16x128xf32> to vector<128x128xf32>
    %c4_103 = arith.constant 4 : index
    %c0_104 = arith.constant 0 : index
    %c0_105 = arith.constant 0 : index
    %126 = vector.load %arg4[%c4_103, %c0_104, %c0_105] : memref<9x128x128xf32, #tpu.memory_space<vmem>>, vector<1x128x128xf32>
    %127 = vector.shape_cast %126 : vector<1x128x128xf32> to vector<128x128xf32>
    %cst_106 = arith.constant dense<0.000000e+00> : vector<128x128xf32>
    %128 = tpu.matmul %125, %127, %cst_106 {dimension_numbers = #tpu.dot_dimension_numbers<[1], [0], [0], [1], [0, 0, 1, 1], [], []>} : vector<128x128xf32>, vector<128x128xf32>, vector<128x128xf32> -> vector<128x128xf32>
    %129 = arith.addf %123, %128 : vector<128x128xf32>
    %c1_107 = arith.constant 1 : index
    %c2_108 = arith.constant 2 : index
    %c0_109 = arith.constant 0 : index
    %130 = vector.load %arg8[%c1_107, %c2_108, %c0_109] : memref<10x18x128xf32, #tpu.memory_space<vmem>>, vector<8x16x128xf32>
    %131 = vector.shape_cast %130 : vector<8x16x128xf32> to vector<128x128xf32>
    %c5_110 = arith.constant 5 : index
    %c0_111 = arith.constant 0 : index
    %c0_112 = arith.constant 0 : index
    %132 = vector.load %arg4[%c5_110, %c0_111, %c0_112] : memref<9x128x128xf32, #tpu.memory_space<vmem>>, vector<1x128x128xf32>
    %133 = vector.shape_cast %132 : vector<1x128x128xf32> to vector<128x128xf32>
    %cst_113 = arith.constant dense<0.000000e+00> : vector<128x128xf32>
    %134 = tpu.matmul %131, %133, %cst_113 {dimension_numbers = #tpu.dot_dimension_numbers<[1], [0], [0], [1], [0, 0, 1, 1], [], []>} : vector<128x128xf32>, vector<128x128xf32>, vector<128x128xf32> -> vector<128x128xf32>
    %135 = arith.addf %129, %134 : vector<128x128xf32>
    %c2_114 = arith.constant 2 : index
    %c0_115 = arith.constant 0 : index
    %c0_116 = arith.constant 0 : index
    %136 = vector.load %arg8[%c2_114, %c0_115, %c0_116] : memref<10x18x128xf32, #tpu.memory_space<vmem>>, vector<8x16x128xf32>
    %137 = vector.shape_cast %136 : vector<8x16x128xf32> to vector<128x128xf32>
    %c6_117 = arith.constant 6 : index
    %c0_118 = arith.constant 0 : index
    %c0_119 = arith.constant 0 : index
    %138 = vector.load %arg4[%c6_117, %c0_118, %c0_119] : memref<9x128x128xf32, #tpu.memory_space<vmem>>, vector<1x128x128xf32>
    %139 = vector.shape_cast %138 : vector<1x128x128xf32> to vector<128x128xf32>
    %cst_120 = arith.constant dense<0.000000e+00> : vector<128x128xf32>
    %140 = tpu.matmul %137, %139, %cst_120 {dimension_numbers = #tpu.dot_dimension_numbers<[1], [0], [0], [1], [0, 0, 1, 1], [], []>} : vector<128x128xf32>, vector<128x128xf32>, vector<128x128xf32> -> vector<128x128xf32>
    %141 = arith.addf %135, %140 : vector<128x128xf32>
    %c2_121 = arith.constant 2 : index
    %c1_122 = arith.constant 1 : index
    %c0_123 = arith.constant 0 : index
    %142 = vector.load %arg8[%c2_121, %c1_122, %c0_123] : memref<10x18x128xf32, #tpu.memory_space<vmem>>, vector<8x16x128xf32>
    %143 = vector.shape_cast %142 : vector<8x16x128xf32> to vector<128x128xf32>
    %c7_124 = arith.constant 7 : index
    %c0_125 = arith.constant 0 : index
    %c0_126 = arith.constant 0 : index
    %144 = vector.load %arg4[%c7_124, %c0_125, %c0_126] : memref<9x128x128xf32, #tpu.memory_space<vmem>>, vector<1x128x128xf32>
    %145 = vector.shape_cast %144 : vector<1x128x128xf32> to vector<128x128xf32>
    %cst_127 = arith.constant dense<0.000000e+00> : vector<128x128xf32>
    %146 = tpu.matmul %143, %145, %cst_127 {dimension_numbers = #tpu.dot_dimension_numbers<[1], [0], [0], [1], [0, 0, 1, 1], [], []>} : vector<128x128xf32>, vector<128x128xf32>, vector<128x128xf32> -> vector<128x128xf32>
    %147 = arith.addf %141, %146 : vector<128x128xf32>
    %c2_128 = arith.constant 2 : index
    %c2_129 = arith.constant 2 : index
    %c0_130 = arith.constant 0 : index
    %148 = vector.load %arg8[%c2_128, %c2_129, %c0_130] : memref<10x18x128xf32, #tpu.memory_space<vmem>>, vector<8x16x128xf32>
    %149 = vector.shape_cast %148 : vector<8x16x128xf32> to vector<128x128xf32>
    %c8_131 = arith.constant 8 : index
    %c0_132 = arith.constant 0 : index
    %c0_133 = arith.constant 0 : index
    %150 = vector.load %arg4[%c8_131, %c0_132, %c0_133] : memref<9x128x128xf32, #tpu.memory_space<vmem>>, vector<1x128x128xf32>
    %151 = vector.shape_cast %150 : vector<1x128x128xf32> to vector<128x128xf32>
    %cst_134 = arith.constant dense<0.000000e+00> : vector<128x128xf32>
    %152 = tpu.matmul %149, %151, %cst_134 {dimension_numbers = #tpu.dot_dimension_numbers<[1], [0], [0], [1], [0, 0, 1, 1], [], []>} : vector<128x128xf32>, vector<128x128xf32>, vector<128x128xf32> -> vector<128x128xf32>
    %153 = arith.addf %147, %152 : vector<128x128xf32>
    %c2_i32_135 = arith.constant 2 : i32
    %154 = arith.addi %1, %c2_i32_135 : i32
    %c0_136 = arith.constant 0 : index
    %155 = arith.index_cast %154 : i32 to index
    %c1_137 = arith.constant 1 : index
    %c0_138 = arith.constant 0 : index
    %156 = vector.load %arg2[%c0_136, %155, %c1_137, %c0_138] : memref<1x20x18x128xf32, #tpu.memory_space<vmem>>, vector<1x8x16x128xf32>
    %157 = vector.shape_cast %156 : vector<1x8x16x128xf32> to vector<8x16x128xf32>
    %c0_139 = arith.constant 0 : index
    %c0_140 = arith.constant 0 : index
    %158 = vector.load %arg6[%c0_139, %c0_140] : memref<1x128xf32, #tpu.memory_space<vmem>>, vector<1x128xf32>
    %159 = vector.broadcast %158 : vector<1x128xf32> to vector<128x128xf32>
    %160 = arith.addf %153, %159 : vector<128x128xf32>
    %161 = vector.shape_cast %157 : vector<8x16x128xf32> to vector<128x128xf32>
    %162 = arith.addf %160, %161 : vector<128x128xf32>
    %cst_141 = arith.constant 0.000000e+00 : f32
    %163 = vector.broadcast %cst_141 : f32 to vector<128x128xf32>
    %164 = arith.maximumf %162, %163 : vector<128x128xf32>
    %165 = vector.shape_cast %164 : vector<128x128xf32> to vector<8x16x128xf32>
    %c0_142 = arith.constant 0 : index
    %c0_143 = arith.constant 0 : index
    %c0_144 = arith.constant 0 : index
    %c0_145 = arith.constant 0 : index
    %166 = vector.load %arg7[%c0_142, %c0_143, %c0_144, %c0_145] : memref<1x8x16x128xf32, #tpu.memory_space<vmem>>, vector<1x8x16x128xf32>
    %167 = vector.shape_cast %166 : vector<1x8x16x128xf32> to vector<8x16x128xf32>
    %168 = vector.shape_cast %165 : vector<8x16x128xf32> to vector<1x8x16x128xf32>
    tpu.vector_store %arg7[%c0_142, %c0_143, %c0_144, %c0_145], %168 {strides = array<i32>} : memref<1x8x16x128xf32, #tpu.memory_space<vmem>>, vector<1x8x16x128xf32>,
    return
  }
  func.func @transform_0(%arg0: i32, %arg1: i32) -> (i32, i32, i32, i32) {
    %c0_i32 = arith.constant 0 : i32
    %c0_i32_0 = arith.constant 0 : i32
    %c0_i32_1 = arith.constant 0 : i32
    %c0_i32_2 = arith.constant 0 : i32
    return %arg0, %c0_i32, %c0_i32_0, %c0_i32_1 : i32, i32, i32, i32
  }
  func.func @transform_1(%arg0: i32, %arg1: i32) -> (i32, i32, i32) {
    %c0_i32 = arith.constant 0 : i32
    %c0_i32_0 = arith.constant 0 : i32
    %c0_i32_1 = arith.constant 0 : i32
    %c0_i32_2 = arith.constant 0 : i32
    return %c0_i32, %c0_i32_0, %c0_i32_1 : i32, i32, i32
  }
  func.func @transform_2(%arg0: i32, %arg1: i32) -> (i32, i32, i32) {
    %c0_i32 = arith.constant 0 : i32
    %c0_i32_0 = arith.constant 0 : i32
    %c0_i32_1 = arith.constant 0 : i32
    %c0_i32_2 = arith.constant 0 : i32
    return %c0_i32, %c0_i32_0, %c0_i32_1 : i32, i32, i32
  }
  func.func @transform_3(%arg0: i32, %arg1: i32) -> (i32, i32) {
    %c0_i32 = arith.constant 0 : i32
    %c0_i32_0 = arith.constant 0 : i32
    %c0_i32_1 = arith.constant 0 : i32
    return %c0_i32, %c0_i32_0 : i32, i32
  }
  func.func @transform_4(%arg0: i32, %arg1: i32) -> (i32, i32) {
    %c0_i32 = arith.constant 0 : i32
    %c0_i32_0 = arith.constant 0 : i32
    %c0_i32_1 = arith.constant 0 : i32
    return %c0_i32, %c0_i32_0 : i32, i32
  }
  func.func @transform_5(%arg0: i32, %arg1: i32) -> (i32, i32, i32, i32) {
    %c0_i32 = arith.constant 0 : i32
    %c0_i32_0 = arith.constant 0 : i32
    %c0_i32_1 = arith.constant 0 : i32
    return %arg0, %arg1, %c0_i32, %c0_i32_0 : i32, i32, i32, i32
  }
}

</mosaic_0001>

<bundles_post_ra>
// kernel: tpu_custom_call.1
= control target key start
LH: loop header
LB: loop body
LE: loop exit
PB: predicated region body
PF: predicated region fallthrough
CT: control target
= control target key end

     0   :  { %s8826_s0 = inlined_call_operand.vmem [shape: f32[2,20,18,128], index: 0, kind: input, shape index: {}]   ;;  %s8827_s1 = inlined_call_operand.vmem [shape: f32[9,128,128], index: 1, kind: input, shape index: {}]   ;;  %s8828_s2 = inlined_call_operand.hbm [shape: f32[9,128,128], index: 2, kind: input, shape index: {}]   ;;  %s8829_s3 = inlined_call_operand.vmem [shape: f32[1,128], index: 3, kind: input, shape index: {}]   ;;  %s8830_s4 = inlined_call_operand.vmem [shape: f32[1,128], index: 4, kind: input, shape index: {}]   ;;  %s8831_s5 = inlined_call_operand.hbm [shape: f32[2,16,16,128], index: 5, kind: output, shape index: {}]  }
   0x1   :  { %8847 = sst [smem:[#allocation15_spill]] %s8828_s2 }
   0x2   :  { %10 = vsyncpa [#allocation4], 0 }
   0x3   :  { %11 = vsyncpa [#allocation5], 0 }
   0x4   :  { %13 = vsyncpa [#allocation5 + $0x1], 0  ;;  %s7429_s18 = smov 0   ;;  %s7431_s19 = smov 0  }
   0x5   :  { %s7433_s20 = smov 0   ;;  %s7435_s21 = smov 0  }
   0x6   :  { %s7437_s22 = smov 0   ;;  %s7439_s23 = smov 0  }
   0x7   :  { %s7441_s24 = smov 0   ;;  %s7443_s25 = smov 0  }
   0x8 LB: > { %s4329_s26 = sadd.s32 4294967295, %s7389_s25   ;;  %s4330_s27 = sadd.s32 4294967294, %s7389_s25   ;;  %s7389_s25 = sphi %s7443_s25, %s19_s25   ;;  %s7385_s24 = sphi %s7441_s24, %s8877_s24   ;;  %s7381_s23 = sphi %s7439_s23, %s8876_s23   ;;  %s7377_s22 = sphi %s7437_s22, %s8875_s22   ;;  %s7373_s21 = sphi %s7435_s21, %s8874_s21   ;;  %s7369_s20 = sphi %s7433_s20, %s8873_s20   ;;  %s7365_s19 = sphi %s7431_s19, %s8872_s19   ;;  %s7361_s18 = sphi %s7429_s18, %s8871_s18  }
   0x9   : > { %s28_s28 = sadd.s32 1, %s7381_s23  ;;  %s31_s29 = sadd.s32 1, %s7385_s24 }
   0xa   : > { %p29_p0 = scmp.ge.s32.totalorder %s28_s28, 2  ;;  %s150_s30 = sadd.s32 1, %s7369_s20 }
   0xb   : > { %p160_p1 = scmp.ne.s32.totalorder %s7369_s20, %s7365_s19  ;;  %p161_p2 = scmp.eq.s32.totalorder %s4329_s26, 3 }
   0xc   : > { %s8879_s28 = smov (%p29_p0, %s28_s28), 0  ;;  %s8881_s29 = smov (!%p29_p0, %s31_s29), %s7385_s24 }
   0xd   : > { %8848 = sst [smem:[#allocation9_spill]] %s8879_s28  ;;  %s146_s6 = ssub.s32 %s7381_s23, %s8879_s28 }
   0xe   : > { %p7481_p3 = por %p161_p2, %p160_p1  ;;  %p33_p4 = scmp.ge.s32.totalorder %s8881_s29, 2 }
   0xf   : > { %p166_p5 = scmp.ne.s32.totalorder %s7365_s19, %s7361_s18  ;;  %p167_p6 = scmp.eq.s32.totalorder %s4330_s27, 3 }
  0x10   : > { %s8849_s7 = scalar_select %p7481_p3, 1, 0 }
  0x11   : > { %p4331_p7 = scmp.ge.s32.totalorder %s7389_s25, 1  ;;  %s8883_s29 = smov (%p33_p4, %s8881_s29), 0 }
  0x12   : > { %8850 = sst [smem:[#allocation10_spill]] %s8883_s29  ;;  %p7490_p8 = por %p167_p6, %p166_p5 }
  0x13   : > { %p174_p9 = scmp.lt.s32.totalorder %s7389_s25, 5  ;;  %s145_s9 = ssub.s32 %s7385_s24, %s8883_s29 }
  0x14   : > { %s8851_s8 = scalar_select %p7490_p8, 1, 0 }
  0x15   : > { %s147_s10 = sor.u32 %s146_s6, %s145_s9  ;;  %p7497_p10 = pnand %p4331_p7, %p174_p9 }
  0x16   : > { %p148_p11 = scmp.eq.s32.totalorder %s147_s10, 0  ;;  %p7501_p12 = scmp.eq.s32.totalorder %s4329_s26, 0 }
  0x17   : > { %s8852_s11 = scalar_select %p7497_p10, 1, 0 }
  0x18   : > { %s8853_s12 = scalar_select %p7501_p12, 1, 0 }
  0x19   : > { %p7181_p13 = pneg %p7497_p10  ;;  %s7391_s14 = smov [#allocation3]  }
  0x1a   : > { %s7508_s13 = scalar_select %p148_p11, %s7369_s20, %s150_s30  }
  0x1b   : > { %s189_s15 = sshll.u32 %s7391_s14, 4  ;;  %p7512_p0 = pnand %p7501_p12, %p7181_p13  ;;  %s190_s15 = int_to_ptr.vmem [resolvable:$true] %s189_s15 }
  0x1c   : > { %s8855_s2 = sld [smem:[#allocation15_spill]] }
  0x1d   : > { %p7265_p2 = pneg %p7512_p0 }
  0x22   : > { %s7263_s26 = scalar_lea.hbm %s8855_s2, 18432 }
  0x23   : > { %p7264_p1 = scmp.ne.s32.totalorder %s8855_s2, %s7263_s26  ;;  %p7270_p6 = scmp.lt.u32.totalorder %s7263_s26, %s8855_s2 }
  0x25   : > { %p7266_p4 = pnand %p7265_p2, %p7264_p1 }
  0x27   : > { %p7267_p5 = pneg %p7266_p4 }
  0x29   : > { %p7272_p7 = pnand %p7270_p6, %p7267_p5 }
  0x2b   : > { %7275 = shalt.err (!%p7272_p7)
}
  0x2c   : > { %s7276_s14 = scalar_lea.vmem %s190_s15, 18432  ;;  %p7284_p8 = scmp.lt.s32.totalorder %s190_s15, %s190_s15 }
  0x2d   : > { %p7277_p9 = scmp.ne.s32.totalorder %s190_s15, %s7276_s14  ;;  %p7285_p3 = scmp.lt.s32.totalorder %s7276_s14, %s7276_s14 }
  0x2f   : > { %p7279_p11 = pnand %p7277_p9, %p7265_p2  ;;  %p7286_p12 = por %p7285_p3, %p7284_p8 }
  0x31   : > { %p7280_p13 = pneg %p7279_p11 }
  0x33   : > { %p7287_p10 = pnand %p7286_p12, %p7280_p13 }
  0x35   : > { %7290 = shalt.err (!%p7287_p10)
}
  0x36   : > { %s7392_s17 = smov 128   ;;  %s7393_s27 = smov 8  }
  0x37   : > { %7184 = dma.hbm_to_vmem [thread:$0]  (!%p7512_p0), %s8855_s2, 18432, %s190_s15, [#allocation4], %s7392_s17, %s7392_s17, %s7393_s27  }
  0x38   : > { %p8856_p1 = scmp.ne.s32.totalorder %s8852_s11, 0 }
  0x3a   : > { %219 = sbr.rel (%p8856_p1) target bundleno = 1208 (0x4b8), region = 40 }
  0x41   : > { %p8857_p4 = scmp.ne.s32.totalorder %s8853_s12, 0 }
  0x43   : > { %7352 = dma.done.wait (%p8857_p4), [#allocation4], 18432  }
  0x44   : > { %7354 = vsyncadd (%p8857_p4), [#allocation4], 4294948864  ;;  %s8836_s26 = sand.u32 1, %s7365_s19   ;;  %p247_p3 = scmp.lt.s32.totalorder %s7377_s22, 1  ;;  %v4340_v0 = vld [vmem:[%s8827_s1 + $0x80] sm:$0xff]  ;;  %v4341_v1 = vld [vmem:[%s8827_s1 + $0x88] sm:$0xff] }
  0x45   : > { %s7542_s16 = sshll.u32 %s8836_s26, 7  ;;  %s4339_s30 = smul.u32 192, %s7373_s21  ;;  %v4342_v2 = vld [vmem:[%s8827_s1 + $0x90] sm:$0xff]  ;;  %v6294_v3 = vpack.c.bf16 %v4341_v1, %v4340_v0  ;;  %v4343_v4 = vld [vmem:[%s8827_s1 + $0x98] sm:$0xff]  ;;  %v4344_v6 = vld [vmem:[%s8827_s1 + $0xa0] sm:$0xff]  ;;  %vm2286_vm0 = vcmask 1040384  }
  0x46   : > { %s248_s15 = scalar_select %p247_p3, %s7377_s22, 1  ;;  %v6298_v5 = vpack.c.bf16 %v4343_v4, %v4342_v2  ;;  %v4345_v7 = vld [vmem:[%s8827_s1 + $0xa8] sm:$0xff]  ;;  %v4346_v10 = vld [vmem:[%s8827_s1 + $0xb0] sm:$0xff]  ;;  %v4347_v11 = vld [vmem:[%s8827_s1 + $0xb8] sm:$0xff] }
  0x47   : > { %6295 = vmatprep.subr.bf16.mxu0 %v6294_v3  ;;  %v6302_v8 = vpack.c.bf16 %v4345_v7, %v4344_v6  ;;  %v6306_v12 = vpack.c.bf16 %v4347_v11, %v4346_v10  ;;  %v4348_v13 = vld [vmem:[%s8827_s1 + $0xc0] sm:$0xff]  ;;  %v4349_v14 = vld [vmem:[%s8827_s1 + $0xc8] sm:$0xff]  ;;  %v4350_v16 = vld [vmem:[%s8827_s1 + $0xd0] sm:$0xff]  ;;  %p4593_p8 = scmp.ne.s32.totalorder %s7373_s21, 0 }
  0x48   : > { %s7174_s11 = smul.u32 480, %s248_s15  ;;  %6297 = vmatpush3.bf16.msra.mxu0 %v6294_v3  ;;  %v6310_v15 = vpack.c.bf16 %v4349_v14, %v4348_v13  ;;  %v4351_v17 = vld [vmem:[%s8827_s1 + $0xd8] sm:$0xff]  ;;  %v4352_v19 = vld [vmem:[%s8827_s1 + $0xe0] sm:$0xff]  ;;  %v4353_v20 = vld [vmem:[%s8827_s1 + $0xe8] sm:$0xff] }
  0x49   : > { %6299 = vmatprep.subr.bf16.mxu0 %v6298_v5  ;;  %v6314_v18 = vpack.c.bf16 %v4351_v17, %v4350_v16  ;;  %v6318_v21 = vpack.c.bf16 %v4353_v20, %v4352_v19  ;;  %v4354_v22 = vld [vmem:[%s8827_s1 + $0xf0] sm:$0xff]  ;;  %v4355_v23 = vld [vmem:[%s8827_s1 + $0xf8] sm:$0xff]  ;;  %v276_v25 = vld [vmem:[%s8827_s1] sm:$0xff] }
  0x4a   : > { %s251_s26 = scalar_lea.vmem %s8826_s0, %s7174_s11  ;;  %v6322_v24 = vpack.c.bf16 %v4355_v23, %v4354_v22  ;;  %v277_v26 = vld [vmem:[%s8827_s1 + $0x8] sm:$0xff]  ;;  %v278_v28 = vld [vmem:[%s8827_s1 + $0x10] sm:$0xff]  ;;  %v279_v29 = vld [vmem:[%s8827_s1 + $0x18] sm:$0xff] }
  0x4b   : > { %s7567_s12 = scalar_lea.vmem %s251_s26, %s4339_s30  ;;  %v6326_v27 = vpack.c.bf16 %v277_v26, %v276_v25  ;;  %v6330_v32 = vpack.c.bf16 %v279_v29, %v278_v28  ;;  %v280_v34 = vld [vmem:[%s8827_s1 + $0x20] sm:$0xff]  ;;  %v281_v35 = vld [vmem:[%s8827_s1 + $0x28] sm:$0xff]  ;;  %v282_v39 = vld [vmem:[%s8827_s1 + $0x30] sm:$0xff]  ;;  %s8477_s30 = scalar_lea.vmem [#allocation6], %s7542_s16 }
  0x4c   : > { %v292_v9 = vld [vmem:[%s7567_s12 + $0x1] sm:$0xff]  ;;  %6301 = vmatpush3.bf16.msra.mxu0 %v6298_v5  ;;  %v293_v30 = vld [vmem:[%s7567_s12 + $0x9] sm:$0xff]  ;;  %v7614_v31 = vld [vmem:[%s7567_s12 + $0x19] sm:$0xff]  ;;  %v6334_v38 = vpack.c.bf16 %v281_v35, %v280_v34 }
  0x4d   : > { %5264 = vmatprep.mubr.f32.mxu0 %v292_v9  ;;  %6303 = vmatprep.subr.bf16.mxu0 %v6302_v8  ;;  %v7617_v33 = vld [vmem:[%s7567_s12 + $0x4a] sm:$0xff]  ;;  %v7628_v36 = vld [vmem:[%s7567_s12 + $0x21] sm:$0xff]  ;;  %v283_v40 = vld [vmem:[%s8827_s1 + $0x38] sm:$0xff] }
  0x4e   : > { %5763 = vmatprep.mubr.f32.mxu1 %v7617_v33  ;;  %v7631_v37 = vld [vmem:[%s7567_s12 + $0x31] sm:$0xff]  ;;  %v7642_v41 = vld [vmem:[%s7567_s12 + $0x39] sm:$0xff]  ;;  %v7645_v42 = vld [vmem:[%s7567_s12 + $0x49] sm:$0xff]  ;;  %v6338_v43 = vpack.c.bf16 %v283_v40, %v282_v39 }
  0x4f   : > { %v284_v44 = vld [vmem:[%s8827_s1 + $0x40] sm:$0xff]  ;;  %v285_v45 = vld [vmem:[%s8827_s1 + $0x48] sm:$0xff]  ;;  %v7656_v46 = vld [vmem:[%s7567_s12 + $0x51] sm:$0xff] }
  0x50   : > { %6305 = vmatpush3.bf16.msra.mxu0 %v6302_v8  ;;  %v7659_v47 = vld [vmem:[%s7567_s12 + $0x61] sm:$0xff]  ;;  %v6342_v48 = vpack.c.bf16 %v285_v45, %v284_v44  ;;  %v286_v49 = vld [vmem:[%s8827_s1 + $0x50] sm:$0xff]  ;;  %v287_v50 = vld [vmem:[%s8827_s1 + $0x58] sm:$0xff] }
  0x51   : > { %6307 = vmatprep.subr.bf16.mxu0 %v6306_v12  ;;  %v7670_v51 = vld [vmem:[%s7567_s12 + $0x69] sm:$0xff]  ;;  %v7673_v52 = vld [vmem:[%s7567_s12 + $0x79] sm:$0xff]  ;;  %v6346_v53 = vpack.c.bf16 %v287_v50, %v286_v49  ;;  %v7684_v56 = vld [vmem:[%s7567_s12 + $0x81] sm:$0xff] }
  0x52   : > { %v288_v54 = vld [vmem:[%s8827_s1 + $0x60] sm:$0xff]  ;;  %v289_v55 = vld [vmem:[%s8827_s1 + $0x68] sm:$0xff]  ;;  %v7687_v57 = vld [vmem:[%s7567_s12 + $0x91] sm:$0xff] }
  0x53   : > { %v6350_v58 = vpack.c.bf16 %v289_v55, %v288_v54  ;;  %v290_v59 = vld [vmem:[%s8827_s1 + $0x70] sm:$0xff]  ;;  %v291_v60 = vld [vmem:[%s8827_s1 + $0x78] sm:$0xff]  ;;  %v4356_v0 = vld [vmem:[%s8827_s1 + $0x100] sm:$0xff] }
  0x54   : > { %6309 = vmatpush3.bf16.msra.mxu0 %v6306_v12  ;;  %v7698_v61 = vld [vmem:[%s7567_s12 + $0x99] sm:$0xff]  ;;  %v7701_v62 = vld [vmem:[%s7567_s12 + $0xa9] sm:$0xff]  ;;  %v6354_v63 = vpack.c.bf16 %v291_v60, %v290_v59  ;;  %v7712_v2 = vld [vmem:[%s7567_s12 + $0xb1] sm:$0xff] }
  0x55   : > { %6311 = vmatprep.subr.bf16.mxu0 %v6310_v15  ;;  %v4357_v1 = vld [vmem:[%s8827_s1 + $0x108] sm:$0xff]  ;;  %v7723_v6 = vld [vmem:[%s7567_s12 + $0xd9] sm:$0xff]  ;;  %v4358_v9 = vld [vmem:[%s8827_s1 + $0x110] sm:$0xff] }
  0x56   : > { %v7715_v3 = vld [vmem:[%s7567_s12 + $0xc1] sm:$0xff]  ;;  %v6358_v4 = vpack.c.bf16 %v4357_v1, %v4356_v0  ;;  %v7720_v5 = vld [vmem:[%s7567_s12 + $0xc9] sm:$0xff]  ;;  %v4359_v10 = vld [vmem:[%s8827_s1 + $0x118] sm:$0xff] }
  0x57   : > { %v7728_v7 = vld [vmem:[%s7567_s12 + $0xe1] sm:$0xff]  ;;  %v7740_v12 = vld [vmem:[%s7567_s12 + $0x18] sm:$0xff]  ;;  %v6362_v13 = vpack.c.bf16 %v4359_v10, %v4358_v9  ;;  %v7753_v17 = vld [vmem:[%s7567_s12 + $0x30] sm:$0xff] }
  0x58   : > { %6313 = vmatpush3.bf16.msra.mxu0 %v6310_v15  ;;  %v256_v8 = vld [vmem:[%s7567_s12] sm:$0xff]  ;;  %v257_v11 = vld [vmem:[%s7567_s12 + $0x8] sm:$0xff]  ;;  %v4362_v19 = vld [vmem:[%s8827_s1 + $0x130] sm:$0xff] }
  0x59   : > { %6315 = vmatprep.subr.bf16.mxu0 %v6314_v18  ;;  %v4360_v14 = vld [vmem:[%s8827_s1 + $0x120] sm:$0xff]  ;;  %v4361_v15 = vld [vmem:[%s8827_s1 + $0x128] sm:$0xff]  ;;  %v4363_v20 = vld [vmem:[%s8827_s1 + $0x138] sm:$0xff] }
  0x5a   : > { %v7750_v16 = vld [vmem:[%s7567_s12 + $0x20] sm:$0xff]  ;;  %v7767_v22 = vld [vmem:[%s7567_s12 + $0x48] sm:$0xff]  ;;  %v6370_v23 = vpack.c.bf16 %v4363_v20, %v4362_v19  ;;  %v7778_v26 = vld [vmem:[%s7567_s12 + $0x50] sm:$0xff] }
  0x5b   : > { %v4365_v25 = vld [vmem:[%s8827_s1 + $0x148] sm:$0xff]  ;;  %v4366_v29 = vld [vmem:[%s8827_s1 + $0x150] sm:$0xff]  ;;  %v7795_v34 = vld [vmem:[%s7567_s12 + $0x78] sm:$0xff] }
  0x5c   : > { %6317 = vmatpush3.bf16.msra.mxu0 %v6314_v18  ;;  %v6366_v18 = vpack.c.bf16 %v4361_v15, %v4360_v14  ;;  %v4369_v39 = vld [vmem:[%s8827_s1 + $0x168] sm:$0xff]  ;;  %v7806_v40 = vld [vmem:[%s7567_s12 + $0x80] sm:$0xff]  ;;  %v4370_v45 = vld [vmem:[%s8827_s1 + $0x170] sm:$0xff] }
  0x5d   : > { %6319 = vmatprep.subr.bf16.mxu0 %v6318_v21  ;;  %v7820_v49 = vld [vmem:[%s7567_s12 + $0x98] sm:$0xff]  ;;  %v7823_v50 = vld [vmem:[%s7567_s12 + $0xa8] sm:$0xff]  ;;  %v4394_v54 = vld [vmem:[%s8827_s1 + $0x180] sm:$0xff] }
  0x5e   : > { %v4395_v55 = vld [vmem:[%s8827_s1 + $0x188] sm:$0xff]  ;;  %v7837_v59 = vld [vmem:[%s7567_s12 + $0xc0] sm:$0xff]  ;;  %v7845_v0 = vld [vmem:[%s7567_s12 + $0xd8] sm:$0xff] }
  0x5f   : > { %v6390_v60 = vpack.c.bf16 %v4395_v55, %v4394_v54  ;;  %v7850_v1 = vld [vmem:[%s7567_s12 + $0xe0] sm:$0xff]  ;;  %v4397_v9 = vld [vmem:[%s8827_s1 + $0x198] sm:$0xff]  ;;  %v660_v10 = vld [vmem:[%s7567_s12 + $0xa] sm:$0xff] }
  0x60   : > { %6321 = vmatpush3.bf16.msra.mxu0 %v6318_v21  ;;  %v7764_v21 = vld [vmem:[%s7567_s12 + $0x38] sm:$0xff]  ;;  %v4398_v14 = vld [vmem:[%s8827_s1 + $0x1a0] sm:$0xff]  ;;  %v4399_v15 = vld [vmem:[%s8827_s1 + $0x1a8] sm:$0xff] }
  0x61   : > { %6323 = vmatprep.subr.bf16.mxu0 %v6322_v24  ;;  %v7875_v19 = vld [vmem:[%s7567_s12 + $0x32] sm:$0xff]  ;;  %v6398_v20 = vpack.c.bf16 %v4399_v15, %v4398_v14  ;;  %v4406_v55 = vld [vmem:[%s8827_s1 + $0x1e0] sm:$0xff]  ;;  %v7942_v15 = vld [vmem:[%s7567_s12 + $0xaa] sm:$0xff] }
  0x62   : > { %v7939_v14 = vld [vmem:[%s7567_s12 + $0x9a] sm:$0xff] }
  0x64   : > { %6325 = vmatpush3.bf16.msra.mxu0 %v6322_v24  ;;  %v4364_v24 = vld [vmem:[%s8827_s1 + $0x140] sm:$0xff] }
  0x65   : > { %6327 = vmatprep.subr.bf16.mxu0 %v6326_v27  ;;  %v6374_v28 = vpack.c.bf16 %v4365_v25, %v4364_v24  ;;  %v4401_v24 = vld [vmem:[%s8827_s1 + $0x1b8] sm:$0xff] }
  0x66   : > { %v7886_v25 = vld [vmem:[%s7567_s12 + $0x3a] sm:$0xff] }
  0x67   : > { %5265 = vmatmul.mubr.f32.vlgmr.msra.gmra.mrb[0].mxu0 %v293_v30  ;;  %v4367_v30 = vld [vmem:[%s8827_s1 + $0x158] sm:$0xff] }
  0x68   : > { %6329 = vmatpush3.bf16.msra.mxu0 %v6326_v27  ;;  %5267 = vmatprep.mubr.f32.mxu0 %v7614_v31  ;;  %v7781_v27 = vld [vmem:[%s7567_s12 + $0x60] sm:$0xff]  ;;  %v6378_v35 = vpack.c.bf16 %v4367_v30, %v4366_v29  ;;  %v4403_v30 = vld [vmem:[%s8827_s1 + $0x1c8] sm:$0xff] }
  0x69   : > { %6331 = vmatprep.subr.bf16.mxu0 %v6330_v32  ;;  %v4402_v29 = vld [vmem:[%s8827_s1 + $0x1c0] sm:$0xff] }
  0x6b   : > { %5268 = vmatmul.mubr.f32.gmra.mrb[2].mxu0 %v7628_v36 }
  0x6c   : > { %6333 = vmatpush3.bf16.msra.mxu0 %v6330_v32  ;;  %5270 = vmatprep.mubr.f32.mxu0 %v7631_v37  ;;  %v7792_v32 = vld [vmem:[%s7567_s12 + $0x68] sm:$0xff] }
  0x6d   : > { %6335 = vmatprep.subr.bf16.mxu0 %v6334_v38 }
  0x6f   : > { %5271 = vmatmul.mubr.f32.gmra.mrb[4].mxu0 %v7642_v41 }
  0x70   : > { %5273 = vmatprep.mubr.f32.mxu0 %v7645_v42  ;;  %6337 = vmatpush3.bf16.msra.mxu0 %v6334_v38  ;;  %v4368_v38 = vld [vmem:[%s8827_s1 + $0x160] sm:$0xff] }
  0x71   : > { %6339 = vmatprep.subr.bf16.mxu0 %v6338_v43  ;;  %v6382_v44 = vpack.c.bf16 %v4369_v39, %v4368_v38  ;;  %v7900_v38 = vld [vmem:[%s7567_s12 + $0x62] sm:$0xff]  ;;  %v6406_v39 = vpack.c.bf16 %v4403_v30, %v4402_v29 }
  0x72   : > { %v7956_v29 = vld [vmem:[%s7567_s12 + $0xc2] sm:$0xff] }
  0x73   : > { %5274 = vmatmul.mubr.f32.gmra.mrb[6].mxu0 %v7656_v46 }
  0x74   : > { %5276 = vmatprep.mubr.f32.mxu0 %v7659_v47  ;;  %6341 = vmatpush3.bf16.msra.mxu0 %v6338_v43  ;;  %v7809_v43 = vld [vmem:[%s7567_s12 + $0x90] sm:$0xff] }
  0x75   : > { %6343 = vmatprep.subr.bf16.mxu0 %v6342_v48 }
  0x77   : > { %5277 = vmatmul.mubr.f32.gmra.mrb[8].mxu0 %v7670_v51 }
  0x78   : > { %5279 = vmatprep.mubr.f32.mxu0 %v7673_v52  ;;  %6345 = vmatpush3.bf16.msra.mxu0 %v6342_v48  ;;  %v4371_v48 = vld [vmem:[%s8827_s1 + $0x178] sm:$0xff] }
  0x79   : > { %6347 = vmatprep.subr.bf16.mxu0 %v6346_v53 }
  0x7b   : > { %5280 = vmatmul.mubr.f32.gmra.mrb[10].mxu0 %v7684_v56 }
  0x7c   : > { %5282 = vmatprep.mubr.f32.mxu0 %v7687_v57  ;;  %6349 = vmatpush3.bf16.msra.mxu0 %v6346_v53  ;;  %v6386_v53 = vpack.c.bf16 %v4371_v48, %v4370_v45  ;;  %v4405_v45 = vld [vmem:[%s8827_s1 + $0x1d8] sm:$0xff]  ;;  %v7911_v48 = vld [vmem:[%s7567_s12 + $0x6a] sm:$0xff] }
  0x7d   : > { %6351 = vmatprep.subr.bf16.mxu0 %v6350_v58 }
  0x7f   : > { %5283 = vmatmul.mubr.f32.gmra.mrb[12].mxu0 %v7698_v61 }
  0x80   : > { %5285 = vmatprep.mubr.f32.mxu0 %v7701_v62  ;;  %6353 = vmatpush3.bf16.msra.mxu0 %v6350_v58  ;;  %v7834_v58 = vld [vmem:[%s7567_s12 + $0xb0] sm:$0xff] }
  0x81   : > { %6355 = vmatprep.subr.bf16.mxu0 %v6354_v63 }
  0x83   : > { %5286 = vmatmul.mubr.f32.gmra.mrb[14].mxu0 %v7712_v2 }
  0x84   : > { %5288 = vmatprep.mubr.f32.mxu0 %v7715_v3  ;;  %6357 = vmatpush3.bf16.msra.mxu0 %v6354_v63  ;;  %v7842_v63 = vld [vmem:[%s7567_s12 + $0xc8] sm:$0xff] }
  0x85   : > { %6359 = vmatprep.subr.bf16.mxu0 %v6358_v4 }
  0x87   : > { %5289 = vmatmul.mubr.f32.gmra.mrb[16].mxu0 %v7720_v5 }
  0x88   : > { %5291 = vmatprep.mubr.f32.mxu0 %v7723_v6 }
  0x8b   : > { %5292 = vmatmul.mubr.f32.gmra.mrb[18].mxu0 %v7728_v7 }
  0x8c   : > { %5326 = vmatprep.mubr.f32.mxu0 %v256_v8  ;;  %v4396_v8 = vld [vmem:[%s8827_s1 + $0x190] sm:$0xff] }
  0x8f   : > { %5327 = vmatmul.mubr.f32.vlgmr.msra.gmra.mrb[0].mxu0 %v257_v11  ;;  %v7862_v11 = vld [vmem:[%s7567_s12 + $0x1a] sm:$0xff] }
  0x90   : > { %6361 = vmatpush3.bf16.msra.mxu0 %v6358_v4  ;;  %5329 = vmatprep.mubr.f32.mxu0 %v7740_v12  ;;  %v659_v4 = vld [vmem:[%s7567_s12 + $0x2] sm:$0xff] }
  0x91   : > { %6363 = vmatprep.subr.bf16.mxu0 %v6362_v13 }
  0x93   : > { %5330 = vmatmul.mubr.f32.gmra.mrb[2].mxu0 %v7750_v16 }
  0x94   : > { %6365 = vmatpush3.bf16.msra.mxu0 %v6362_v13  ;;  %5332 = vmatprep.mubr.f32.mxu0 %v7753_v17  ;;  %v6394_v13 = vpack.c.bf16 %v4397_v9, %v4396_v8  ;;  %v7928_v8 = vld [vmem:[%s7567_s12 + $0x92] sm:$0xff] }
  0x95   : > { %6367 = vmatprep.subr.bf16.mxu0 %v6366_v18 }
  0x97   : > { %5333 = vmatmul.mubr.f32.gmra.mrb[4].mxu0 %v7764_v21 }
  0x98   : > { %5335 = vmatprep.mubr.f32.mxu0 %v7767_v22  ;;  %6369 = vmatpush3.bf16.msra.mxu0 %v6366_v18  ;;  %v7872_v18 = vld [vmem:[%s7567_s12 + $0x22] sm:$0xff] }
  0x99   : > { %6371 = vmatprep.subr.bf16.mxu0 %v6370_v23 }
  0x9b   : > { %5336 = vmatmul.mubr.f32.gmra.mrb[6].mxu0 %v7778_v26 }
  0x9c   : > { %5338 = vmatprep.mubr.f32.mxu0 %v7781_v27  ;;  %6373 = vmatpush3.bf16.msra.mxu0 %v6370_v23  ;;  %v4400_v23 = vld [vmem:[%s8827_s1 + $0x1b0] sm:$0xff] }
  0x9d   : > { %6375 = vmatprep.subr.bf16.mxu0 %v6374_v28 }
  0x9f   : > { %5339 = vmatmul.mubr.f32.gmra.mrb[8].mxu0 %v7792_v32 }
  0xa0   : > { %5341 = vmatprep.mubr.f32.mxu0 %v7795_v34  ;;  %6377 = vmatpush3.bf16.msra.mxu0 %v6374_v28  ;;  %v6402_v28 = vpack.c.bf16 %v4401_v24, %v4400_v23  ;;  %v4430_v23 = vld [vmem:[%s8827_s1 + $0x200] sm:$0xff]  ;;  %v4431_v24 = vld [vmem:[%s8827_s1 + $0x208] sm:$0xff] }
  0xa1   : > { %6379 = vmatprep.subr.bf16.mxu0 %v6378_v35  ;;  %v6422_v30 = vpack.c.bf16 %v4431_v24, %v4430_v23  ;;  %v4436_v24 = vld [vmem:[%s8827_s1 + $0x230] sm:$0xff] }
  0xa3   : > { %5342 = vmatmul.mubr.f32.gmra.mrb[10].mxu0 %v7806_v40 }
  0xa4   : > { %5344 = vmatprep.mubr.f32.mxu0 %v7809_v43  ;;  %6381 = vmatpush3.bf16.msra.mxu0 %v6378_v35  ;;  %v7897_v35 = vld [vmem:[%s7567_s12 + $0x52] sm:$0xff] }
  0xa5   : > { %6383 = vmatprep.subr.bf16.mxu0 %v6382_v44 }
  0xa7   : > { %5345 = vmatmul.mubr.f32.gmra.mrb[12].mxu0 %v7820_v49 }
  0xa8   : > { %5347 = vmatprep.mubr.f32.mxu0 %v7823_v50  ;;  %6385 = vmatpush3.bf16.msra.mxu0 %v6382_v44  ;;  %v4404_v44 = vld [vmem:[%s8827_s1 + $0x1d0] sm:$0xff] }
  0xa9   : > { %6387 = vmatprep.subr.bf16.mxu0 %v6386_v53  ;;  %v6410_v54 = vpack.c.bf16 %v4405_v45, %v4404_v44  ;;  %v7964_v44 = vld [vmem:[%s7567_s12 + $0xda] sm:$0xff]  ;;  %v7969_v45 = vld [vmem:[%s7567_s12 + $0xe2] sm:$0xff] }
  0xab   : > { %5348 = vmatmul.mubr.f32.gmra.mrb[14].mxu0 %v7834_v58 }
  0xac   : > { %5350 = vmatprep.mubr.f32.mxu0 %v7837_v59  ;;  %6389 = vmatpush3.bf16.msra.mxu0 %v6386_v53  ;;  %v7914_v53 = vld [vmem:[%s7567_s12 + $0x7a] sm:$0xff] }
  0xad   : > { %6391 = vmatprep.subr.bf16.mxu0 %v6390_v60 }
  0xaf   : > { %5351 = vmatmul.mubr.f32.gmra.mrb[16].mxu0 %v7842_v63 }
  0xb0   : > { %5353 = vmatprep.mubr.f32.mxu0 %v7845_v0 }
  0xb3   : > { %5354 = vmatmul.mubr.f32.gmra.mrb[18].mxu0 %v7850_v1 }
  0xb4   : > { %5388 = vmatprep.mubr.f32.mxu0 %v659_v4  ;;  %v7925_v4 = vld [vmem:[%s7567_s12 + $0x82] sm:$0xff] }
  0xb7   : > { %5389 = vmatmul.mubr.f32.vlgmr.msra.gmra.mrb[0].mxu0 %v660_v10  ;;  %v4408_v10 = vld [vmem:[%s8827_s1 + $0x1f0] sm:$0xff] }
  0xb8   : > { %6393 = vmatpush3.bf16.msra.mxu0 %v6390_v60  ;;  %5391 = vmatprep.mubr.f32.mxu0 %v7862_v11  ;;  %v4407_v60 = vld [vmem:[%s8827_s1 + $0x1e8] sm:$0xff] }
  0xb9   : > { %6395 = vmatprep.subr.bf16.mxu0 %v6394_v13  ;;  %v6414_v9 = vpack.c.bf16 %v4407_v60, %v4406_v55  ;;  %v4433_v55 = vld [vmem:[%s8827_s1 + $0x218] sm:$0xff] }
  0xbb   : > { %5392 = vmatmul.mubr.f32.gmra.mrb[2].mxu0 %v7872_v18 }
  0xbc   : > { %6397 = vmatpush3.bf16.msra.mxu0 %v6394_v13  ;;  %5394 = vmatprep.mubr.f32.mxu0 %v7875_v19  ;;  %v4409_v13 = vld [vmem:[%s8827_s1 + $0x1f8] sm:$0xff] }
  0xbd   : > { %6399 = vmatprep.subr.bf16.mxu0 %v6398_v20 }
  0xbf   : > { %5395 = vmatmul.mubr.f32.gmra.mrb[4].mxu0 %v7886_v25 }
  0xc0   : > { %5397 = vmatprep.mubr.f32.mxu0 %v7617_v33  ;;  %6401 = vmatpush3.bf16.msra.mxu0 %v6398_v20  ;;  %v6418_v20 = vpack.c.bf16 %v4409_v13, %v4408_v10  ;;  %v4435_v10 = vld [vmem:[%s8827_s1 + $0x228] sm:$0xff]  ;;  %v4576_v13 = vld [vmem:[%s8827_s1 + $0x400] sm:$0xff] }
  0xc1   : > { %6403 = vmatprep.subr.bf16.mxu0 %v6402_v28 }
  0xc3   : > { %5398 = vmatmul.mubr.f32.gmra.mrb[6].mxu0 %v7897_v35 }
  0xc4   : > { %5400 = vmatprep.mubr.f32.mxu0 %v7900_v38  ;;  %6405 = vmatpush3.bf16.msra.mxu0 %v6402_v28  ;;  %v7953_v28 = vld [vmem:[%s7567_s12 + $0xb2] sm:$0xff] }
  0xc5   : > { %6407 = vmatprep.subr.bf16.mxu0 %v6406_v39 }
  0xc7   : > { %5401 = vmatmul.mubr.f32.gmra.mrb[8].mxu0 %v7911_v48 }
  0xc8   : > { %5403 = vmatprep.mubr.f32.mxu0 %v7914_v53  ;;  %6409 = vmatpush3.bf16.msra.mxu0 %v6406_v39  ;;  %v7961_v39 = vld [vmem:[%s7567_s12 + $0xca] sm:$0xff] }
  0xc9   : > { %6411 = vmatprep.subr.bf16.mxu0 %v6410_v54 }
  0xcb   : > { %5404 = vmatmul.mubr.f32.gmra.mrb[10].mxu0 %v7925_v4 }
  0xcc   : > { %5406 = vmatprep.mubr.f32.mxu0 %v7928_v8  ;;  %6413 = vmatpush3.bf16.msra.mxu0 %v6410_v54  ;;  %v4432_v54 = vld [vmem:[%s8827_s1 + $0x210] sm:$0xff] }
  0xcd   : > { %6415 = vmatprep.subr.bf16.mxu0 %v6414_v9  ;;  %v6426_v60 = vpack.c.bf16 %v4433_v55, %v4432_v54  ;;  %v4579_v55 = vld [vmem:[%s8827_s1 + $0x418] sm:$0xff] }
  0xcf   : > { %5407 = vmatmul.mubr.f32.gmra.mrb[12].mxu0 %v7939_v14 }
  0xd0   : > { %5409 = vmatprep.mubr.f32.mxu0 %v7942_v15  ;;  %6417 = vmatpush3.bf16.msra.mxu0 %v6414_v9  ;;  %v4434_v9 = vld [vmem:[%s8827_s1 + $0x220] sm:$0xff] }
  0xd1   : > { %6419 = vmatprep.subr.bf16.mxu0 %v6418_v20 }
  0xd3   : > { %5410 = vmatmul.mubr.f32.gmra.mrb[14].mxu0 %v7953_v28 }
  0xd4   : > { %5412 = vmatprep.mubr.f32.mxu0 %v7956_v29  ;;  %6421 = vmatpush3.bf16.msra.mxu0 %v6418_v20  ;;  %v6430_v20 = vpack.c.bf16 %v4435_v10, %v4434_v9  ;;  %v4438_v9 = vld [vmem:[%s8827_s1 + $0x240] sm:$0xff] }
  0xd5   : > { %6423 = vmatprep.subr.bf16.mxu0 %v6422_v30 }
  0xd7   : > { %5413 = vmatmul.mubr.f32.gmra.mrb[16].mxu0 %v7961_v39 }
  0xd8   : > { %5415 = vmatprep.mubr.f32.mxu0 %v7964_v44 }
  0xdb   : > { %5416 = vmatmul.mubr.f32.gmra.mrb[18].mxu0 %v7969_v45 }
  0xdc   : > { %5450 = vmatprep.mubr.f32.mxu0 %v7740_v12  ;;  %v4577_v12 = vld [vmem:[%s8827_s1 + $0x408] sm:$0xff] }
  0xdd   : > { %v7993_v23 = vpack.c.bf16 %v4577_v12, %v4576_v13  ;;  %v4580_v13 = vld [vmem:[%s8827_s1 + $0x420] sm:$0xff]  ;;  %v4581_v12 = vld [vmem:[%s8827_s1 + $0x428] sm:$0xff] }
  0xdf   : > { %5451 = vmatmul.mubr.f32.vlgmr.msra.gmra.mrb[0].mxu0 %v7750_v16  ;;  %v4437_v16 = vld [vmem:[%s8827_s1 + $0x238] sm:$0xff]  ;;  %6870 = vmatprep.subr.bf16.mxu1 %v7993_v23 }
  0xe0   : > { %6425 = vmatpush3.bf16.msra.mxu0 %v6422_v30  ;;  %5453 = vmatprep.mubr.f32.mxu0 %v7753_v17  ;;  %v4578_v30 = vld [vmem:[%s8827_s1 + $0x410] sm:$0xff]  ;;  %v6434_v54 = vpack.c.bf16 %v4437_v16, %v4436_v24  ;;  %v8028_v16 = vpack.c.bf16 %v4581_v12, %v4580_v13  ;;  %v4442_v12 = vld [vmem:[%s8827_s1 + $0x260] sm:$0xff] }
  0xe1   : > { %6427 = vmatprep.subr.bf16.mxu0 %v6426_v60  ;;  %6878 = vmatpush3.bf16.msra.mxu1 %v7993_v23  ;;  %v8017_v10 = vpack.c.bf16 %v4579_v55, %v4578_v30  ;;  %v4440_v30 = vld [vmem:[%s8827_s1 + $0x250] sm:$0xff] }
  0xe2   : > { %8858 = vst [vmem:[#allocation11_spill] sm:$0xff] %v8028_v16  ;;  %v4582_v55 = vld [vmem:[%s8827_s1 + $0x430] sm:$0xff] }
  0xe3   : > { %5454 = vmatmul.mubr.f32.gmra.mrb[2].mxu0 %v7764_v21  ;;  %6871 = vmatprep.subr.bf16.mxu1 %v8017_v10 }
  0xe4   : > { %6429 = vmatpush3.bf16.msra.mxu0 %v6426_v60  ;;  %5456 = vmatprep.mubr.f32.mxu0 %v7767_v22  ;;  %v4439_v60 = vld [vmem:[%s8827_s1 + $0x248] sm:$0xff] }
  0xe5   : > { %6431 = vmatprep.subr.bf16.mxu0 %v6430_v20  ;;  %v6438_v24 = vpack.c.bf16 %v4439_v60, %v4438_v9  ;;  %6879 = vmatpush3.bf16.msra.mxu1 %v8017_v10  ;;  %v4583_v9 = vld [vmem:[%s8827_s1 + $0x438] sm:$0xff] }
  0xe6   : > { %6872 = vmatprep.subr.bf16.mxu1 %v8028_v16  ;;  %v8046_v13 = vpack.c.bf16 %v4583_v9, %v4582_v55 }
  0xe7   : > { %5457 = vmatmul.mubr.f32.gmra.mrb[4].mxu0 %v7778_v26 }
  0xe8   : > { %5459 = vmatprep.mubr.f32.mxu0 %v7781_v27  ;;  %6433 = vmatpush3.bf16.msra.mxu0 %v6430_v20  ;;  %v4441_v20 = vld [vmem:[%s8827_s1 + $0x258] sm:$0xff]  ;;  %8859 = vst [vmem:[#allocation12_spill] sm:$0xff] %v8046_v13 }
  0xe9   : > { %6435 = vmatprep.subr.bf16.mxu0 %v6434_v54  ;;  %v6442_v60 = vpack.c.bf16 %v4441_v20, %v4440_v30  ;;  %6880 = vmatpush3.bf16.msra.mxu1 %v8028_v16  ;;  %v4584_v30 = vld [vmem:[%s8827_s1 + $0x440] sm:$0xff]  ;;  %v4585_v20 = vld [vmem:[%s8827_s1 + $0x448] sm:$0xff]  ;;  %v4444_v16 = vld [vmem:[%s8827_s1 + $0x270] sm:$0xff] }
  0xea   : > { %6873 = vmatprep.subr.bf16.mxu1 %v8046_v13  ;;  %v8064_v9 = vpack.c.bf16 %v4585_v20, %v4584_v30 }
  0xeb   : > { %5460 = vmatmul.mubr.f32.gmra.mrb[6].mxu0 %v7792_v32 }
  0xec   : > { %5462 = vmatprep.mubr.f32.mxu0 %v7795_v34  ;;  %6437 = vmatpush3.bf16.msra.mxu0 %v6434_v54  ;;  %v4443_v54 = vld [vmem:[%s8827_s1 + $0x268] sm:$0xff] }
  0xed   : > { %6439 = vmatprep.subr.bf16.mxu0 %v6438_v24  ;;  %v6446_v55 = vpack.c.bf16 %v4443_v54, %v4442_v12  ;;  %6881 = vmatpush3.bf16.msra.mxu1 %v8046_v13  ;;  %v4586_v12 = vld [vmem:[%s8827_s1 + $0x450] sm:$0xff]  ;;  %v4587_v54 = vld [vmem:[%s8827_s1 + $0x458] sm:$0xff]  ;;  %v4466_v13 = vld [vmem:[%s8827_s1 + $0x280] sm:$0xff] }
  0xee   : > { %6874 = vmatprep.subr.bf16.mxu1 %v8064_v9  ;;  %v8082_v20 = vpack.c.bf16 %v4587_v54, %v4586_v12  ;;  %v4589_v12 = vld [vmem:[%s8827_s1 + $0x468] sm:$0xff] }
  0xef   : > { %5463 = vmatmul.mubr.f32.gmra.mrb[8].mxu0 %v7806_v40 }
  0xf0   : > { %5465 = vmatprep.mubr.f32.mxu0 %v7809_v43  ;;  %6441 = vmatpush3.bf16.msra.mxu0 %v6438_v24  ;;  %v4445_v24 = vld [vmem:[%s8827_s1 + $0x278] sm:$0xff]  ;;  %8860 = vst [vmem:[#allocation13_spill] sm:$0xff] %v8082_v20 }
  0xf1   : > { %6443 = vmatprep.subr.bf16.mxu0 %v6442_v60  ;;  %v6450_v30 = vpack.c.bf16 %v4445_v24, %v4444_v16  ;;  %6882 = vmatpush3.bf16.msra.mxu1 %v8064_v9  ;;  %v4588_v24 = vld [vmem:[%s8827_s1 + $0x460] sm:$0xff] }
  0xf2   : > { %6875 = vmatprep.subr.bf16.mxu1 %v8082_v20  ;;  %v8101_v54 = vpack.c.bf16 %v4589_v12, %v4588_v24  ;;  %v4468_v12 = vld [vmem:[%s8827_s1 + $0x290] sm:$0xff] }
  0xf3   : > { %5466 = vmatmul.mubr.f32.gmra.mrb[10].mxu0 %v7820_v49 }
  0xf4   : > { %5468 = vmatprep.mubr.f32.mxu0 %v7823_v50  ;;  %6445 = vmatpush3.bf16.msra.mxu0 %v6442_v60  ;;  %v4467_v60 = vld [vmem:[%s8827_s1 + $0x288] sm:$0xff]  ;;  %8861 = vst [vmem:[#allocation14_spill] sm:$0xff] %v8101_v54 }
  0xf5   : > { %6447 = vmatprep.subr.bf16.mxu0 %v6446_v55  ;;  %v6454_v16 = vpack.c.bf16 %v4467_v60, %v4466_v13  ;;  %6883 = vmatpush3.bf16.msra.mxu1 %v8082_v20  ;;  %v4590_v13 = vld [vmem:[%s8827_s1 + $0x470] sm:$0xff]  ;;  %v4469_v20 = vld [vmem:[%s8827_s1 + $0x298] sm:$0xff] }
  0xf6   : > { %v8112_v60 = vld [vmem:[%s7567_s12 + $0xf0] sm:$0xff]  ;;  %6876 = vmatprep.subr.bf16.mxu1 %v8101_v54 }
  0xf7   : > { %5469 = vmatmul.mubr.f32.gmra.mrb[12].mxu0 %v7834_v58 }
  0xf8   : > { %5471 = vmatprep.mubr.f32.mxu0 %v7837_v59  ;;  %6449 = vmatpush3.bf16.msra.mxu0 %v6446_v55  ;;  %v4591_v55 = vld [vmem:[%s8827_s1 + $0x478] sm:$0xff] }
  0xf9   : > { %6451 = vmatprep.subr.bf16.mxu0 %v6450_v30  ;;  %v8115_v24 = vpack.c.bf16 %v4591_v55, %v4590_v13  ;;  %6884 = vmatpush3.bf16.msra.mxu1 %v8101_v54  ;;  %v6458_v13 = vpack.c.bf16 %v4469_v20, %v4468_v12  ;;  %v4470_v55 = vld [vmem:[%s8827_s1 + $0x2a0] sm:$0xff]  ;;  %v4471_v54 = vld [vmem:[%s8827_s1 + $0x2a8] sm:$0xff]  ;;  %v4472_v20 = vld [vmem:[%s8827_s1 + $0x2b0] sm:$0xff] }
  0xfa   : > { %v4473_v12 = vld [vmem:[%s8827_s1 + $0x2b8] sm:$0xff] }
  0xfb   : > { %5472 = vmatmul.mubr.f32.gmra.mrb[14].mxu0 %v7842_v63  ;;  %6877 = vmatprep.subr.bf16.mxu1 %v8115_v24 }
  0xfc   : > { %5474 = vmatprep.mubr.f32.mxu0 %v7845_v0  ;;  %6453 = vmatpush3.bf16.msra.mxu0 %v6450_v30  ;;  %v8122_v30 = vld [vmem:[%s7567_s12 + $0xf8] sm:$0xff] }
  0xfd   : > { %6455 = vmatprep.subr.bf16.mxu0 %v6454_v16  ;;  %6885 = vmatpush3.bf16.msra.mxu1 %v8115_v24 }
  0xff   : > { %5475 = vmatmul.mubr.f32.gmra.mrb[16].mxu0 %v7850_v1 }
 0x100   : > { %5477 = vmatprep.mubr.f32.mxu0 %v8112_v60  ;;  %5764 = vmatmul.mubr.f32.vlgmr.msra.gmra.mrb[0].mxu1 %v7897_v35 }
 0x101   : > { %5766 = vmatprep.mubr.f32.mxu1 %v7900_v38 }
 0x103   : > { %5478 = vmatmul.mubr.f32.gmra.mrb[18].mxu0 %v8122_v30 }
 0x104   : > { %5512 = vmatprep.mubr.f32.mxu0 %v7614_v31  ;;  %v6462_v31 = vpack.c.bf16 %v4471_v54, %v4470_v55  ;;  %5767 = vmatmul.mubr.f32.gmra.mrb[2].mxu1 %v7911_v48  ;;  %v4477_v54 = vld [vmem:[%s8827_s1 + $0x2d8] sm:$0xff] }
 0x105   : > { %5769 = vmatprep.mubr.f32.mxu1 %v7914_v53  ;;  %v4481_v55 = vld [vmem:[%s8827_s1 + $0x2f8] sm:$0xff] }
 0x107   : > { %5513 = vmatmul.mubr.f32.vlgmr.msra.gmra.mrb[0].mxu0 %v7628_v36  ;;  %v6466_v36 = vpack.c.bf16 %v4473_v12, %v4472_v20  ;;  %v4505_v20 = vld [vmem:[%s8827_s1 + $0x308] sm:$0xff] }
 0x108   : > { %6457 = vmatpush3.bf16.msra.mxu0 %v6454_v16  ;;  %5515 = vmatprep.mubr.f32.mxu0 %v7631_v37  ;;  %v4474_v37 = vld [vmem:[%s8827_s1 + $0x2c0] sm:$0xff]  ;;  %v4475_v16 = vld [vmem:[%s8827_s1 + $0x2c8] sm:$0xff] }
 0x109   : > { %6459 = vmatprep.subr.bf16.mxu0 %v6458_v13  ;;  %5770 = vmatmul.mubr.f32.gmra.mrb[4].mxu1 %v7925_v4 }
 0x10a   : > { %5772 = vmatprep.mubr.f32.mxu1 %v7928_v8 }
 0x10b   : > { %5516 = vmatmul.mubr.f32.gmra.mrb[2].mxu0 %v7642_v41  ;;  %v6470_v41 = vpack.c.bf16 %v4475_v16, %v4474_v37  ;;  %v8215_v37 = vld [vmem:[%s7567_s12 + $0xf1] sm:$0xff]  ;;  %v4509_v16 = vld [vmem:[%s8827_s1 + $0x328] sm:$0xff] }
 0x10c   : > { %6461 = vmatpush3.bf16.msra.mxu0 %v6458_v13  ;;  %5518 = vmatprep.mubr.f32.mxu0 %v7645_v42  ;;  %v4476_v42 = vld [vmem:[%s8827_s1 + $0x2d0] sm:$0xff]  ;;  %v4479_v13 = vld [vmem:[%s8827_s1 + $0x2e8] sm:$0xff] }
 0x10d   : > { %6463 = vmatprep.subr.bf16.mxu0 %v6462_v31  ;;  %5773 = vmatmul.mubr.f32.gmra.mrb[6].mxu1 %v7939_v14 }
 0x10e   : > { %5775 = vmatprep.mubr.f32.mxu1 %v7942_v15 }
 0x10f   : > { %5519 = vmatmul.mubr.f32.gmra.mrb[4].mxu0 %v7656_v46  ;;  %v6474_v46 = vpack.c.bf16 %v4477_v54, %v4476_v42  ;;  %v4511_v42 = vld [vmem:[%s8827_s1 + $0x338] sm:$0xff]  ;;  %v4513_v54 = vld [vmem:[%s8827_s1 + $0x348] sm:$0xff] }
 0x110   : > { %5521 = vmatprep.mubr.f32.mxu0 %v7659_v47  ;;  %6465 = vmatpush3.bf16.msra.mxu0 %v6462_v31  ;;  %v4478_v47 = vld [vmem:[%s8827_s1 + $0x2e0] sm:$0xff] }
 0x111   : > { %6467 = vmatprep.subr.bf16.mxu0 %v6466_v36  ;;  %5776 = vmatmul.mubr.f32.gmra.mrb[8].mxu1 %v7953_v28  ;;  %v4504_v31 = vld [vmem:[%s8827_s1 + $0x300] sm:$0xff] }
 0x112   : > { %5778 = vmatprep.mubr.f32.mxu1 %v7956_v29  ;;  %v6486_v12 = vpack.c.bf16 %v4505_v20, %v4504_v31  ;;  %v4555_v31 = vld [vmem:[%s8827_s1 + $0x3f8] sm:$0xff]  ;;  %v8862_v20 = vld [vmem:[#allocation11_spill] sm:$0xff] }
 0x113   : > { %5522 = vmatmul.mubr.f32.gmra.mrb[6].mxu0 %v7670_v51  ;;  %v6478_v51 = vpack.c.bf16 %v4479_v13, %v4478_v47  ;;  %v4517_v47 = vld [vmem:[%s8827_s1 + $0x368] sm:$0xff]  ;;  %v4519_v13 = vld [vmem:[%s8827_s1 + $0x378] sm:$0xff] }
 0x114   : > { %5524 = vmatprep.mubr.f32.mxu0 %v7673_v52  ;;  %6469 = vmatpush3.bf16.msra.mxu0 %v6466_v36  ;;  %v4480_v52 = vld [vmem:[%s8827_s1 + $0x2f0] sm:$0xff] }
 0x115   : > { %6471 = vmatprep.subr.bf16.mxu0 %v6470_v41  ;;  %5779 = vmatmul.mubr.f32.gmra.mrb[10].mxu1 %v7961_v39  ;;  %v4575_v36 = vld [vmem:[%s7567_s12 + $0x112] sm:$0xff] }
 0x116   : > { %5781 = vmatprep.mubr.f32.mxu1 %v7964_v44 }
 0x117   : > { %5525 = vmatmul.mubr.f32.gmra.mrb[8].mxu0 %v7684_v56  ;;  %v6482_v56 = vpack.c.bf16 %v4481_v55, %v4480_v52  ;;  %v4547_v52 = vld [vmem:[%s8827_s1 + $0x3b8] sm:$0xff]  ;;  %v4549_v55 = vld [vmem:[%s8827_s1 + $0x3c8] sm:$0xff] }
 0x118   : > { %5527 = vmatprep.mubr.f32.mxu0 %v7687_v57  ;;  %6473 = vmatpush3.bf16.msra.mxu0 %v6470_v41  ;;  %v8194_v57 = vld [vmem:[%s7567_s12 + $0xf2] sm:$0xff] }
 0x119   : > { %6475 = vmatprep.subr.bf16.mxu0 %v6474_v46  ;;  %5782 = vmatmul.mubr.f32.gmra.mrb[12].mxu1 %v7969_v45 }
 0x11a   : > { %5784 = vmatprep.mubr.f32.mxu1 %v8194_v57 }
 0x11b   : > { %5528 = vmatmul.mubr.f32.gmra.mrb[10].mxu0 %v7698_v61  ;;  %v8207_v61 = vld [vmem:[%s7567_s12 + $0xfa] sm:$0xff] }
 0x11c   : > { %5530 = vmatprep.mubr.f32.mxu0 %v7701_v62  ;;  %6477 = vmatpush3.bf16.msra.mxu0 %v6474_v46  ;;  %v4574_v62 = vld [vmem:[%s7567_s12 + $0x10a] sm:$0xff]  ;;  %v4515_v46 = vld [vmem:[%s8827_s1 + $0x358] sm:$0xff] }
 0x11d   : > { %6479 = vmatprep.subr.bf16.mxu0 %v6478_v51  ;;  %5785 = vmatmul.mubr.f32.gmra.mrb[14].mxu1 %v8207_v61 }
 0x11e   : > { %5787 = vmatprep.mubr.f32.mxu1 %v4574_v62  ;;  %v4528_v62 = vld [vmem:[%s7567_s12 + $0x91] sm:$0xff] }
 0x11f   : > { %5531 = vmatmul.mubr.f32.gmra.mrb[12].mxu0 %v7712_v2  ;;  %v8220_v2 = vld [vmem:[%s7567_s12 + $0xf9] sm:$0xff] }
 0x120   : > { %5533 = vmatprep.mubr.f32.mxu0 %v7715_v3  ;;  %6481 = vmatpush3.bf16.msra.mxu0 %v6478_v51  ;;  %v4506_v3 = vld [vmem:[%s8827_s1 + $0x310] sm:$0xff]  ;;  %v4541_v51 = vld [vmem:[%s8827_s1 + $0x388] sm:$0xff] }
 0x121   : > { %6483 = vmatprep.subr.bf16.mxu0 %v6482_v56  ;;  %5788 = vmatmul.mubr.f32.gmra.mrb[16].mxu1 %v4575_v36  ;;  %v4530_v36 = vld [vmem:[%s7567_s12 + $0xa9] sm:$0xff] }
 0x123   : > { %5534 = vmatmul.mubr.f32.gmra.mrb[14].mxu0 %v7720_v5  ;;  %v4507_v5 = vld [vmem:[%s8827_s1 + $0x318] sm:$0xff] }
 0x124   : > { %5536 = vmatprep.mubr.f32.mxu0 %v7723_v6  ;;  %6485 = vmatpush3.bf16.msra.mxu0 %v6482_v56  ;;  %v6490_v6 = vpack.c.bf16 %v4507_v5, %v4506_v3  ;;  %v4551_v56 = vld [vmem:[%s8827_s1 + $0x3d8] sm:$0xff]  ;;  %v4532_v5 = vld [vmem:[%s7567_s12 + $0xc1] sm:$0xff] }
 0x125   : > { %6487 = vmatprep.subr.bf16.mxu0 %v6486_v12  ;;  %v4531_v3 = vld [vmem:[%s7567_s12 + $0xb1] sm:$0xff] }
 0x127   : > { %5537 = vmatmul.mubr.f32.gmra.mrb[16].mxu0 %v7728_v7  ;;  %v4508_v7 = vld [vmem:[%s8827_s1 + $0x320] sm:$0xff] }
 0x128   : > { %5539 = vmatprep.mubr.f32.mxu0 %v8215_v37  ;;  %v6494_v41 = vpack.c.bf16 %v4509_v16, %v4508_v7  ;;  %v4533_v7 = vld [vmem:[%s7567_s12 + $0xc9] sm:$0xff]  ;;  %v4534_v16 = vld [vmem:[%s7567_s12 + $0xd9] sm:$0xff] }
 0x12b   : > { %5540 = vmatmul.mubr.f32.gmra.mrb[18].mxu0 %v8220_v2 }
 0x12c   : > { %5574 = vmatprep.mubr.f32.mxu0 %v7862_v11  ;;  %v4510_v11 = vld [vmem:[%s8827_s1 + $0x330] sm:$0xff] }
 0x12f   : > { %5575 = vmatmul.mubr.f32.vlgmr.msra.gmra.mrb[0].mxu0 %v7872_v18  ;;  %v6498_v18 = vpack.c.bf16 %v4511_v42, %v4510_v11  ;;  %v4535_v11 = vld [vmem:[%s7567_s12 + $0xe1] sm:$0xff]  ;;  %v4539_v42 = vld [vmem:[%s7567_s12 + $0x111] sm:$0xff] }
 0x130   : > { %6489 = vmatpush3.bf16.msra.mxu0 %v6486_v12  ;;  %5577 = vmatprep.mubr.f32.mxu0 %v7875_v19  ;;  %v4512_v19 = vld [vmem:[%s8827_s1 + $0x340] sm:$0xff]  ;;  %v8863_v12 = vld [vmem:[#allocation12_spill] sm:$0xff] }
 0x131   : > { %6491 = vmatprep.subr.bf16.mxu0 %v6490_v6 }
 0x133   : > { %5578 = vmatmul.mubr.f32.gmra.mrb[2].mxu0 %v7886_v25  ;;  %v6502_v25 = vpack.c.bf16 %v4513_v54, %v4512_v19  ;;  %v4557_v19 = vld [vmem:[%s7567_s12 + $0x3a] sm:$0xff] }
 0x134   : > { %6493 = vmatpush3.bf16.msra.mxu0 %v6490_v6  ;;  %5580 = vmatprep.mubr.f32.mxu0 %v7617_v33  ;;  %v4514_v33 = vld [vmem:[%s8827_s1 + $0x350] sm:$0xff]  ;;  %v8864_v6 = vld [vmem:[#allocation13_spill] sm:$0xff] }
 0x135   : > { %6495 = vmatprep.subr.bf16.mxu0 %v6494_v41 }
 0x137   : > { %5581 = vmatmul.mubr.f32.gmra.mrb[4].mxu0 %v7897_v35  ;;  %v6506_v35 = vpack.c.bf16 %v4515_v46, %v4514_v33 }
 0x138   : > { %5583 = vmatprep.mubr.f32.mxu0 %v7900_v38  ;;  %6497 = vmatpush3.bf16.msra.mxu0 %v6494_v41  ;;  %v4516_v38 = vld [vmem:[%s8827_s1 + $0x360] sm:$0xff]  ;;  %v8865_v41 = vld [vmem:[#allocation14_spill] sm:$0xff] }
 0x139   : > { %6499 = vmatprep.subr.bf16.mxu0 %v6498_v18 }
 0x13b   : > { %5584 = vmatmul.mubr.f32.gmra.mrb[6].mxu0 %v7911_v48  ;;  %v6510_v48 = vpack.c.bf16 %v4517_v47, %v4516_v38 }
 0x13c   : > { %5586 = vmatprep.mubr.f32.mxu0 %v7914_v53  ;;  %6501 = vmatpush3.bf16.msra.mxu0 %v6498_v18  ;;  %v4518_v53 = vld [vmem:[%s8827_s1 + $0x370] sm:$0xff] }
 0x13d   : > { %6503 = vmatprep.subr.bf16.mxu0 %v6502_v25  ;;  %v4556_v18 = vld [vmem:[%s7567_s12 + $0x32] sm:$0xff] }
 0x13f   : > { %5587 = vmatmul.mubr.f32.gmra.mrb[8].mxu0 %v7925_v4  ;;  %v6514_v4 = vpack.c.bf16 %v4519_v13, %v4518_v53 }
 0x140   : > { %5589 = vmatprep.mubr.f32.mxu0 %v7928_v8  ;;  %6505 = vmatpush3.bf16.msra.mxu0 %v6502_v25  ;;  %v4540_v8 = vld [vmem:[%s8827_s1 + $0x380] sm:$0xff] }
 0x141   : > { %6507 = vmatprep.subr.bf16.mxu0 %v6506_v35 }
 0x143   : > { %5590 = vmatmul.mubr.f32.gmra.mrb[10].mxu0 %v7939_v14  ;;  %v6518_v14 = vpack.c.bf16 %v4541_v51, %v4540_v8 }
 0x144   : > { %5592 = vmatprep.mubr.f32.mxu0 %v7942_v15  ;;  %6509 = vmatpush3.bf16.msra.mxu0 %v6506_v35  ;;  %v4542_v15 = vld [vmem:[%s8827_s1 + $0x390] sm:$0xff] }
 0x145   : > { %6511 = vmatprep.subr.bf16.mxu0 %v6510_v48 }
 0x147   : > { %5593 = vmatmul.mubr.f32.gmra.mrb[12].mxu0 %v7953_v28  ;;  %v4543_v28 = vld [vmem:[%s8827_s1 + $0x398] sm:$0xff] }
 0x148   : > { %5595 = vmatprep.mubr.f32.mxu0 %v7956_v29  ;;  %6513 = vmatpush3.bf16.msra.mxu0 %v6510_v48  ;;  %v6522_v29 = vpack.c.bf16 %v4543_v28, %v4542_v15 }
 0x149   : > { %6515 = vmatprep.subr.bf16.mxu0 %v6514_v4 }
 0x14b   : > { %5596 = vmatmul.mubr.f32.gmra.mrb[14].mxu0 %v7961_v39  ;;  %v4544_v39 = vld [vmem:[%s8827_s1 + $0x3a0] sm:$0xff] }
 0x14c   : > { %5598 = vmatprep.mubr.f32.mxu0 %v7964_v44  ;;  %6517 = vmatpush3.bf16.msra.mxu0 %v6514_v4  ;;  %v4545_v44 = vld [vmem:[%s8827_s1 + $0x3a8] sm:$0xff] }
 0x14d   : > { %6519 = vmatprep.subr.bf16.mxu0 %v6518_v14 }
 0x14f   : > { %5599 = vmatmul.mubr.f32.gmra.mrb[16].mxu0 %v7969_v45  ;;  %v6526_v45 = vpack.c.bf16 %v4545_v44, %v4544_v39 }
 0x150   : > { %5601 = vmatprep.mubr.f32.mxu0 %v8194_v57  ;;  %v4553_v57 = vld [vmem:[%s8827_s1 + $0x3e8] sm:$0xff] }
 0x153   : > { %5602 = vmatmul.mubr.f32.gmra.mrb[18].mxu0 %v8207_v61  ;;  %v4526_v61 = vld [vmem:[%s7567_s12 + $0x79] sm:$0xff] }
 0x154   : > { %5636 = vmatprep.mubr.f32.mxu0 %v7753_v17  ;;  %v4546_v17 = vld [vmem:[%s8827_s1 + $0x3b0] sm:$0xff] }
 0x157   : > { %5637 = vmatmul.mubr.f32.vlgmr.msra.gmra.mrb[0].mxu0 %v7764_v21  ;;  %v6530_v21 = vpack.c.bf16 %v4547_v52, %v4546_v17 }
 0x158   : > { %6521 = vmatpush3.bf16.msra.mxu0 %v6518_v14  ;;  %5639 = vmatprep.mubr.f32.mxu0 %v7767_v22  ;;  %v4548_v22 = vld [vmem:[%s8827_s1 + $0x3c0] sm:$0xff] }
 0x159   : > { %6523 = vmatprep.subr.bf16.mxu0 %v6522_v29 }
 0x15b   : > { %5640 = vmatmul.mubr.f32.gmra.mrb[2].mxu0 %v7778_v26  ;;  %v6534_v26 = vpack.c.bf16 %v4549_v55, %v4548_v22 }
 0x15c   : > { %6525 = vmatpush3.bf16.msra.mxu0 %v6522_v29  ;;  %5642 = vmatprep.mubr.f32.mxu0 %v7781_v27  ;;  %v4550_v27 = vld [vmem:[%s8827_s1 + $0x3d0] sm:$0xff]  ;;  %v8414_v29 = vld [vmem:[%s8829_s3] ss:$0 sm:$0xff] }
 0x15d   : > { %6527 = vmatprep.subr.bf16.mxu0 %v6526_v45 }
 0x15f   : > { %5643 = vmatmul.mubr.f32.gmra.mrb[4].mxu0 %v7792_v32  ;;  %v6538_v32 = vpack.c.bf16 %v4551_v56, %v4550_v27 }
 0x160   : > { %5645 = vmatprep.mubr.f32.mxu0 %v7795_v34  ;;  %6529 = vmatpush3.bf16.msra.mxu0 %v6526_v45  ;;  %v4552_v34 = vld [vmem:[%s8827_s1 + $0x3e0] sm:$0xff] }
 0x161   : > { %6531 = vmatprep.subr.bf16.mxu0 %v6530_v21 }
 0x163   : > { %5646 = vmatmul.mubr.f32.gmra.mrb[6].mxu0 %v7806_v40  ;;  %v6542_v40 = vpack.c.bf16 %v4553_v57, %v4552_v34 }
 0x164   : > { %5648 = vmatprep.mubr.f32.mxu0 %v7809_v43  ;;  %6533 = vmatpush3.bf16.msra.mxu0 %v6530_v21  ;;  %v4554_v43 = vld [vmem:[%s8827_s1 + $0x3f0] sm:$0xff] }
 0x165   : > { %6535 = vmatprep.subr.bf16.mxu0 %v6534_v26 }
 0x167   : > { %5649 = vmatmul.mubr.f32.gmra.mrb[8].mxu0 %v7820_v49  ;;  %v6546_v49 = vpack.c.bf16 %v4555_v31, %v4554_v43 }
 0x168   : > { %5651 = vmatprep.mubr.f32.mxu0 %v7823_v50  ;;  %6537 = vmatpush3.bf16.msra.mxu0 %v6534_v26  ;;  %v4502_v50 = vld [vmem:[%s7567_s12 + $0x108] sm:$0xff] }
 0x169   : > { %6539 = vmatprep.subr.bf16.mxu0 %v6538_v32 }
 0x16b   : > { %5652 = vmatmul.mubr.f32.gmra.mrb[10].mxu0 %v7834_v58  ;;  %v4503_v58 = vld [vmem:[%s7567_s12 + $0x110] sm:$0xff] }
 0x16c   : > { %5654 = vmatprep.mubr.f32.mxu0 %v7837_v59  ;;  %6541 = vmatpush3.bf16.msra.mxu0 %v6538_v32  ;;  %v4520_v59 = vld [vmem:[%s7567_s12 + $0x31] sm:$0xff] }
 0x16d   : > { %6543 = vmatprep.subr.bf16.mxu0 %v6542_v40 }
 0x16f   : > { %5655 = vmatmul.mubr.f32.gmra.mrb[12].mxu0 %v7842_v63  ;;  %v4521_v63 = vld [vmem:[%s7567_s12 + $0x39] sm:$0xff] }
 0x170   : > { %5657 = vmatprep.mubr.f32.mxu0 %v7845_v0  ;;  %6545 = vmatpush3.bf16.msra.mxu0 %v6542_v40  ;;  %v4522_v0 = vld [vmem:[%s7567_s12 + $0x49] sm:$0xff] }
 0x171   : > { %6547 = vmatprep.subr.bf16.mxu0 %v6546_v49 }
 0x173   : > { %5658 = vmatmul.mubr.f32.gmra.mrb[14].mxu0 %v7850_v1  ;;  %v4523_v1 = vld [vmem:[%s7567_s12 + $0x51] sm:$0xff] }
 0x174   : > { %5660 = vmatprep.mubr.f32.mxu0 %v8112_v60  ;;  %6549 = vmatpush3.bf16.msra.mxu0 %v6546_v49  ;;  %v4524_v60 = vld [vmem:[%s7567_s12 + $0x61] sm:$0xff] }
 0x175   : > { %6551 = vmatprep.subr.bf16.mxu0 %v7993_v23 }
 0x177   : > { %5661 = vmatmul.mubr.f32.gmra.mrb[16].mxu0 %v8122_v30  ;;  %v4525_v30 = vld [vmem:[%s7567_s12 + $0x69] sm:$0xff] }
 0x178   : > { %5663 = vmatprep.mubr.f32.mxu0 %v4502_v50 }
 0x17b   : > { %5664 = vmatmul.mubr.f32.gmra.mrb[18].mxu0 %v4503_v58 }
 0x17c   : > { %5698 = vmatprep.mubr.f32.mxu0 %v4520_v59 }
 0x17f   : > { %5699 = vmatmul.mubr.f32.vlgmr.msra.gmra.mrb[0].mxu0 %v4521_v63 }
 0x180   : > { %6553 = vmatpush3.bf16.msra.mxu0 %v7993_v23  ;;  %5701 = vmatprep.mubr.f32.mxu0 %v4522_v0  ;;  %v4527_v23 = vld [vmem:[%s7567_s12 + $0x81] sm:$0xff] }
 0x181   : > { %6555 = vmatprep.subr.bf16.mxu0 %v8017_v10 }
 0x183   : > { %5702 = vmatmul.mubr.f32.gmra.mrb[2].mxu0 %v4523_v1 }
 0x184   : > { %6557 = vmatpush3.bf16.msra.mxu0 %v8017_v10  ;;  %5704 = vmatprep.mubr.f32.mxu0 %v4524_v60  ;;  %v4529_v10 = vld [vmem:[%s7567_s12 + $0x99] sm:$0xff] }
 0x185   : > { %6559 = vmatprep.subr.bf16.mxu0 %v8862_v20 }
 0x187   : > { %5705 = vmatmul.mubr.f32.gmra.mrb[4].mxu0 %v4525_v30 }
 0x188   : > { %5707 = vmatprep.mubr.f32.mxu0 %v4526_v61  ;;  %6561 = vmatpush3.bf16.msra.mxu0 %v8862_v20 }
 0x189   : > { %6563 = vmatprep.subr.bf16.mxu0 %v8863_v12 }
 0x18b   : > { %5708 = vmatmul.mubr.f32.gmra.mrb[6].mxu0 %v4527_v23 }
 0x18c   : > { %5710 = vmatprep.mubr.f32.mxu0 %v4528_v62  ;;  %6565 = vmatpush3.bf16.msra.mxu0 %v8863_v12 }
 0x18d   : > { %6567 = vmatprep.subr.bf16.mxu0 %v8064_v9 }
 0x18f   : > { %5711 = vmatmul.mubr.f32.gmra.mrb[8].mxu0 %v4529_v10 }
 0x190   : > { %5713 = vmatprep.mubr.f32.mxu0 %v4530_v36  ;;  %6569 = vmatpush3.bf16.msra.mxu0 %v8064_v9  ;;  %v4538_v9 = vld [vmem:[%s7567_s12 + $0x109] sm:$0xff] }
 0x191   : > { %6571 = vmatprep.subr.bf16.mxu0 %v8864_v6 }
 0x193   : > { %5714 = vmatmul.mubr.f32.gmra.mrb[10].mxu0 %v4531_v3 }
 0x194   : > { %5716 = vmatprep.mubr.f32.mxu0 %v4532_v5  ;;  %6573 = vmatpush3.bf16.msra.mxu0 %v8864_v6 }
 0x195   : > { %6575 = vmatprep.subr.bf16.mxu0 %v8865_v41 }
 0x197   : > { %5717 = vmatmul.mubr.f32.gmra.mrb[12].mxu0 %v4533_v7 }
 0x198   : > { %5719 = vmatprep.mubr.f32.mxu0 %v4534_v16  ;;  %6577 = vmatpush3.bf16.msra.mxu0 %v8865_v41 }
 0x199   : > { %6579 = vmatprep.subr.bf16.mxu0 %v8115_v24 }
 0x19b   : > { %5720 = vmatmul.mubr.f32.gmra.mrb[14].mxu0 %v4535_v11 }
 0x19c   : > { %5722 = vmatprep.mubr.f32.mxu0 %v8215_v37  ;;  %6581 = vmatpush3.bf16.msra.mxu0 %v8115_v24 }
 0x19f   : > { %5723 = vmatmul.mubr.f32.gmra.mrb[16].mxu0 %v8220_v2 }
 0x1a0   : > { %5725 = vmatprep.mubr.f32.mxu0 %v4538_v9 }
 0x1a3   : > { %5726 = vmatmul.mubr.f32.gmra.mrb[18].mxu0 %v4539_v42 }
 0x1a4   : > { %5760 = vmatprep.mubr.f32.mxu0 %v4556_v18 }
 0x1a7   : > { %5761 = vmatmul.mubr.f32.vlgmr.msra.gmra.mrb[0].mxu0 %v4557_v19 }
 0x1d3   : > { %v5765_v54 = vpop.f32.mrb[0].mxu1 }
 0x1d4   : > { %v2110_v25 = vpop.f32.mrb[1].mxu1 }
 0x1d7   : > { %v5768_v33 = vpop.f32.mrb[2].mxu1 }
 0x1d8   : > { %v2120_v46 = vpop.f32.mrb[3].mxu1 }
 0x1dc   : > { %v5771_v35 = vpop.f32.mrb[4].mxu1 }
 0x1dd   : > { %v2130_v38 = vpop.f32.mrb[5].mxu1 }
 0x1e0   : > { %v5774_v47 = vpop.f32.mrb[6].mxu1 }
 0x1e1   : > { %v2140_v37 = vpop.f32.mrb[7].mxu1 }
 0x1e4   : > { %v8391_v48 = vpop.f32.mrb[8].mxu1 }
 0x1e5   : > { %v8393_v24 = vpop.f32.mrb[9].mxu1 }
 0x1e8   : > { %v8395_v2 = vpop.f32.mrb[10].mxu1 }
 0x1e9   : > { %v8397_v53 = vpop.f32.mrb[11].mxu1 }
 0x1ec   : > { %v8399_v13 = vpop.f32.mrb[12].mxu1 }
 0x1ed   : > { %v8401_v4 = vpop.f32.mrb[13].mxu1 }
 0x1f0   : > { %v8403_v8 = vpop.f32.mrb[14].mxu1 }
 0x1f1   : > { %v8405_v51 = vpop.f32.mrb[15].mxu1 }
 0x1f4   : > { %v8407_v14 = vpop.f32.mrb[16].mxu1 }
 0x1f5   : > { %v8409_v15 = vpop.f32.mrb[17].mxu1 }
 0x256   : > { %v5703_v28 = vpop.f32.mrb[2].mxu0 }
 0x257   : > { %v6886_v39 = vadd.f32 %v5765_v54, %v5703_v28  ;;  %v1888_v44 = vpop.f32.mrb[3].mxu0 }
 0x258   : > { %v6887_v45 = vadd.f32 %v2110_v25, %v1888_v44 }
 0x259   : > { %v2229_v17 = vadd.f32 %v6886_v39, %v8414_v29 }
 0x25a   : > { %v2228_v52 = vadd.f32 %v6887_v45, %v8414_v29  ;;  %v5706_v21 = vpop.f32.mrb[4].mxu0 }
 0x25b   : > { %v2249_v22 = vmax.f32 %v2229_v17, 0.0  ;;  %v6888_v55 = vadd.f32 %v5768_v33, %v5706_v21  ;;  %v1898_v26 = vpop.f32.mrb[5].mxu0 }
 0x25c   : > { %v2248_v27 = vmax.f32 %v2228_v52, 0.0  ;;  %v6889_v56 = vadd.f32 %v2120_v46, %v1898_v26 }
 0x25d   : > { %v2291_v32 = vrot.slane %v2249_v22, 7  ;;  %v2231_v34 = vadd.f32 %v6888_v55, %v8414_v29 }
 0x25e   : > { %v2290_v57 = vrot.slane %v2248_v27, 7  ;;  %v2230_v40 = vadd.f32 %v6889_v56, %v8414_v29  ;;  %v5709_v43 = vpop.f32.mrb[6].mxu0 }
 0x25f   : > { %v2358_v31 = vsel %vm2286_vm0, %v2291_v32, 0.0  ;;  %v2251_v49 = vmax.f32 %v2231_v34, 0.0  ;;  %v6890_v50 = vadd.f32 %v5771_v35, %v5709_v43  ;;  %v1908_v58 = vpop.f32.mrb[7].mxu0 }
 0x260   : > { %2372 = vst [vmem:[#allocation2 + $0x28] sm:$0x3] %v2358_v31  ;;  %v2292_v59 = vsel %vm2286_vm0, %v2290_v57, %v2291_v32  ;;  %v2348_v63 = vsel %vm2286_vm0, 0.0, %v2290_v57  ;;  %v2250_v0 = vmax.f32 %v2230_v40, 0.0  ;;  %v6891_v1 = vadd.f32 %v2130_v38, %v1908_v58 }
 0x261   : > { %2370 = vst [vmem:[#allocation2 + $0x18] sm:$0xff] %v2348_v63  ;;  %2371 = vst [vmem:[#allocation2 + $0x20] sm:$0xff] %v2292_v59  ;;  %v2294_v60 = vrot.slane %v2251_v49, 7  ;;  %v2233_v30 = vadd.f32 %v6890_v50, %v8414_v29 }
 0x262   : > { %v2293_v20 = vrot.slane %v2250_v0, 7  ;;  %v2232_v61 = vadd.f32 %v6891_v1, %v8414_v29  ;;  %v5712_v23 = vpop.f32.mrb[8].mxu0 }
 0x263   : > { %v2359_v62 = vsel %vm2286_vm0, %v2294_v60, 0.0  ;;  %v2253_v12 = vmax.f32 %v2233_v30, 0.0  ;;  %v6892_v10 = vadd.f32 %v5774_v47, %v5712_v23  ;;  %v1918_v36 = vpop.f32.mrb[9].mxu0 }
 0x264   : > { %2375 = vst [vmem:[#allocation2 + $0x40] sm:$0x3] %v2359_v62  ;;  %v2295_v3 = vsel %vm2286_vm0, %v2293_v20, %v2294_v60  ;;  %v2349_v5 = vsel %vm2286_vm0, 0.0, %v2293_v20  ;;  %v2252_v6 = vmax.f32 %v2232_v61, 0.0  ;;  %v6893_v7 = vadd.f32 %v2140_v37, %v1918_v36 }
 0x265   : > { %2373 = vst [vmem:[#allocation2 + $0x30] sm:$0xff] %v2349_v5  ;;  %2374 = vst [vmem:[#allocation2 + $0x38] sm:$0xff] %v2295_v3  ;;  %v2297_v16 = vrot.slane %v2253_v12, 7  ;;  %v2235_v41 = vadd.f32 %v6892_v10, %v8414_v29 }
 0x266   : > { %v2296_v11 = vrot.slane %v2252_v6, 7  ;;  %v2234_v9 = vadd.f32 %v6893_v7, %v8414_v29  ;;  %v5715_v42 = vpop.f32.mrb[10].mxu0 }
 0x267   : > { %v2360_v18 = vsel %vm2286_vm0, %v2297_v16, 0.0  ;;  %v2255_v19 = vmax.f32 %v2235_v41, 0.0  ;;  %v6894_v54 = vadd.f32 %v8391_v48, %v5715_v42  ;;  %v1928_v25 = vpop.f32.mrb[11].mxu0 }
 0x268   : > { %2378 = vst [vmem:[#allocation2 + $0x58] sm:$0x3] %v2360_v18  ;;  %v2298_v33 = vsel %vm2286_vm0, %v2296_v11, %v2297_v16  ;;  %v2350_v46 = vsel %vm2286_vm0, 0.0, %v2296_v11  ;;  %v2254_v35 = vmax.f32 %v2234_v9, 0.0  ;;  %v6895_v38 = vadd.f32 %v8393_v24, %v1928_v25 }
 0x269   : > { %2376 = vst [vmem:[#allocation2 + $0x48] sm:$0xff] %v2350_v46  ;;  %2377 = vst [vmem:[#allocation2 + $0x50] sm:$0xff] %v2298_v33  ;;  %v2300_v47 = vrot.slane %v2255_v19, 7  ;;  %v2237_v37 = vadd.f32 %v6894_v54, %v8414_v29 }
 0x26a   : > { %v2299_v28 = vrot.slane %v2254_v35, 7  ;;  %v2236_v39 = vadd.f32 %v6895_v38, %v8414_v29  ;;  %v5718_v44 = vpop.f32.mrb[12].mxu0 }
 0x26b   : > { %v2361_v48 = vsel %vm2286_vm0, %v2300_v47, 0.0  ;;  %v2257_v45 = vmax.f32 %v2237_v37, 0.0  ;;  %v6896_v17 = vadd.f32 %v8395_v2, %v5718_v44  ;;  %v1938_v52 = vpop.f32.mrb[13].mxu0 }
 0x26c   : > { %2381 = vst [vmem:[#allocation2 + $0x70] sm:$0x3] %v2361_v48  ;;  %v2301_v21 = vsel %vm2286_vm0, %v2299_v28, %v2300_v47  ;;  %v2351_v24 = vsel %vm2286_vm0, 0.0, %v2299_v28  ;;  %v2256_v22 = vmax.f32 %v2236_v39, 0.0  ;;  %v6897_v55 = vadd.f32 %v8397_v53, %v1938_v52 }
 0x26d   : > { %2379 = vst [vmem:[#allocation2 + $0x60] sm:$0xff] %v2351_v24  ;;  %2380 = vst [vmem:[#allocation2 + $0x68] sm:$0xff] %v2301_v21  ;;  %v2303_v26 = vrot.slane %v2257_v45, 7  ;;  %v2239_v27 = vadd.f32 %v6896_v17, %v8414_v29 }
 0x26e   : > { %v2302_v56 = vrot.slane %v2256_v22, 7  ;;  %v2238_v32 = vadd.f32 %v6897_v55, %v8414_v29  ;;  %v5721_v34 = vpop.f32.mrb[14].mxu0 }
 0x26f   : > { %v2362_v2 = vsel %vm2286_vm0, %v2303_v26, 0.0  ;;  %v2259_v57 = vmax.f32 %v2239_v27, 0.0  ;;  %v6898_v40 = vadd.f32 %v8399_v13, %v5721_v34  ;;  %v1948_v43 = vpop.f32.mrb[15].mxu0 }
 0x270   : > { %2384 = vst [vmem:[#allocation2 + $0x88] sm:$0x3] %v2362_v2  ;;  %v2304_v31 = vsel %vm2286_vm0, %v2302_v56, %v2303_v26  ;;  %v2352_v53 = vsel %vm2286_vm0, 0.0, %v2302_v56  ;;  %v2258_v49 = vmax.f32 %v2238_v32, 0.0  ;;  %v6899_v50 = vadd.f32 %v8401_v4, %v1948_v43 }
 0x271   : > { %2382 = vst [vmem:[#allocation2 + $0x78] sm:$0xff] %v2352_v53  ;;  %2383 = vst [vmem:[#allocation2 + $0x80] sm:$0xff] %v2304_v31  ;;  %v2306_v58 = vrot.slane %v2259_v57, 7  ;;  %v2241_v59 = vadd.f32 %v6898_v40, %v8414_v29  ;;  %v7394_v26 = vmov (!%p4593_p8), 0.0  }
 0x272   : > { %v2305_v63 = vrot.slane %v2258_v49, 7  ;;  %v2240_v0 = vadd.f32 %v6899_v50, %v8414_v29  ;;  %v5724_v1 = vpop.f32.mrb[16].mxu0 }
 0x273   : > { %v2363_v13 = vsel %vm2286_vm0, %v2306_v58, 0.0  ;;  %v2261_v60 = vmax.f32 %v2241_v59, 0.0  ;;  %v6900_v30 = vadd.f32 %v8403_v8, %v5724_v1  ;;  %v1958_v20 = vpop.f32.mrb[17].mxu0 }
 0x274   : > { %2387 = vst [vmem:[#allocation2 + $0xa0] sm:$0x3] %v2363_v13  ;;  %v2307_v61 = vsel %vm2286_vm0, %v2305_v63, %v2306_v58  ;;  %v2353_v4 = vsel %vm2286_vm0, 0.0, %v2305_v63  ;;  %v2260_v23 = vmax.f32 %v2240_v0, 0.0  ;;  %v6901_v62 = vadd.f32 %v8405_v51, %v1958_v20 }
 0x275   : > { %2385 = vst [vmem:[#allocation2 + $0x90] sm:$0xff] %v2353_v4  ;;  %2386 = vst [vmem:[#allocation2 + $0x98] sm:$0xff] %v2307_v61  ;;  %v2309_v12 = vrot.slane %v2261_v60, 7  ;;  %v2243_v10 = vadd.f32 %v6900_v30, %v8414_v29 }
 0x276   : > { %v2308_v36 = vrot.slane %v2260_v23, 7  ;;  %v2242_v3 = vadd.f32 %v6901_v62, %v8414_v29  ;;  %v5727_v5 = vpop.f32.mrb[18].mxu0 }
 0x277   : > { %v2364_v8 = vsel %vm2286_vm0, %v2309_v12, 0.0  ;;  %v2263_v6 = vmax.f32 %v2243_v10, 0.0  ;;  %v6902_v7 = vadd.f32 %v8407_v14, %v5727_v5  ;;  %v1968_v16 = vpop.f32.mrb[19].mxu0 }
 0x278   : > { %2390 = vst [vmem:[#allocation2 + $0xb8] sm:$0x3] %v2364_v8  ;;  %v2310_v41 = vsel %vm2286_vm0, %v2308_v36, %v2309_v12  ;;  %v2354_v51 = vsel %vm2286_vm0, 0.0, %v2308_v36  ;;  %v2262_v11 = vmax.f32 %v2242_v3, 0.0  ;;  %v6903_v9 = vadd.f32 %v8409_v15, %v1968_v16 }
 0x279   : > { %2388 = vst [vmem:[#allocation2 + $0xa8] sm:$0xff] %v2354_v51  ;;  %2389 = vst [vmem:[#allocation2 + $0xb0] sm:$0xff] %v2310_v41  ;;  %v2312_v42 = vrot.slane %v2263_v6, 7  ;;  %v2245_v18 = vadd.f32 %v6902_v7, %v8414_v29 }
 0x27a   : > { %v2311_v19 = vrot.slane %v2262_v11, 7  ;;  %v2244_v54 = vadd.f32 %v6903_v9, %v8414_v29  ;;  %v5762_v25 = vpop.f32.mrb[0].mxu0 }
 0x27b   : > { %v2365_v14 = vsel %vm2286_vm0, %v2312_v42, 0.0  ;;  %v2265_v33 = vmax.f32 %v2245_v18, 0.0  ;;  %v2227_v46 = vadd.f32 %v5762_v25, %v8414_v29  ;;  %v2100_v35 = vpop.f32.mrb[1].mxu0 }
 0x27c   : > { %2393 = vst [vmem:[#allocation2 + $0xd0] sm:$0x3] %v2365_v14  ;;  %v2313_v38 = vsel %vm2286_vm0, %v2311_v19, %v2312_v42  ;;  %v2355_v15 = vsel %vm2286_vm0, 0.0, %v2311_v19  ;;  %v2264_v47 = vmax.f32 %v2244_v54, 0.0  ;;  %v2226_v37 = vadd.f32 %v8414_v29, %v2100_v35 }
 0x27d   : > { %2391 = vst [vmem:[#allocation2 + $0xc0] sm:$0xff] %v2355_v15  ;;  %2392 = vst [vmem:[#allocation2 + $0xc8] sm:$0xff] %v2313_v38  ;;  %v2315_v28 = vrot.slane %v2265_v33, 7  ;;  %v2247_v39 = vmax.f32 %v2227_v46, 0.0  ;;  %2400 = sbr.rel (%p4593_p8) target bundleno = 646 (0x286), region = 48 }
 0x27e   : > { %v2314_v44 = vrot.slane %v2264_v47, 7  ;;  %v2246_v48 = vmax.f32 %v2226_v37, 0.0 }
 0x27f   : > { %v2366_v45 = vsel %vm2286_vm0, %v2315_v28, 0.0  ;;  %v2288_v17 = vrot.slane %v2247_v39, 7 }
 0x280   : > { %2396 = vst [vmem:[#allocation2 + $0xe8] sm:$0x3] %v2366_v45  ;;  %v2316_v52 = vsel %vm2286_vm0, %v2314_v44, %v2315_v28  ;;  %v2356_v21 = vsel %vm2286_vm0, 0.0, %v2314_v44  ;;  %v2287_v24 = vrot.slane %v2246_v48, 7 }
 0x281   : > { %2394 = vst [vmem:[#allocation2 + $0xd8] sm:$0xff] %v2356_v21  ;;  %2395 = vst [vmem:[#allocation2 + $0xe0] sm:$0xff] %v2316_v52  ;;  %v2357_v29 = vsel %vm2286_vm0, %v2288_v17, 0.0 }
 0x282   : > { %2369 = vst [vmem:[#allocation2 + $0x10] sm:$0x3] %v2357_v29  ;;  %v2289_v22 = vsel %vm2286_vm0, %v2287_v24, %v2288_v17  ;;  %v2347_v55 = vsel %vm2286_vm0, 0.0, %v2287_v24 }
 0x283   : > { %2367 = vst [vmem:[#allocation2] sm:$0xff] %v2347_v55  ;;  %2368 = vst [vmem:[#allocation2 + $0x8] sm:$0xff] %v2289_v22 }
 0x284   : > { %2401 = vst [vmem:[#allocation2] sm:$0xff] %v7394_v26  ;;  %2402 = vst [vmem:[#allocation2 + $0x8] sm:$0xff] %v7394_v26 }
 0x285   : > { %2403 = vst [vmem:[#allocation2 + $0x10] sm:$0x3] %v7394_v26 }
 0x286 PF: > { %p4594_p10 = scmp.ne.s32.totalorder %s7373_s21, 1 }
 0x287   : > { %v7395_v27 = vmov (!%p4594_p10), 0.0  }
 0x288   : > { %2407 = sbr.rel (%p4594_p10) target bundleno = 655 (0x28f), region = 52  ;;  %2409 = vst [vmem:[#allocation2 + $0xd8] sm:$0xff] (!%p4594_p10), %v7395_v27  ;;  %2410 = vst [vmem:[#allocation2 + $0xe0] sm:$0xff] (!%p4594_p10), %v7395_v27 }
 0x289   : > { %2411 = vst [vmem:[#allocation2 + $0xe8] sm:$0x3] (!%p4594_p10), %v7395_v27 }
 0x28f PF: > { %v2461_v56 = vld [vmem:[#allocation3 + $0x80] sm:$0xff]  ;;  %v2462_v32 = vld [vmem:[#allocation3 + $0x88] sm:$0xff]  ;;  %v2463_v34 = vld [vmem:[#allocation3 + $0x90] sm:$0xff]  ;;  %s4619_s6 = sshll.u32 %s7373_s21, 4  ;;  %s4615_s9 = sshll.u32 %s7377_s22, 5 }
 0x290   : > { %v6582_v2 = vpack.c.bf16 %v2462_v32, %v2461_v56  ;;  %v2464_v57 = vld [vmem:[#allocation3 + $0x98] sm:$0xff]  ;;  %v2465_v43 = vld [vmem:[#allocation3 + $0xa0] sm:$0xff]  ;;  %v2466_v31 = vld [vmem:[#allocation3 + $0xa8] sm:$0xff]  ;;  %s4228_s15 = sadd.s32 %s4619_s6, %s4615_s9  ;;  %s4231_s22 = sshll.u32 %s8477_s30, 4  ;;  %s8768_s22 = int_to_ptr.vmem [resolvable:$true] %s4231_s22 }
 0x291   : > { %v6586_v40 = vpack.c.bf16 %v2464_v57, %v2463_v34  ;;  %v6590_v53 = vpack.c.bf16 %v2466_v31, %v2465_v43  ;;  %v2444_v49 = vld [vmem:[#allocation2 + $0x1] sm:$0xff]  ;;  %v2469_v63 = vld [vmem:[#allocation3 + $0xc0] sm:$0xff]  ;;  %v2470_v0 = vld [vmem:[#allocation3 + $0xc8] sm:$0xff]  ;;  %s4616_s21 = sshll.u32 %s4228_s15, 7  ;;  %s7291_s28 = scalar_lea.vmem %s8768_s22, 2048 }
 0x292   : > { %6583 = vmatprep.subr.bf16.mxu1 %v6582_v2  ;;  %v2467_v50 = vld [vmem:[#allocation3 + $0xb0] sm:$0xff]  ;;  %v2468_v58 = vld [vmem:[#allocation3 + $0xb8] sm:$0xff]  ;;  %5822 = vmatprep.mubr.f32.mxu1 %v2444_v49  ;;  %v6598_v1 = vpack.c.bf16 %v2470_v0, %v2469_v63  ;;  %v2473_v20 = vld [vmem:[#allocation3 + $0xe0] sm:$0xff]  ;;  %s8766_s17 = scalar_lea.hbm %s8831_s5, %s4616_s21  ;;  %p7292_p12 = scmp.ne.s32.totalorder %s8768_s22, %s7291_s28 }
 0x293   : > { %6585 = vmatpush3.bf16.msra.mxu1 %v6582_v2  ;;  %v6594_v59 = vpack.c.bf16 %v2468_v58, %v2467_v50  ;;  %v2471_v13 = vld [vmem:[#allocation3 + $0xd0] sm:$0xff]  ;;  %v2472_v60 = vld [vmem:[#allocation3 + $0xd8] sm:$0xff]  ;;  %v2474_v61 = vld [vmem:[#allocation3 + $0xe8] sm:$0xff]  ;;  %p8867_p0 = scmp.ne.s32.totalorder %s8849_s7, 0  ;;  %s7396_s29 = smov [#allocation6]  }
 0x294   : > { %6587 = vmatprep.subr.bf16.mxu1 %v6586_v40  ;;  %v6602_v30 = vpack.c.bf16 %v2472_v60, %v2471_v13  ;;  %v6606_v4 = vpack.c.bf16 %v2474_v61, %v2473_v20  ;;  %v2475_v23 = vld [vmem:[#allocation3 + $0xf0] sm:$0xff]  ;;  %v2476_v62 = vld [vmem:[#allocation3 + $0xf8] sm:$0xff]  ;;  %v2428_v10 = vld [vmem:[#allocation3] sm:$0xff]  ;;  %s7295_s11 = sshll.u32 %s7396_s29, 4  ;;  %s7296_s11 = int_to_ptr.vmem [resolvable:$false] %s7295_s11 }
 0x295   : > { %v6610_v12 = vpack.c.bf16 %v2476_v62, %v2475_v23  ;;  %v2429_v36 = vld [vmem:[#allocation3 + $0x8] sm:$0xff]  ;;  %v2430_v5 = vld [vmem:[#allocation3 + $0x10] sm:$0xff]  ;;  %v2431_v8 = vld [vmem:[#allocation3 + $0x18] sm:$0xff]  ;;  %p7293_p2 = pnand %p7292_p12, %p8867_p0  ;;  %s7297_s26 = scalar_lea.vmem %s7296_s11, 4096 }
 0x296   : > { %v6614_v3 = vpack.c.bf16 %v2429_v36, %v2428_v10  ;;  %v2445_v6 = vld [vmem:[#allocation2 + $0x9] sm:$0xff]  ;;  %v8481_v7 = vld [vmem:[#allocation2 + $0x19] sm:$0xff]  ;;  %v6618_v16 = vpack.c.bf16 %v2431_v8, %v2430_v5  ;;  %v8484_v11 = vld [vmem:[#allocation2 + $0x21] sm:$0xff]  ;;  %p7298_p6 = scmp.lt.s32.totalorder %s8768_s22, %s7296_s11  ;;  %p7299_p7 = scmp.lt.s32.totalorder %s7297_s26, %s7291_s28 }
 0x297   : > { %6589 = vmatpush3.bf16.msra.mxu1 %v6586_v40  ;;  %v2432_v41 = vld [vmem:[#allocation3 + $0x20] sm:$0xff]  ;;  %v2433_v51 = vld [vmem:[#allocation3 + $0x28] sm:$0xff]  ;;  %v2434_v18 = vld [vmem:[#allocation3 + $0x30] sm:$0xff]  ;;  %p7294_p5 = pneg %p7293_p2 }
 0x298   : > { %6591 = vmatprep.subr.bf16.mxu1 %v6590_v53  ;;  %v8486_v9 = vld [vmem:[#allocation2 + $0x31] sm:$0xff]  ;;  %v6622_v42 = vpack.c.bf16 %v2433_v51, %v2432_v41  ;;  %v2435_v19 = vld [vmem:[#allocation3 + $0x38] sm:$0xff]  ;;  %v8490_v54 = vld [vmem:[#allocation2 + $0x39] sm:$0xff]  ;;  %p7300_p9 = por %p7299_p7, %p7298_p6 }
 0x299   : > { %v8492_v25 = vld [vmem:[#allocation2 + $0x49] sm:$0xff]  ;;  %v6626_v14 = vpack.c.bf16 %v2435_v19, %v2434_v18  ;;  %v2437_v46 = vld [vmem:[#allocation3 + $0x48] sm:$0xff]  ;;  %v8498_v38 = vld [vmem:[#allocation2 + $0x61] sm:$0xff] }
 0x29a   : > { %v2436_v33 = vld [vmem:[#allocation3 + $0x40] sm:$0xff]  ;;  %v2438_v47 = vld [vmem:[#allocation3 + $0x50] sm:$0xff]  ;;  %v2439_v37 = vld [vmem:[#allocation3 + $0x58] sm:$0xff]  ;;  %p7301_p11 = pnand %p7300_p9, %p7294_p5 }
 0x29b   : > { %6593 = vmatpush3.bf16.msra.mxu1 %v6590_v53  ;;  %v8496_v35 = vld [vmem:[#allocation2 + $0x51] sm:$0xff]  ;;  %v6630_v15 = vpack.c.bf16 %v2437_v46, %v2436_v33  ;;  %v8502_v28 = vld [vmem:[#allocation2 + $0x69] sm:$0xff]  ;;  %v8504_v39 = vld [vmem:[#allocation2 + $0x79] sm:$0xff]  ;;  %v6634_v44 = vpack.c.bf16 %v2439_v37, %v2438_v47 }
 0x29c   : > { %6595 = vmatprep.subr.bf16.mxu1 %v6594_v59  ;;  %v2440_v48 = vld [vmem:[#allocation3 + $0x60] sm:$0xff]  ;;  %v2441_v45 = vld [vmem:[#allocation3 + $0x68] sm:$0xff]  ;;  %v8508_v17 = vld [vmem:[#allocation2 + $0x81] sm:$0xff] }
 0x29d   : > { %v8510_v52 = vld [vmem:[#allocation2 + $0x91] sm:$0xff]  ;;  %v6638_v21 = vpack.c.bf16 %v2441_v45, %v2440_v48  ;;  %v2442_v24 = vld [vmem:[#allocation3 + $0x70] sm:$0xff]  ;;  %v2443_v29 = vld [vmem:[#allocation3 + $0x78] sm:$0xff] }
 0x29e   : > { %v8514_v22 = vld [vmem:[#allocation2 + $0x99] sm:$0xff]  ;;  %v8516_v55 = vld [vmem:[#allocation2 + $0xa9] sm:$0xff]  ;;  %v6642_v26 = vpack.c.bf16 %v2443_v29, %v2442_v24  ;;  %v8520_v32 = vld [vmem:[#allocation2 + $0xb1] sm:$0xff] }
 0x29f   : > { %6597 = vmatpush3.bf16.msra.mxu1 %v6594_v59  ;;  %v2784_v27 = vld [vmem:[#allocation3 + $0x100] sm:$0xff]  ;;  %v2785_v56 = vld [vmem:[#allocation3 + $0x108] sm:$0xff]  ;;  %v2412_v34 = vld [vmem:[#allocation2] sm:$0xff] }
 0x2a0   : > { %6599 = vmatprep.subr.bf16.mxu1 %v6598_v1  ;;  %v6646_v2 = vpack.c.bf16 %v2785_v56, %v2784_v27  ;;  %v2786_v57 = vld [vmem:[#allocation3 + $0x110] sm:$0xff]  ;;  %v2787_v40 = vld [vmem:[#allocation3 + $0x118] sm:$0xff]  ;;  %v8523_v31 = vld [vmem:[#allocation2 + $0x18] sm:$0xff] }
 0x2a1   : > { %v2413_v43 = vld [vmem:[#allocation2 + $0x8] sm:$0xff]  ;;  %v6650_v53 = vpack.c.bf16 %v2787_v40, %v2786_v57  ;;  %v2788_v49 = vld [vmem:[#allocation3 + $0x120] sm:$0xff]  ;;  %v2789_v50 = vld [vmem:[#allocation3 + $0x128] sm:$0xff] }
 0x2a2   : > { %v8526_v58 = vld [vmem:[#allocation2 + $0x20] sm:$0xff]  ;;  %v8528_v59 = vld [vmem:[#allocation2 + $0x30] sm:$0xff]  ;;  %v6654_v63 = vpack.c.bf16 %v2789_v50, %v2788_v49  ;;  %v8532_v13 = vld [vmem:[#allocation2 + $0x38] sm:$0xff] }
 0x2a3   : > { %6601 = vmatpush3.bf16.msra.mxu1 %v6598_v1  ;;  %v2790_v0 = vld [vmem:[#allocation3 + $0x130] sm:$0xff]  ;;  %v2791_v1 = vld [vmem:[#allocation3 + $0x138] sm:$0xff]  ;;  %v2792_v20 = vld [vmem:[#allocation3 + $0x140] sm:$0xff] }
 0x2a4   : > { %6603 = vmatprep.subr.bf16.mxu1 %v6602_v30  ;;  %v8534_v60 = vld [vmem:[#allocation2 + $0x48] sm:$0xff]  ;;  %v2793_v61 = vld [vmem:[#allocation3 + $0x148] sm:$0xff]  ;;  %v8540_v23 = vld [vmem:[#allocation2 + $0x60] sm:$0xff] }
 0x2a5   : > { %v6662_v62 = vpack.c.bf16 %v2793_v61, %v2792_v20  ;;  %v2795_v10 = vld [vmem:[#allocation3 + $0x158] sm:$0xff]  ;;  %v2796_v8 = vld [vmem:[#allocation3 + $0x160] sm:$0xff]  ;;  %v8556_v19 = vld [vmem:[#allocation2 + $0x98] sm:$0xff] }
 0x2a6   : > { %v8544_v36 = vld [vmem:[#allocation2 + $0x68] sm:$0xff]  ;;  %v8552_v41 = vld [vmem:[#allocation2 + $0x90] sm:$0xff]  ;;  %v2981_v48 = vld [vmem:[#allocation3 + $0x190] sm:$0xff] }
 0x2a7   : > { %6605 = vmatpush3.bf16.msra.mxu1 %v6602_v30  ;;  %v6658_v30 = vpack.c.bf16 %v2791_v1, %v2790_v0  ;;  %v2799_v18 = vld [vmem:[#allocation3 + $0x178] sm:$0xff]  ;;  %v2979_v46 = vld [vmem:[#allocation3 + $0x180] sm:$0xff]  ;;  %v8565_v24 = vld [vmem:[#allocation2 + $0x1a] sm:$0xff] }
 0x2a8   : > { %6607 = vmatprep.subr.bf16.mxu1 %v6606_v4  ;;  %v8562_v47 = vld [vmem:[#allocation2 + $0xb0] sm:$0xff]  ;;  %v2767_v37 = vld [vmem:[#allocation2 + $0x2] sm:$0xff]  ;;  %v2984_v27 = vld [vmem:[#allocation3 + $0x1a8] sm:$0xff] }
 0x2a9   : > { %v2982_v45 = vld [vmem:[#allocation3 + $0x198] sm:$0xff]  ;;  %v2985_v57 = vld [vmem:[#allocation3 + $0x1b0] sm:$0xff]  ;;  %v2987_v50 = vld [vmem:[#allocation3 + $0x1c0] sm:$0xff] }
 0x2aa   : > { %v6682_v29 = vpack.c.bf16 %v2982_v45, %v2981_v48  ;;  %v8568_v56 = vld [vmem:[#allocation2 + $0x22] sm:$0xff]  ;;  %v8580_v0 = vld [vmem:[#allocation2 + $0x52] sm:$0xff] }
 0x2ab   : > { %6609 = vmatpush3.bf16.msra.mxu1 %v6606_v4  ;;  %v8538_v4 = vld [vmem:[#allocation2 + $0x50] sm:$0xff]  ;;  %v2986_v40 = vld [vmem:[#allocation3 + $0x1b8] sm:$0xff]  ;;  %v2989_v20 = vld [vmem:[#allocation3 + $0x1d0] sm:$0xff] }
 0x2ac   : > { %6611 = vmatprep.subr.bf16.mxu1 %v6610_v12  ;;  %v6690_v49 = vpack.c.bf16 %v2986_v40, %v2985_v57  ;;  %v8582_v1 = vld [vmem:[#allocation2 + $0x62] sm:$0xff]  ;;  %v3174_v48 = vld [vmem:[#allocation3 + $0x208] sm:$0xff] }
 0x2ad   : > { %v2990_v61 = vld [vmem:[#allocation3 + $0x1d8] sm:$0xff]  ;;  %v8604_v45 = vld [vmem:[#allocation2 + $0xb2] sm:$0xff] }
 0x2ae   : > { %v3178_v57 = vld [vmem:[#allocation3 + $0x228] sm:$0xff] }
 0x2af   : > { %6613 = vmatpush3.bf16.msra.mxu1 %v6610_v12  ;;  %v2794_v12 = vld [vmem:[#allocation3 + $0x150] sm:$0xff] }
 0x2b0   : > { %6615 = vmatprep.subr.bf16.mxu1 %v6614_v3  ;;  %v6666_v5 = vpack.c.bf16 %v2795_v10, %v2794_v12  ;;  %v8588_v12 = vld [vmem:[#allocation2 + $0x7a] sm:$0xff]  ;;  %v6698_v10 = vpack.c.bf16 %v2990_v61, %v2989_v20  ;;  %v3184_v61 = vld [vmem:[#allocation3 + $0x258] sm:$0xff] }
 0x2b1   : > { %v3183_v20 = vld [vmem:[#allocation3 + $0x250] sm:$0xff] }
 0x2b2   : > { %5823 = vmatmul.mubr.f32.vlgmr.msra.gmra.mrb[18].mxu1 %v2445_v6  ;;  %v2797_v6 = vld [vmem:[#allocation3 + $0x168] sm:$0xff] }
 0x2b3   : > { %6617 = vmatpush3.bf16.msra.mxu1 %v6614_v3  ;;  %5825 = vmatprep.mubr.f32.mxu1 %v8481_v7  ;;  %v8546_v3 = vld [vmem:[#allocation2 + $0x78] sm:$0xff]  ;;  %v6670_v51 = vpack.c.bf16 %v2797_v6, %v2796_v8  ;;  %v8592_v6 = vld [vmem:[#allocation2 + $0x82] sm:$0xff] }
 0x2b4   : > { %6619 = vmatprep.subr.bf16.mxu1 %v6618_v16  ;;  %v2992_v8 = vld [vmem:[#allocation3 + $0x1e8] sm:$0xff] }
 0x2b6   : > { %5826 = vmatmul.mubr.f32.gmra.mrb[20].mxu1 %v8484_v11 }
 0x2b7   : > { %6621 = vmatpush3.bf16.msra.mxu1 %v6618_v16  ;;  %5828 = vmatprep.mubr.f32.mxu1 %v8486_v9  ;;  %v8550_v16 = vld [vmem:[#allocation2 + $0x80] sm:$0xff] }
 0x2b8   : > { %6623 = vmatprep.subr.bf16.mxu1 %v6622_v42 }
 0x2ba   : > { %5829 = vmatmul.mubr.f32.gmra.mrb[22].mxu1 %v8490_v54 }
 0x2bb   : > { %6625 = vmatpush3.bf16.msra.mxu1 %v6622_v42  ;;  %5831 = vmatprep.mubr.f32.mxu1 %v8492_v25  ;;  %v2798_v42 = vld [vmem:[#allocation3 + $0x170] sm:$0xff] }
 0x2bc   : > { %6627 = vmatprep.subr.bf16.mxu1 %v6626_v14  ;;  %v6674_v33 = vpack.c.bf16 %v2799_v18, %v2798_v42  ;;  %v2993_v18 = vld [vmem:[#allocation3 + $0x1f0] sm:$0xff] }
 0x2be   : > { %5832 = vmatmul.mubr.f32.gmra.mrb[24].mxu1 %v8496_v35 }
 0x2bf   : > { %6629 = vmatpush3.bf16.msra.mxu1 %v6626_v14  ;;  %5834 = vmatprep.mubr.f32.mxu1 %v8498_v38  ;;  %v8558_v14 = vld [vmem:[#allocation2 + $0xa8] sm:$0xff] }
 0x2c0   : > { %6631 = vmatprep.subr.bf16.mxu1 %v6630_v15 }
 0x2c2   : > { %5835 = vmatmul.mubr.f32.gmra.mrb[26].mxu1 %v8502_v28 }
 0x2c3   : > { %6633 = vmatpush3.bf16.msra.mxu1 %v6630_v15  ;;  %5837 = vmatprep.mubr.f32.mxu1 %v8504_v39  ;;  %v2980_v15 = vld [vmem:[#allocation3 + $0x188] sm:$0xff] }
 0x2c4   : > { %6635 = vmatprep.subr.bf16.mxu1 %v6634_v44 }
 0x2c6   : > { %5838 = vmatmul.mubr.f32.gmra.mrb[28].mxu1 %v8508_v17 }
 0x2c7   : > { %6637 = vmatpush3.bf16.msra.mxu1 %v6634_v44  ;;  %5840 = vmatprep.mubr.f32.mxu1 %v8510_v52  ;;  %v6678_v44 = vpack.c.bf16 %v2980_v15, %v2979_v46  ;;  %v8598_v46 = vld [vmem:[#allocation2 + $0x9a] sm:$0xff]  ;;  %v8600_v15 = vld [vmem:[#allocation2 + $0xaa] sm:$0xff] }
 0x2c8   : > { %6639 = vmatprep.subr.bf16.mxu1 %v6638_v21 }
 0x2ca   : > { %5841 = vmatmul.mubr.f32.gmra.mrb[30].mxu1 %v8514_v22 }
 0x2cb   : > { %6641 = vmatpush3.bf16.msra.mxu1 %v6638_v21  ;;  %5843 = vmatprep.mubr.f32.mxu1 %v8516_v55  ;;  %v2768_v21 = vld [vmem:[#allocation2 + $0xa] sm:$0xff] }
 0x2cc   : > { %6643 = vmatprep.subr.bf16.mxu1 %v6642_v26 }
 0x2ce   : > { %5844 = vmatmul.mubr.f32.gmra.mrb[32].mxu1 %v8520_v32 }
 0x2cf   : > { %6645 = vmatpush3.bf16.msra.mxu1 %v6642_v26  ;;  %5878 = vmatprep.mubr.f32.mxu1 %v2412_v34  ;;  %v2983_v26 = vld [vmem:[#allocation3 + $0x1a0] sm:$0xff] }
 0x2d0   : > { %6647 = vmatprep.subr.bf16.mxu1 %v6646_v2  ;;  %v8570_v34 = vld [vmem:[#allocation2 + $0x32] sm:$0xff] }
 0x2d2   : > { %5879 = vmatmul.mubr.f32.vlgmr.msra.gmra.mrb[18].mxu1 %v2413_v43  ;;  %v8574_v43 = vld [vmem:[#allocation2 + $0x3a] sm:$0xff] }
 0x2d3   : > { %6649 = vmatpush3.bf16.msra.mxu1 %v6646_v2  ;;  %5881 = vmatprep.mubr.f32.mxu1 %v8523_v31  ;;  %v6686_v2 = vpack.c.bf16 %v2984_v27, %v2983_v26  ;;  %v3176_v26 = vld [vmem:[#allocation3 + $0x218] sm:$0xff] }
 0x2d4   : > { %6651 = vmatprep.subr.bf16.mxu1 %v6650_v53 }
 0x2d6   : > { %5882 = vmatmul.mubr.f32.gmra.mrb[20].mxu1 %v8526_v58 }
 0x2d7   : > { %6653 = vmatpush3.bf16.msra.mxu1 %v6650_v53  ;;  %5884 = vmatprep.mubr.f32.mxu1 %v8528_v59  ;;  %v8576_v53 = vld [vmem:[#allocation2 + $0x4a] sm:$0xff] }
 0x2d8   : > { %6655 = vmatprep.subr.bf16.mxu1 %v6654_v63 }
 0x2da   : > { %5885 = vmatmul.mubr.f32.gmra.mrb[22].mxu1 %v8532_v13 }
 0x2db   : > { %6657 = vmatpush3.bf16.msra.mxu1 %v6654_v63  ;;  %5887 = vmatprep.mubr.f32.mxu1 %v8534_v60  ;;  %v2988_v63 = vld [vmem:[#allocation3 + $0x1c8] sm:$0xff] }
 0x2dc   : > { %6659 = vmatprep.subr.bf16.mxu1 %v6658_v30 }
 0x2de   : > { %5888 = vmatmul.mubr.f32.gmra.mrb[24].mxu1 %v8538_v4 }
 0x2df   : > { %6661 = vmatpush3.bf16.msra.mxu1 %v6658_v30  ;;  %5890 = vmatprep.mubr.f32.mxu1 %v8540_v23  ;;  %v6694_v30 = vpack.c.bf16 %v2988_v63, %v2987_v50  ;;  %v3180_v50 = vld [vmem:[#allocation3 + $0x238] sm:$0xff]  ;;  %v3181_v63 = vld [vmem:[#allocation3 + $0x240] sm:$0xff] }
 0x2e0   : > { %6663 = vmatprep.subr.bf16.mxu1 %v6662_v62 }
 0x2e2   : > { %5891 = vmatmul.mubr.f32.gmra.mrb[26].mxu1 %v8544_v36 }
 0x2e3   : > { %6665 = vmatpush3.bf16.msra.mxu1 %v6662_v62  ;;  %5893 = vmatprep.mubr.f32.mxu1 %v8546_v3  ;;  %v8586_v62 = vld [vmem:[#allocation2 + $0x6a] sm:$0xff] }
 0x2e4   : > { %6667 = vmatprep.subr.bf16.mxu1 %v6666_v5 }
 0x2e6   : > { %5894 = vmatmul.mubr.f32.gmra.mrb[28].mxu1 %v8550_v16 }
 0x2e7   : > { %6669 = vmatpush3.bf16.msra.mxu1 %v6666_v5  ;;  %5896 = vmatprep.mubr.f32.mxu1 %v8552_v41  ;;  %v2991_v5 = vld [vmem:[#allocation3 + $0x1e0] sm:$0xff] }
 0x2e8   : > { %6671 = vmatprep.subr.bf16.mxu1 %v6670_v51  ;;  %v6702_v42 = vpack.c.bf16 %v2992_v8, %v2991_v5  ;;  %v3185_v5 = vld [vmem:[#allocation3 + $0x260] sm:$0xff]  ;;  %v3186_v8 = vld [vmem:[#allocation3 + $0x268] sm:$0xff] }
 0x2ea   : > { %5897 = vmatmul.mubr.f32.gmra.mrb[30].mxu1 %v8556_v19 }
 0x2eb   : > { %6673 = vmatpush3.bf16.msra.mxu1 %v6670_v51  ;;  %5899 = vmatprep.mubr.f32.mxu1 %v8558_v14  ;;  %v8594_v51 = vld [vmem:[#allocation2 + $0x92] sm:$0xff] }
 0x2ec   : > { %6675 = vmatprep.subr.bf16.mxu1 %v6674_v33 }
 0x2ee   : > { %5900 = vmatmul.mubr.f32.gmra.mrb[32].mxu1 %v8562_v47 }
 0x2ef   : > { %6677 = vmatpush3.bf16.msra.mxu1 %v6674_v33  ;;  %5934 = vmatprep.mubr.f32.mxu1 %v2767_v37  ;;  %v2994_v33 = vld [vmem:[#allocation3 + $0x1f8] sm:$0xff] }
 0x2f0   : > { %6679 = vmatprep.subr.bf16.mxu1 %v6678_v44  ;;  %v6706_v37 = vpack.c.bf16 %v2994_v33, %v2993_v18  ;;  %v3187_v18 = vld [vmem:[#allocation3 + $0x270] sm:$0xff]  ;;  %v3188_v33 = vld [vmem:[#allocation3 + $0x278] sm:$0xff] }
 0x2f2   : > { %5935 = vmatmul.mubr.f32.vlgmr.msra.gmra.mrb[18].mxu1 %v2768_v21 }
 0x2f3   : > { %6681 = vmatpush3.bf16.msra.mxu1 %v6678_v44  ;;  %5937 = vmatprep.mubr.f32.mxu1 %v8565_v24  ;;  %v3173_v44 = vld [vmem:[#allocation3 + $0x200] sm:$0xff] }
 0x2f4   : > { %6683 = vmatprep.subr.bf16.mxu1 %v6682_v29  ;;  %v6710_v21 = vpack.c.bf16 %v3174_v48, %v3173_v44  ;;  %v6738_v44 = vpack.c.bf16 %v3188_v33, %v3187_v18  ;;  %v3367_v48 = vld [vmem:[#allocation3 + $0x280] sm:$0xff]  ;;  %v3381_v18 = vld [vmem:[#allocation3 + $0x2f0] sm:$0xff]  ;;  %v3382_v33 = vld [vmem:[#allocation3 + $0x2f8] sm:$0xff] }
 0x2f6   : > { %5938 = vmatmul.mubr.f32.gmra.mrb[20].mxu1 %v8568_v56 }
 0x2f7   : > { %6685 = vmatpush3.bf16.msra.mxu1 %v6682_v29  ;;  %5940 = vmatprep.mubr.f32.mxu1 %v8570_v34  ;;  %v3175_v29 = vld [vmem:[#allocation3 + $0x210] sm:$0xff] }
 0x2f8   : > { %6687 = vmatprep.subr.bf16.mxu1 %v6686_v2  ;;  %v6714_v27 = vpack.c.bf16 %v3176_v26, %v3175_v29  ;;  %v8624_v29 = vld [vmem:[#allocation2 + $0xc8] sm:$0xff] }
 0x2fa   : > { %5941 = vmatmul.mubr.f32.gmra.mrb[22].mxu1 %v8574_v43 }
 0x2fb   : > { %6689 = vmatpush3.bf16.msra.mxu1 %v6686_v2  ;;  %5943 = vmatprep.mubr.f32.mxu1 %v8576_v53  ;;  %v3177_v2 = vld [vmem:[#allocation3 + $0x220] sm:$0xff] }
 0x2fc   : > { %6691 = vmatprep.subr.bf16.mxu1 %v6690_v49  ;;  %v6718_v40 = vpack.c.bf16 %v3178_v57, %v3177_v2  ;;  %v3370_v2 = vld [vmem:[#allocation3 + $0x298] sm:$0xff] }
 0x2fe   : > { %5944 = vmatmul.mubr.f32.gmra.mrb[24].mxu1 %v8580_v0 }
 0x2ff   : > { %6693 = vmatpush3.bf16.msra.mxu1 %v6690_v49  ;;  %5946 = vmatprep.mubr.f32.mxu1 %v8582_v1  ;;  %v3179_v49 = vld [vmem:[#allocation3 + $0x230] sm:$0xff] }
 0x300   : > { %6695 = vmatprep.subr.bf16.mxu1 %v6694_v30 }
 0x302   : > { %5947 = vmatmul.mubr.f32.gmra.mrb[26].mxu1 %v8586_v62 }
 0x303   : > { %6697 = vmatpush3.bf16.msra.mxu1 %v6694_v30  ;;  %5949 = vmatprep.mubr.f32.mxu1 %v8588_v12  ;;  %v3182_v30 = vld [vmem:[#allocation3 + $0x248] sm:$0xff] }
 0x304   : > { %6699 = vmatprep.subr.bf16.mxu1 %v6698_v10 }
 0x306   : > { %5950 = vmatmul.mubr.f32.gmra.mrb[28].mxu1 %v8592_v6 }
 0x307   : > { %6701 = vmatpush3.bf16.msra.mxu1 %v6698_v10  ;;  %5952 = vmatprep.mubr.f32.mxu1 %v8594_v51  ;;  %v6730_v10 = vpack.c.bf16 %v3184_v61, %v3183_v20  ;;  %v3377_v20 = vld [vmem:[#allocation3 + $0x2d0] sm:$0xff]  ;;  %v3378_v61 = vld [vmem:[#allocation3 + $0x2d8] sm:$0xff] }
 0x308   : > { %6703 = vmatprep.subr.bf16.mxu1 %v6702_v42 }
 0x30a   : > { %5953 = vmatmul.mubr.f32.gmra.mrb[30].mxu1 %v8598_v46 }
 0x30b   : > { %6705 = vmatpush3.bf16.msra.mxu1 %v6702_v42  ;;  %5955 = vmatprep.mubr.f32.mxu1 %v8600_v15  ;;  %v6734_v42 = vpack.c.bf16 %v3186_v8, %v3185_v5  ;;  %v3379_v5 = vld [vmem:[#allocation3 + $0x2e0] sm:$0xff]  ;;  %v3380_v8 = vld [vmem:[#allocation3 + $0x2e8] sm:$0xff] }
 0x30c   : > { %6707 = vmatprep.subr.bf16.mxu1 %v6706_v37 }
 0x30e   : > { %5956 = vmatmul.mubr.f32.gmra.mrb[32].mxu1 %v8604_v45 }
 0x30f   : > { %6709 = vmatpush3.bf16.msra.mxu1 %v6706_v37  ;;  %5990 = vmatprep.mubr.f32.mxu1 %v8523_v31  ;;  %v6722_v31 = vpack.c.bf16 %v3180_v50, %v3179_v49  ;;  %v8620_v37 = vld [vmem:[#allocation2 + $0xc0] sm:$0xff]  ;;  %v3372_v49 = vld [vmem:[#allocation3 + $0x2a8] sm:$0xff] }
 0x310   : > { %6711 = vmatprep.subr.bf16.mxu1 %v6710_v21 }
 0x312   : > { %5991 = vmatmul.mubr.f32.vlgmr.msra.gmra.mrb[18].mxu1 %v8526_v58  ;;  %v6726_v58 = vpack.c.bf16 %v3182_v30, %v3181_v63  ;;  %v3374_v63 = vld [vmem:[#allocation3 + $0x2b8] sm:$0xff]  ;;  %v3375_v30 = vld [vmem:[#allocation3 + $0x2c0] sm:$0xff] }
 0x313   : > { %6713 = vmatpush3.bf16.msra.mxu1 %v6710_v21  ;;  %5993 = vmatprep.mubr.f32.mxu1 %v8528_v59  ;;  %v3368_v21 = vld [vmem:[#allocation3 + $0x288] sm:$0xff] }
 0x314   : > { %6715 = vmatprep.subr.bf16.mxu1 %v6714_v27  ;;  %v6742_v26 = vpack.c.bf16 %v3368_v21, %v3367_v48  ;;  %v6770_v48 = vpack.c.bf16 %v3382_v33, %v3381_v18  ;;  %v3562_v21 = vld [vmem:[#allocation3 + $0x300] sm:$0xff]  ;;  %v3576_v18 = vld [vmem:[#allocation3 + $0x370] sm:$0xff]  ;;  %v3577_v33 = vld [vmem:[#allocation3 + $0x378] sm:$0xff] }
 0x316   : > { %5994 = vmatmul.mubr.f32.gmra.mrb[20].mxu1 %v8532_v13 }
 0x317   : > { %6717 = vmatpush3.bf16.msra.mxu1 %v6714_v27  ;;  %5996 = vmatprep.mubr.f32.mxu1 %v8534_v60  ;;  %v3369_v27 = vld [vmem:[#allocation3 + $0x290] sm:$0xff] }
 0x318   : > { %6719 = vmatprep.subr.bf16.mxu1 %v6718_v40  ;;  %v6746_v57 = vpack.c.bf16 %v3370_v2, %v3369_v27  ;;  %v8644_v27 = vld [vmem:[#allocation2 + $0xc9] sm:$0xff] }
 0x31a   : > { %5997 = vmatmul.mubr.f32.gmra.mrb[22].mxu1 %v8538_v4 }
 0x31b   : > { %6721 = vmatpush3.bf16.msra.mxu1 %v6718_v40  ;;  %5999 = vmatprep.mubr.f32.mxu1 %v8540_v23  ;;  %v3371_v40 = vld [vmem:[#allocation3 + $0x2a0] sm:$0xff] }
 0x31c   : > { %6723 = vmatprep.subr.bf16.mxu1 %v6722_v31  ;;  %v6750_v50 = vpack.c.bf16 %v3372_v49, %v3371_v40  ;;  %v3565_v40 = vld [vmem:[#allocation3 + $0x318] sm:$0xff] }
 0x31e   : > { %6000 = vmatmul.mubr.f32.gmra.mrb[24].mxu1 %v8544_v36 }
 0x31f   : > { %6725 = vmatpush3.bf16.msra.mxu1 %v6722_v31  ;;  %6002 = vmatprep.mubr.f32.mxu1 %v8546_v3  ;;  %v3373_v31 = vld [vmem:[#allocation3 + $0x2b0] sm:$0xff] }
 0x320   : > { %6727 = vmatprep.subr.bf16.mxu1 %v6726_v58 }
 0x322   : > { %6003 = vmatmul.mubr.f32.gmra.mrb[26].mxu1 %v8550_v16 }
 0x323   : > { %6729 = vmatpush3.bf16.msra.mxu1 %v6726_v58  ;;  %6005 = vmatprep.mubr.f32.mxu1 %v8552_v41  ;;  %v3376_v58 = vld [vmem:[#allocation3 + $0x2c8] sm:$0xff] }
 0x324   : > { %6731 = vmatprep.subr.bf16.mxu1 %v6730_v10 }
 0x326   : > { %6006 = vmatmul.mubr.f32.gmra.mrb[28].mxu1 %v8556_v19 }
 0x327   : > { %6733 = vmatpush3.bf16.msra.mxu1 %v6730_v10  ;;  %6008 = vmatprep.mubr.f32.mxu1 %v8558_v14  ;;  %v6762_v10 = vpack.c.bf16 %v3378_v61, %v3377_v20  ;;  %v3572_v20 = vld [vmem:[#allocation3 + $0x350] sm:$0xff]  ;;  %v3573_v61 = vld [vmem:[#allocation3 + $0x358] sm:$0xff] }
 0x328   : > { %6735 = vmatprep.subr.bf16.mxu1 %v6734_v42 }
 0x32a   : > { %6009 = vmatmul.mubr.f32.gmra.mrb[30].mxu1 %v8562_v47 }
 0x32b   : > { %6737 = vmatpush3.bf16.msra.mxu1 %v6734_v42  ;;  %6011 = vmatprep.mubr.f32.mxu1 %v8620_v37  ;;  %v6766_v42 = vpack.c.bf16 %v3380_v8, %v3379_v5  ;;  %v3574_v5 = vld [vmem:[#allocation3 + $0x360] sm:$0xff]  ;;  %v3575_v8 = vld [vmem:[#allocation3 + $0x368] sm:$0xff] }
 0x32c   : > { %6739 = vmatprep.subr.bf16.mxu1 %v6738_v44 }
 0x32e   : > { %6012 = vmatmul.mubr.f32.gmra.mrb[32].mxu1 %v8624_v29 }
 0x32f   : > { %6741 = vmatpush3.bf16.msra.mxu1 %v6738_v44  ;;  %6046 = vmatprep.mubr.f32.mxu1 %v8481_v7  ;;  %v6754_v7 = vpack.c.bf16 %v3374_v63, %v3373_v31  ;;  %v8640_v44 = vld [vmem:[#allocation2 + $0xc1] sm:$0xff]  ;;  %v3567_v31 = vld [vmem:[#allocation3 + $0x328] sm:$0xff] }
 0x330   : > { %6743 = vmatprep.subr.bf16.mxu1 %v6742_v26 }
 0x332   : > { %6047 = vmatmul.mubr.f32.vlgmr.msra.gmra.mrb[18].mxu1 %v8484_v11  ;;  %v6758_v11 = vpack.c.bf16 %v3376_v58, %v3375_v30  ;;  %v3569_v30 = vld [vmem:[#allocation3 + $0x338] sm:$0xff]  ;;  %v3570_v58 = vld [vmem:[#allocation3 + $0x340] sm:$0xff] }
 0x333   : > { %6745 = vmatpush3.bf16.msra.mxu1 %v6742_v26  ;;  %6049 = vmatprep.mubr.f32.mxu1 %v8486_v9  ;;  %v3563_v26 = vld [vmem:[#allocation3 + $0x308] sm:$0xff] }
 0x334   : > { %6747 = vmatprep.subr.bf16.mxu1 %v6746_v57  ;;  %v6774_v2 = vpack.c.bf16 %v3563_v26, %v3562_v21  ;;  %v6802_v21 = vpack.c.bf16 %v3577_v33, %v3576_v18  ;;  %v3756_v26 = vld [vmem:[#allocation3 + $0x380] sm:$0xff]  ;;  %v3953_v18 = vld [vmem:[#allocation3 + $0x418] sm:$0xff]  ;;  %v3955_v33 = vld [vmem:[#allocation3 + $0x428] sm:$0xff] }
 0x336   : > { %6050 = vmatmul.mubr.f32.gmra.mrb[20].mxu1 %v8490_v54 }
 0x337   : > { %6749 = vmatpush3.bf16.msra.mxu1 %v6746_v57  ;;  %6052 = vmatprep.mubr.f32.mxu1 %v8492_v25  ;;  %v3564_v57 = vld [vmem:[#allocation3 + $0x310] sm:$0xff] }
 0x338   : > { %6751 = vmatprep.subr.bf16.mxu1 %v6750_v50  ;;  %v6778_v49 = vpack.c.bf16 %v3565_v40, %v3564_v57  ;;  %v8664_v57 = vld [vmem:[#allocation2 + $0xca] sm:$0xff] }
 0x33a   : > { %6053 = vmatmul.mubr.f32.gmra.mrb[22].mxu1 %v8496_v35 }
 0x33b   : > { %6753 = vmatpush3.bf16.msra.mxu1 %v6750_v50  ;;  %6055 = vmatprep.mubr.f32.mxu1 %v8498_v38  ;;  %v3566_v50 = vld [vmem:[#allocation3 + $0x320] sm:$0xff] }
 0x33c   : > { %6755 = vmatprep.subr.bf16.mxu1 %v6754_v7  ;;  %v6782_v63 = vpack.c.bf16 %v3567_v31, %v3566_v50  ;;  %v3759_v50 = vld [vmem:[#allocation3 + $0x398] sm:$0xff] }
 0x33e   : > { %6056 = vmatmul.mubr.f32.gmra.mrb[24].mxu1 %v8502_v28 }
 0x33f   : > { %6757 = vmatpush3.bf16.msra.mxu1 %v6754_v7  ;;  %6058 = vmatprep.mubr.f32.mxu1 %v8504_v39  ;;  %v3568_v7 = vld [vmem:[#allocation3 + $0x330] sm:$0xff] }
 0x340   : > { %6759 = vmatprep.subr.bf16.mxu1 %v6758_v11 }
 0x342   : > { %6059 = vmatmul.mubr.f32.gmra.mrb[26].mxu1 %v8508_v17 }
 0x343   : > { %6761 = vmatpush3.bf16.msra.mxu1 %v6758_v11  ;;  %6061 = vmatprep.mubr.f32.mxu1 %v8510_v52  ;;  %v3571_v11 = vld [vmem:[#allocation3 + $0x348] sm:$0xff] }
 0x344   : > { %6763 = vmatprep.subr.bf16.mxu1 %v6762_v10 }
 0x346   : > { %6062 = vmatmul.mubr.f32.gmra.mrb[28].mxu1 %v8514_v22 }
 0x347   : > { %6765 = vmatpush3.bf16.msra.mxu1 %v6762_v10  ;;  %6064 = vmatprep.mubr.f32.mxu1 %v8516_v55  ;;  %v6794_v10 = vpack.c.bf16 %v3573_v61, %v3572_v20  ;;  %v3767_v20 = vld [vmem:[#allocation3 + $0x3d8] sm:$0xff]  ;;  %v3769_v61 = vld [vmem:[#allocation3 + $0x3e8] sm:$0xff] }
 0x348   : > { %6767 = vmatprep.subr.bf16.mxu1 %v6766_v42 }
 0x34a   : > { %6065 = vmatmul.mubr.f32.gmra.mrb[30].mxu1 %v8520_v32 }
 0x34b   : > { %6769 = vmatpush3.bf16.msra.mxu1 %v6766_v42  ;;  %6067 = vmatprep.mubr.f32.mxu1 %v8640_v44  ;;  %v6798_v42 = vpack.c.bf16 %v3575_v8, %v3574_v5  ;;  %v3950_v5 = vld [vmem:[#allocation3 + $0x400] sm:$0xff]  ;;  %v3951_v8 = vld [vmem:[#allocation3 + $0x408] sm:$0xff] }
 0x34c   : > { %6771 = vmatprep.subr.bf16.mxu1 %v6770_v48 }
 0x34e   : > { %6068 = vmatmul.mubr.f32.gmra.mrb[32].mxu1 %v8644_v27 }
 0x34f   : > { %6773 = vmatpush3.bf16.msra.mxu1 %v6770_v48  ;;  %6102 = vmatprep.mubr.f32.mxu1 %v8565_v24  ;;  %v6786_v24 = vpack.c.bf16 %v3569_v30, %v3568_v7  ;;  %v8660_v48 = vld [vmem:[#allocation2 + $0xc2] sm:$0xff]  ;;  %v3761_v7 = vld [vmem:[#allocation3 + $0x3a8] sm:$0xff] }
 0x350   : > { %6775 = vmatprep.subr.bf16.mxu1 %v6774_v2 }
 0x352   : > { %6103 = vmatmul.mubr.f32.vlgmr.msra.gmra.mrb[18].mxu1 %v8568_v56  ;;  %v6790_v56 = vpack.c.bf16 %v3571_v11, %v3570_v58  ;;  %v3763_v58 = vld [vmem:[#allocation3 + $0x3b8] sm:$0xff]  ;;  %v3764_v11 = vld [vmem:[#allocation3 + $0x3c0] sm:$0xff] }
 0x353   : > { %6777 = vmatpush3.bf16.msra.mxu1 %v6774_v2  ;;  %6105 = vmatprep.mubr.f32.mxu1 %v8570_v34  ;;  %v3757_v2 = vld [vmem:[#allocation3 + $0x388] sm:$0xff] }
 0x354   : > { %6779 = vmatprep.subr.bf16.mxu1 %v6778_v49  ;;  %v6806_v40 = vpack.c.bf16 %v3757_v2, %v3756_v26  ;;  %v3957_v26 = vld [vmem:[#allocation3 + $0x438] sm:$0xff]  ;;  %v3958_v2 = vld [vmem:[#allocation3 + $0x440] sm:$0xff] }
 0x356   : > { %6106 = vmatmul.mubr.f32.gmra.mrb[20].mxu1 %v8574_v43 }
 0x357   : > { %6781 = vmatpush3.bf16.msra.mxu1 %v6778_v49  ;;  %6108 = vmatprep.mubr.f32.mxu1 %v8576_v53  ;;  %v3758_v49 = vld [vmem:[#allocation3 + $0x390] sm:$0xff] }
 0x358   : > { %6783 = vmatprep.subr.bf16.mxu1 %v6782_v63  ;;  %v6810_v31 = vpack.c.bf16 %v3759_v50, %v3758_v49  ;;  %v3961_v49 = vld [vmem:[#allocation3 + $0x458] sm:$0xff]  ;;  %v3963_v50 = vld [vmem:[#allocation3 + $0x468] sm:$0xff] }
 0x35a   : > { %6109 = vmatmul.mubr.f32.gmra.mrb[22].mxu1 %v8580_v0 }
 0x35b   : > { %6785 = vmatpush3.bf16.msra.mxu1 %v6782_v63  ;;  %6111 = vmatprep.mubr.f32.mxu1 %v8582_v1  ;;  %v3760_v63 = vld [vmem:[#allocation3 + $0x3a0] sm:$0xff] }
 0x35c   : > { %6787 = vmatprep.subr.bf16.mxu1 %v6786_v24  ;;  %v6814_v30 = vpack.c.bf16 %v3761_v7, %v3760_v63 }
 0x35e   : > { %6112 = vmatmul.mubr.f32.gmra.mrb[24].mxu1 %v8586_v62 }
 0x35f   : > { %6789 = vmatpush3.bf16.msra.mxu1 %v6786_v24  ;;  %6114 = vmatprep.mubr.f32.mxu1 %v8588_v12  ;;  %v3762_v24 = vld [vmem:[#allocation3 + $0x3b0] sm:$0xff] }
 0x360   : > { %6791 = vmatprep.subr.bf16.mxu1 %v6790_v56 }
 0x362   : > { %6115 = vmatmul.mubr.f32.gmra.mrb[26].mxu1 %v8592_v6 }
 0x363   : > { %6793 = vmatpush3.bf16.msra.mxu1 %v6790_v56  ;;  %6117 = vmatprep.mubr.f32.mxu1 %v8594_v51  ;;  %v3765_v56 = vld [vmem:[#allocation3 + $0x3c8] sm:$0xff] }
 0x364   : > { %6795 = vmatprep.subr.bf16.mxu1 %v6794_v10 }
 0x366   : > { %6118 = vmatmul.mubr.f32.gmra.mrb[28].mxu1 %v8598_v46 }
 0x367   : > { %6797 = vmatpush3.bf16.msra.mxu1 %v6794_v10  ;;  %6120 = vmatprep.mubr.f32.mxu1 %v8600_v15  ;;  %v3771_v10 = vld [vmem:[#allocation3 + $0x3f8] sm:$0xff] }
 0x368   : > { %6799 = vmatprep.subr.bf16.mxu1 %v6798_v42 }
 0x36a   : > { %6121 = vmatmul.mubr.f32.gmra.mrb[30].mxu1 %v8604_v45 }
 0x36b   : > { %6801 = vmatpush3.bf16.msra.mxu1 %v6798_v42  ;;  %6123 = vmatprep.mubr.f32.mxu1 %v8660_v48  ;;  %v3952_v42 = vld [vmem:[#allocation3 + $0x410] sm:$0xff] }
 0x36c   : > { %6803 = vmatprep.subr.bf16.mxu1 %v6802_v21 }
 0x36e   : > { %6124 = vmatmul.mubr.f32.gmra.mrb[32].mxu1 %v8664_v57 }
 0x36f   : > { %6805 = vmatpush3.bf16.msra.mxu1 %v6802_v21  ;;  %6158 = vmatprep.mubr.f32.mxu1 %v8528_v59  ;;  %v6818_v59 = vpack.c.bf16 %v3763_v58, %v3762_v24  ;;  %v3956_v21 = vld [vmem:[#allocation3 + $0x430] sm:$0xff]  ;;  %v4600_v58 = vld [vmem:[%s7567_s12 + $0x69] sm:$0xff] }
 0x370   : > { %6807 = vmatprep.subr.bf16.mxu1 %v6806_v40 }
 0x372   : > { %6159 = vmatmul.mubr.f32.vlgmr.msra.gmra.mrb[18].mxu1 %v8532_v13  ;;  %v6822_v13 = vpack.c.bf16 %v3765_v56, %v3764_v11 }
 0x373   : > { %6809 = vmatpush3.bf16.msra.mxu1 %v6806_v40  ;;  %6161 = vmatprep.mubr.f32.mxu1 %v8534_v60  ;;  %v3766_v60 = vld [vmem:[#allocation3 + $0x3d0] sm:$0xff]  ;;  %v3959_v40 = vld [vmem:[#allocation3 + $0x448] sm:$0xff] }
 0x374   : > { %6811 = vmatprep.subr.bf16.mxu1 %v6810_v31 }
 0x376   : > { %6162 = vmatmul.mubr.f32.gmra.mrb[20].mxu1 %v8538_v4  ;;  %v6826_v4 = vpack.c.bf16 %v3767_v20, %v3766_v60 }
 0x377   : > { %6813 = vmatpush3.bf16.msra.mxu1 %v6810_v31  ;;  %6164 = vmatprep.mubr.f32.mxu1 %v8540_v23  ;;  %v3768_v23 = vld [vmem:[#allocation3 + $0x3e0] sm:$0xff]  ;;  %v3965_v31 = vld [vmem:[#allocation3 + $0x478] sm:$0xff] }
 0x378   : > { %6815 = vmatprep.subr.bf16.mxu1 %v6814_v30 }
 0x37a   : > { %6165 = vmatmul.mubr.f32.gmra.mrb[22].mxu1 %v8544_v36  ;;  %v6830_v36 = vpack.c.bf16 %v3769_v61, %v3768_v23 }
 0x37b   : > { %6817 = vmatpush3.bf16.msra.mxu1 %v6814_v30  ;;  %6167 = vmatprep.mubr.f32.mxu1 %v8546_v3  ;;  %v3770_v3 = vld [vmem:[#allocation3 + $0x3f0] sm:$0xff] }
 0x37c   : > { %6819 = vmatprep.subr.bf16.mxu1 %v6818_v59 }
 0x37e   : > { %6168 = vmatmul.mubr.f32.gmra.mrb[24].mxu1 %v8550_v16  ;;  %v3559_v16 = vld [vmem:[#allocation2 + $0xd8] sm:$0xff] }
 0x37f   : > { %6821 = vmatpush3.bf16.msra.mxu1 %v6818_v59  ;;  %6170 = vmatprep.mubr.f32.mxu1 %v8552_v41  ;;  %v6834_v41 = vpack.c.bf16 %v3771_v10, %v3770_v3 }
 0x380   : > { %6823 = vmatprep.subr.bf16.mxu1 %v6822_v13 }
 0x382   : > { %6171 = vmatmul.mubr.f32.gmra.mrb[26].mxu1 %v8556_v19  ;;  %v3560_v19 = vld [vmem:[#allocation2 + $0xe0] sm:$0xff] }
 0x383   : > { %6825 = vmatpush3.bf16.msra.mxu1 %v6822_v13  ;;  %6173 = vmatprep.mubr.f32.mxu1 %v8558_v14  ;;  %v6838_v14 = vpack.c.bf16 %v3951_v8, %v3950_v5  ;;  %v4599_v13 = vld [vmem:[%s7567_s12 + $0x61] sm:$0xff] }
 0x384   : > { %6827 = vmatprep.subr.bf16.mxu1 %v6826_v4 }
 0x386   : > { %6174 = vmatmul.mubr.f32.gmra.mrb[28].mxu1 %v8562_v47  ;;  %v6842_v47 = vpack.c.bf16 %v3953_v18, %v3952_v42  ;;  %v4604_v18 = vld [vmem:[%s7567_s12 + $0x99] sm:$0xff] }
 0x387   : > { %6829 = vmatpush3.bf16.msra.mxu1 %v6826_v4  ;;  %6176 = vmatprep.mubr.f32.mxu1 %v8620_v37  ;;  %v3954_v37 = vld [vmem:[#allocation3 + $0x420] sm:$0xff] }
 0x388   : > { %6831 = vmatprep.subr.bf16.mxu1 %v6830_v36 }
 0x38a   : > { %6177 = vmatmul.mubr.f32.gmra.mrb[30].mxu1 %v8624_v29  ;;  %v6846_v29 = vpack.c.bf16 %v3955_v33, %v3954_v37 }
 0x38b   : > { %6833 = vmatpush3.bf16.msra.mxu1 %v6830_v36  ;;  %6179 = vmatprep.mubr.f32.mxu1 %v3559_v16  ;;  %v4602_v36 = vld [vmem:[%s7567_s12 + $0x81] sm:$0xff] }
 0x38c   : > { %6835 = vmatprep.subr.bf16.mxu1 %v6834_v41 }
 0x38e   : > { %6180 = vmatmul.mubr.f32.gmra.mrb[32].mxu1 %v3560_v19 }
 0x38f   : > { %6837 = vmatpush3.bf16.msra.mxu1 %v6834_v41  ;;  %6214 = vmatprep.mubr.f32.mxu1 %v8486_v9  ;;  %v6850_v9 = vpack.c.bf16 %v3957_v26, %v3956_v21  ;;  %v4601_v41 = vld [vmem:[%s7567_s12 + $0x79] sm:$0xff] }
 0x390   : > { %6839 = vmatprep.subr.bf16.mxu1 %v6838_v14 }
 0x392   : > { %6215 = vmatmul.mubr.f32.vlgmr.msra.gmra.mrb[18].mxu1 %v8490_v54  ;;  %v6854_v54 = vpack.c.bf16 %v3959_v40, %v3958_v2 }
 0x393   : > { %6841 = vmatpush3.bf16.msra.mxu1 %v6838_v14  ;;  %6217 = vmatprep.mubr.f32.mxu1 %v8492_v25  ;;  %v3960_v25 = vld [vmem:[#allocation3 + $0x450] sm:$0xff] }
 0x394   : > { %6843 = vmatprep.subr.bf16.mxu1 %v6842_v47 }
 0x396   : > { %6218 = vmatmul.mubr.f32.gmra.mrb[20].mxu1 %v8496_v35  ;;  %v6858_v35 = vpack.c.bf16 %v3961_v49, %v3960_v25 }
 0x397   : > { %6845 = vmatpush3.bf16.msra.mxu1 %v6842_v47  ;;  %6220 = vmatprep.mubr.f32.mxu1 %v8498_v38  ;;  %v3962_v38 = vld [vmem:[#allocation3 + $0x460] sm:$0xff] }
 0x398   : > { %6847 = vmatprep.subr.bf16.mxu1 %v6846_v29 }
 0x39a   : > { %6221 = vmatmul.mubr.f32.gmra.mrb[22].mxu1 %v8502_v28  ;;  %v6862_v28 = vpack.c.bf16 %v3963_v50, %v3962_v38  ;;  %v4605_v38 = vld [vmem:[%s7567_s12 + $0xa9] sm:$0xff] }
 0x39b   : > { %6849 = vmatpush3.bf16.msra.mxu1 %v6846_v29  ;;  %6223 = vmatprep.mubr.f32.mxu1 %v8504_v39  ;;  %v3964_v39 = vld [vmem:[#allocation3 + $0x470] sm:$0xff]  ;;  %v4603_v29 = vld [vmem:[%s7567_s12 + $0x91] sm:$0xff] }
 0x39c   : > { %6851 = vmatprep.subr.bf16.mxu1 %v6850_v9 }
 0x39e   : > { %6224 = vmatmul.mubr.f32.gmra.mrb[24].mxu1 %v8508_v17  ;;  %v3753_v17 = vld [vmem:[#allocation2 + $0xd9] sm:$0xff] }
 0x39f   : > { %6853 = vmatpush3.bf16.msra.mxu1 %v6850_v9  ;;  %6226 = vmatprep.mubr.f32.mxu1 %v8510_v52  ;;  %v6866_v52 = vpack.c.bf16 %v3965_v31, %v3964_v39 }
 0x3a0   : > { %6855 = vmatprep.subr.bf16.mxu1 %v6854_v54 }
 0x3a2   : > { %6227 = vmatmul.mubr.f32.gmra.mrb[26].mxu1 %v8514_v22  ;;  %v3754_v22 = vld [vmem:[#allocation2 + $0xe1] sm:$0xff] }
 0x3a3   : > { %6857 = vmatpush3.bf16.msra.mxu1 %v6854_v54  ;;  %6229 = vmatprep.mubr.f32.mxu1 %v8516_v55  ;;  %v3947_v55 = vld [vmem:[#allocation2 + $0xda] sm:$0xff]  ;;  %v4606_v54 = vld [vmem:[%s7567_s12 + $0xb1] sm:$0xff] }
 0x3a4   : > { %6859 = vmatprep.subr.bf16.mxu1 %v6858_v35 }
 0x3a6   : > { %6230 = vmatmul.mubr.f32.gmra.mrb[28].mxu1 %v8520_v32  ;;  %v3948_v32 = vld [vmem:[#allocation2 + $0xe2] sm:$0xff] }
 0x3a7   : > { %6861 = vmatpush3.bf16.msra.mxu1 %v6858_v35  ;;  %6232 = vmatprep.mubr.f32.mxu1 %v8640_v44 }
 0x3a8   : > { %6863 = vmatprep.subr.bf16.mxu1 %v6862_v28 }
 0x3aa   : > { %6233 = vmatmul.mubr.f32.gmra.mrb[30].mxu1 %v8644_v27 }
 0x3ab   : > { %6865 = vmatpush3.bf16.msra.mxu1 %v6862_v28  ;;  %6235 = vmatprep.mubr.f32.mxu1 %v3753_v17 }
 0x3ac   : > { %6867 = vmatprep.subr.bf16.mxu1 %v6866_v52 }
 0x3ae   : > { %6236 = vmatmul.mubr.f32.gmra.mrb[32].mxu1 %v3754_v22 }
 0x3af   : > { %6869 = vmatpush3.bf16.msra.mxu1 %v6866_v52  ;;  %6270 = vmatprep.mubr.f32.mxu1 %v8570_v34  ;;  %v8712_v34 = vld [vmem:[%s8830_s4] ss:$0 sm:$0xff]  ;;  %v4608_v52 = vld [vmem:[%s7567_s12 + $0xc9] sm:$0xff] }
 0x3b2   : > { %6271 = vmatmul.mubr.f32.vlgmr.msra.gmra.mrb[18].mxu1 %v8574_v43 }
 0x3b3   : > { %6273 = vmatprep.mubr.f32.mxu1 %v8576_v53  ;;  %v4596_v53 = vld [vmem:[%s7567_s12 + $0x39] sm:$0xff] }
 0x3b6   : > { %6274 = vmatmul.mubr.f32.gmra.mrb[20].mxu1 %v8580_v0 }
 0x3b7   : > { %6276 = vmatprep.mubr.f32.mxu1 %v8582_v1 }
 0x3ba   : > { %6277 = vmatmul.mubr.f32.gmra.mrb[22].mxu1 %v8586_v62  ;;  %v4595_v62 = vld [vmem:[%s7567_s12 + $0x31] sm:$0xff] }
 0x3bb   : > { %6279 = vmatprep.mubr.f32.mxu1 %v8588_v12 }
 0x3be   : > { %6280 = vmatmul.mubr.f32.gmra.mrb[24].mxu1 %v8592_v6 }
 0x3bf   : > { %6282 = vmatprep.mubr.f32.mxu1 %v8594_v51 }
 0x3c2   : > { %6283 = vmatmul.mubr.f32.gmra.mrb[26].mxu1 %v8598_v46 }
 0x3c3   : > { %6285 = vmatprep.mubr.f32.mxu1 %v8600_v15  ;;  %v4598_v15 = vld [vmem:[%s7567_s12 + $0x51] sm:$0xff] }
 0x3c6   : > { %6286 = vmatmul.mubr.f32.gmra.mrb[28].mxu1 %v8604_v45 }
 0x3c7   : > { %6288 = vmatprep.mubr.f32.mxu1 %v8660_v48  ;;  %v4597_v48 = vld [vmem:[%s7567_s12 + $0x49] sm:$0xff] }
 0x3ca   : > { %6289 = vmatmul.mubr.f32.gmra.mrb[30].mxu1 %v8664_v57 }
 0x3cb   : > { %6291 = vmatprep.mubr.f32.mxu1 %v3947_v55 }
 0x3ce   : > { %6292 = vmatmul.mubr.f32.gmra.mrb[32].mxu1 %v3948_v32 }
 0x485   : > { %v6272_v43 = vpop.f32.mrb[18].mxu1 }
 0x486   : > { %v4151_v0 = vadd.f32 %v6272_v43, %v8712_v34  ;;  %v4032_v1 = vpop.f32.mrb[19].mxu1  ;;  %v4607_v43 = vld [vmem:[%s7567_s12 + $0xc1] sm:$0xff] }
 0x487   : > { %v4150_v12 = vadd.f32 %v8712_v34, %v4032_v1 }
 0x488   : > { %v4167_v6 = vadd.f32 %v4596_v53, %v4151_v0 }
 0x489   : > { %v4166_v51 = vadd.f32 %v4595_v62, %v4150_v12  ;;  %v6275_v46 = vpop.f32.mrb[20].mxu1 }
 0x48a   : > { %v4183_v45 = vmax.f32 %v4167_v6, 0.0  ;;  %v4153_v44 = vadd.f32 %v6275_v46, %v8712_v34  ;;  %v4042_v27 = vpop.f32.mrb[21].mxu1  ;;  %v4610_v6 = vld [vmem:[%s7567_s12 + $0xe1] sm:$0xff] }
 0x48b   : > { %v4182_v57 = vmax.f32 %v4166_v51, 0.0  ;;  %v4152_v63 = vadd.f32 %v8712_v34, %v4042_v27 }
 0x48c   : > { %4199 = vst [vmem:[%s8477_s30 + $0x8] sm:$0xff] %v4183_v45  ;;  %v4169_v7 = vadd.f32 %v4598_v15, %v4153_v44  ;;  %v4609_v45 = vld [vmem:[%s7567_s12 + $0xd9] sm:$0xff]  ;;  %s8866_s12 = sand.u32 1, %s7365_s19  }
 0x48d   : > { %4198 = vst [vmem:[%s8477_s30] sm:$0xff] %v4182_v57  ;;  %v4168_v30 = vadd.f32 %v4597_v48, %v4152_v63  ;;  %v6278_v24 = vpop.f32.mrb[22].mxu1  ;;  %s8774_s2 = scalar_lea.sflag [#allocation5], %s8866_s12 }
 0x48e   : > { %v4185_v59 = vmax.f32 %v4169_v7, 0.0  ;;  %v4155_v11 = vadd.f32 %v6278_v24, %v8712_v34  ;;  %v4052_v56 = vpop.f32.mrb[23].mxu1 }
 0x48f   : > { %v4184_v60 = vmax.f32 %v4168_v30, 0.0  ;;  %v4154_v20 = vadd.f32 %v8712_v34, %v4052_v56 }
 0x490   : > { %4201 = vst [vmem:[%s8477_s30 + $0x18] sm:$0xff] %v4185_v59  ;;  %v4171_v4 = vadd.f32 %v4600_v58, %v4155_v11 }
 0x491   : > { %4200 = vst [vmem:[%s8477_s30 + $0x10] sm:$0xff] %v4184_v60  ;;  %v4170_v23 = vadd.f32 %v4599_v13, %v4154_v20  ;;  %v6281_v61 = vpop.f32.mrb[24].mxu1 }
 0x492   : > { %v4187_v3 = vmax.f32 %v4171_v4, 0.0  ;;  %v4157_v10 = vadd.f32 %v6281_v61, %v8712_v34  ;;  %v4062_v16 = vpop.f32.mrb[25].mxu1 }
 0x493   : > { %v4186_v5 = vmax.f32 %v4170_v23, 0.0  ;;  %v4156_v8 = vadd.f32 %v8712_v34, %v4062_v16 }
 0x494   : > { %4203 = vst [vmem:[%s8477_s30 + $0x28] sm:$0xff] %v4187_v3  ;;  %v4173_v19 = vadd.f32 %v4602_v36, %v4157_v10 }
 0x495   : > { %4202 = vst [vmem:[%s8477_s30 + $0x20] sm:$0xff] %v4186_v5  ;;  %v4172_v14 = vadd.f32 %v4601_v41, %v4156_v8  ;;  %v6284_v42 = vpop.f32.mrb[26].mxu1 }
 0x496   : > { %v4189_v47 = vmax.f32 %v4173_v19, 0.0  ;;  %v4159_v37 = vadd.f32 %v6284_v42, %v8712_v34  ;;  %v4072_v33 = vpop.f32.mrb[27].mxu1 }
 0x497   : > { %v4188_v21 = vmax.f32 %v4172_v14, 0.0  ;;  %v4158_v26 = vadd.f32 %v8712_v34, %v4072_v33 }
 0x498   : > { %4205 = vst [vmem:[%s8477_s30 + $0x38] sm:$0xff] %v4189_v47  ;;  %v4175_v9 = vadd.f32 %v4604_v18, %v4159_v37 }
 0x499   : > { %4204 = vst [vmem:[%s8477_s30 + $0x30] sm:$0xff] %v4188_v21  ;;  %v4174_v2 = vadd.f32 %v4603_v29, %v4158_v26  ;;  %v6287_v40 = vpop.f32.mrb[28].mxu1 }
 0x49a   : > { %v4191_v25 = vmax.f32 %v4175_v9, 0.0  ;;  %v4161_v49 = vadd.f32 %v6287_v40, %v8712_v34  ;;  %v4082_v35 = vpop.f32.mrb[29].mxu1 }
 0x49b   : > { %v4190_v50 = vmax.f32 %v4174_v2, 0.0  ;;  %v4160_v28 = vadd.f32 %v8712_v34, %v4082_v35 }
 0x49c   : > { %4207 = vst [vmem:[%s8477_s30 + $0x48] sm:$0xff] %v4191_v25  ;;  %v4177_v39 = vadd.f32 %v4606_v54, %v4161_v49 }
 0x49d   : > { %4206 = vst [vmem:[%s8477_s30 + $0x40] sm:$0xff] %v4190_v50  ;;  %v4176_v31 = vadd.f32 %v4605_v38, %v4160_v28  ;;  %v6290_v17 = vpop.f32.mrb[30].mxu1 }
 0x49e   : > { %v4193_v22 = vmax.f32 %v4177_v39, 0.0  ;;  %v4163_v55 = vadd.f32 %v6290_v17, %v8712_v34  ;;  %v4092_v32 = vpop.f32.mrb[31].mxu1 }
 0x49f   : > { %v4192_v53 = vmax.f32 %v4176_v31, 0.0  ;;  %v4162_v0 = vadd.f32 %v8712_v34, %v4092_v32 }
 0x4a0   : > { %4209 = vst [vmem:[%s8477_s30 + $0x58] sm:$0xff] %v4193_v22  ;;  %v4179_v1 = vadd.f32 %v4608_v52, %v4163_v55 }
 0x4a1   : > { %4208 = vst [vmem:[%s8477_s30 + $0x50] sm:$0xff] %v4192_v53  ;;  %v4178_v62 = vadd.f32 %v4607_v43, %v4162_v0  ;;  %v6293_v12 = vpop.f32.mrb[32].mxu1 }
 0x4a2   : > { %v4195_v51 = vmax.f32 %v4179_v1, 0.0  ;;  %v4165_v46 = vadd.f32 %v6293_v12, %v8712_v34  ;;  %v4102_v15 = vpop.f32.mrb[33].mxu1 }
 0x4a3   : > { %v4194_v44 = vmax.f32 %v4178_v62, 0.0  ;;  %v4164_v27 = vadd.f32 %v8712_v34, %v4102_v15 }
 0x4a4   : > { %4211 = vst [vmem:[%s8477_s30 + $0x68] sm:$0xff] %v4195_v51  ;;  %v4181_v48 = vadd.f32 %v4610_v6, %v4165_v46 }
 0x4a5   : > { %4210 = vst [vmem:[%s8477_s30 + $0x60] sm:$0xff] %v4194_v44  ;;  %v4180_v57 = vadd.f32 %v4609_v45, %v4164_v27 }
 0x4a6   : > { %v4197_v63 = vmax.f32 %v4181_v48, 0.0 }
 0x4a7   : > { %v4196_v7 = vmax.f32 %v4180_v57, 0.0 }
 0x4a8   : > { %4213 = vst [vmem:[%s8477_s30 + $0x78] sm:$0xff] %v4197_v63 }
 0x4a9   : > { %4212 = vst [vmem:[%s8477_s30 + $0x70] sm:$0xff] %v4196_v7 }
 0x4aa   : > { %7304 = shalt.err (!%p7301_p11)
}
 0x4ab   : > { %s7305_s30 = scalar_lea.hbm %s8766_s17, 2048  ;;  %s7309_s6 = scalar_lea.hbm %s8831_s5, 8192 }
 0x4ac   : > { %p7306_p13 = scmp.ne.s32.totalorder %s8766_s17, %s7305_s30  ;;  %p7310_p3 = scmp.lt.u32.totalorder %s8766_s17, %s8831_s5 }
 0x4ad   : > { %p7311_p8 = scmp.lt.u32.totalorder %s7309_s6, %s7305_s30  ;;  %p7313_p12 = scmp.lt.u32.totalorder %s7305_s30, %s8766_s17 }
 0x4ae   : > { %p7307_p1 = pnand %p7306_p13, %p8867_p0 }
 0x4af   : > { %p7312_p10 = por %p7311_p8, %p7310_p3 }
 0x4b0   : > { %p7308_p4 = pneg %p7307_p1 }
 0x4b1   : > { %p7314_p2 = por %p7313_p12, %p7312_p10 }
 0x4b3   : > { %p7315_p5 = pnand %p7314_p2, %p7308_p4 }
 0x4b5   : > { %7318 = shalt.err (!%p7315_p5)
}
 0x4b6   : > { %s7397_s21 = smov 128   ;;  %s7398_s10 = smov 8  }
 0x4b7   : > { %7179 = dma.vmem_to_hbm [thread:$0]  (%p8867_p0), %s8768_s22, 2048, %s8766_s17, %s8774_s2, %s7397_s21, %s7397_s21, %s7398_s10  }
 0x4b8 PF: > { %p7191_p6 = scmp.ge.s32.totalorder %s7389_s25, 2  ;;  %s4246_s14 = sand.u32 1, %s7361_s18  }
 0x4b9   : > { %p8868_p7 = scmp.ne.s32.totalorder %s8851_s8, 0  ;;  %s4247_s12 = scalar_lea.sflag [#allocation5], %s4246_s14 }
 0x4bb   : > { %p7186_p9 = pnand %p7191_p6, %p8868_p7 }
 0x4bd   : > { %7356 = dma.done.wait (!%p7186_p9), %s4247_s12, 2048  }
 0x4be   : > { %7358 = vsyncadd (!%p7186_p9), %s4247_s12, 4294965248  ;;  %s19_s25 = sadd.s32 1, %s7389_s25   ;;  %s8869_s7 = sld [smem:[#allocation9_spill]] }
 0x4bf   : > { %p16_p11 = scmp.ge.s32.totalorder %s19_s25, 6   ;;  %s8870_s17 = sld [smem:[#allocation10_spill]] }
 0x4c0   : > { %s8871_s18 = smov %s7365_s19  ;;  %s8872_s19 = smov %s7369_s20 }
 0x4c1   : > { %s8873_s20 = smov %s7508_s13  ;;  %s8874_s21 = smov %s7381_s23 }
 0x4c2   : > { %s8875_s22 = smov %s7385_s24  ;;  %18 = sbr.rel (!%p16_p11) target bundleno = 8 (0x8), region = 110 }
 0x4c4   : > { %s8876_s23 = smov %s8869_s7 }
 0x4c5   : > { %s8877_s24 = smov %s8870_s17 }
 0x4c9   :  { %4252 = vsyncpa [#allocation4], 1 }
 0x4ca   :  { %4254 = vsyncpa [#allocation4 + $0x1], 1 }
 0x4cb   :  { %4255 = vsyncpa [#allocation5], 1 }
 0x4cc   :  { %4257 = vsyncpa [#allocation5 + $0x1], 1 }

</bundles_post_ra>
